<compile_context>
chip_gen: v6e
topology: v6e:2x2x1
jax: 0.10.0
libtpu: 0.0.40
codegen_flags: <defaults>
</compile_context>

<pallas_src>
import functools
import math

import numpy as np

import jax
import jax.numpy as jnp
from jax.experimental import pallas as pl
from jax.experimental.pallas import tpu as pltpu


# ------------------------------ fused kernel -------------------------------

def _lenet5_kernel(x_ref, w1_ref, b1_ref, w2_ref, b2_ref,
                   wf1_ref, bf1_ref, wf2_ref, bf2_ref, wf3_ref, bf3_ref,
                   out_ref, pooled_scr):
    f32, bf16 = jnp.float32, jnp.bfloat16
    TB = out_ref.shape[0]          # images per grid step

    # ---- conv1 + bias + ReLU + 2x2 maxpool (phase-split) -------------------
    # x_ref[par, r, b, j] = image row 2r+par, column j (padded 28->128 lanes).
    # For pooling phase (a, b2) and tap row di, one matmul folds the 5 column
    # taps into the contraction: lanes j -> lanes (q'*8 + oc).
    def conv1_phase(a, b2):
        acc = None
        for di in range(5):
            par, ofs = (a + di) % 2, (a + di) // 2
            lhs = x_ref[par, ofs:ofs + 12, :, :].reshape(12 * TB, 128)
            t = jnp.dot(lhs, w1_ref[b2, di, :, :], preferred_element_type=f32)
            acc = t if acc is None else acc + t
        return acc                                       # (12*TB, 128) f32

    pooled = conv1_phase(0, 0)
    pooled = jnp.maximum(pooled, conv1_phase(0, 1))
    pooled = jnp.maximum(pooled, conv1_phase(1, 0))
    pooled = jnp.maximum(pooled, conv1_phase(1, 1))
    # bias/ReLU/max commute -> equals maxpool2x2(relu(conv1 + b1)).
    # Rows = p'*TB + b, lanes = q'*8 + ic (96 used, rest 0).
    pooled_scr[...] = jnp.maximum(pooled + b1_ref[...], 0.0)

    # ---- conv2 + bias + ReLU: 5 accumulating tap-row matmuls ----------------
    # Output rows = p*TB + b, lanes = q*16 + oc (lane-dense, all 128 used).
    c2 = None
    for di in range(5):
        lhs = pooled_scr[di * TB:(di + 8) * TB, :].astype(bf16)   # (8*TB,128)
        t = jnp.dot(lhs, w2_ref[di, :, :], preferred_element_type=f32)
        c2 = t if c2 is None else c2 + t
    act2 = jnp.maximum(c2 + b2_ref[...], 0.0)                     # (8*TB,128) f32

    # ---- fc1: contract directly against conv2's natural layout -------------
    h = None
    for p in range(8):
        lhs = act2[p * TB:(p + 1) * TB, :].astype(bf16)           # (TB, 128)
        t = jnp.dot(lhs, wf1_ref[p, :, :], preferred_element_type=f32)
        h = t if h is None else h + t
    h = jnp.maximum(h + bf1_ref[...], 0.0)                        # (TB, 128)

    # ---- fc2 -> ReLU -> fc3 (lane-dense, N padded to 128) -------------------
    h = jnp.dot(h.astype(bf16), wf2_ref[...], preferred_element_type=f32) + bf2_ref[...]
    h = jnp.maximum(h, 0.0)
    h = jnp.dot(h.astype(bf16), wf3_ref[...], preferred_element_type=f32) + bf3_ref[...]
    out_ref[...] = h


# --------------------------- one-time weight prep ---------------------------

def prepare_params(params):
    """Host-side (numpy) weight packing: done ONCE, outside the jitted path."""
    def np32(a):
        return np.asarray(jax.device_get(a), dtype=np.float32)

    c1w, c1b = np32(params["conv1_w"]), np32(params["conv1_b"])   # (6,1,5,5),(6,)
    c2w, c2b = np32(params["conv2_w"]), np32(params["conv2_b"])   # (16,6,5,5),(16,)
    f1w, f1b = np32(params["fc1_w"]), np32(params["fc1_b"])       # (120,1024)
    f2w, f2b = np32(params["fc2_w"]), np32(params["fc2_b"])       # (84,120)
    f3w, f3b = np32(params["fc3_w"]), np32(params["fc3_b"])       # (10,84)

    # conv1, column-folded: W1[b2, di, j, q'*8+oc] = c1w[oc,0,di, j - 2q' - b2]
    w1 = np.zeros((2, 5, 128, 128), np.float32)
    for b2 in range(2):
        for di in range(5):
            for dj in range(5):
                for qp in range(12):
                    j = 2 * qp + b2 + dj                      # <= 27 < 28
                    w1[b2, di, j, qp * 8:qp * 8 + 6] = c1w[:, 0, di, dj]
    b1 = np.zeros((1, 128), np.float32)
    for qp in range(12):
        b1[0, qp * 8:qp * 8 + 6] = c1b

    # conv2, column-folded per tap row: W2[di, q'*8+ic, q*16+oc] = c2w[oc,ic,di,q'-q]
    w2 = np.zeros((5, 128, 128), np.float32)
    for di in range(5):
        for dj in range(5):
            for q in range(8):
                qp = q + dj                                   # <= 11 < 12
                w2[di, qp * 8:qp * 8 + 6, q * 16:q * 16 + 16] = c2w[:, :, di, dj].T
    b2v = np.zeros((1, 128), np.float32)
    for q in range(8):
        b2v[0, q * 16:q * 16 + 16] = c2b

    # fc1, permuted to conv2's layout: Wf1[p, q*16+oc, n] = f1w[n, oc*64+p*8+q]
    wf1 = np.zeros((8, 128, 128), np.float32)
    f1wr = f1w.reshape(120, 16, 8, 8)                         # [n, oc, p, q]
    for p in range(8):
        for q in range(8):
            wf1[p, q * 16:q * 16 + 16, :120] = f1wr[:, :, p, q].T
    bf1 = np.zeros((1, 128), np.float32)
    bf1[0, :120] = f1b

    wf2 = np.zeros((128, 128), np.float32); wf2[:120, :84] = f2w.T
    bf2 = np.zeros((1, 128), np.float32);   bf2[0, :84] = f2b
    wf3 = np.zeros((128, 128), np.float32); wf3[:84, :10] = f3w.T
    bf3 = np.zeros((1, 128), np.float32);   bf3[0, :10] = f3b

    bf16, f32 = jnp.bfloat16, jnp.float32
    return (jnp.asarray(w1, bf16), jnp.asarray(b1, f32),
            jnp.asarray(w2, bf16), jnp.asarray(b2v, f32),
            jnp.asarray(wf1, bf16), jnp.asarray(bf1, f32),
            jnp.asarray(wf2, bf16), jnp.asarray(bf2, f32),
            jnp.asarray(wf3, bf16), jnp.asarray(bf3, f32))


# ------------------------------ forward pass --------------------------------

def _round_up(n, m):
    return ((n + m - 1) // m) * m


@functools.partial(jax.jit, static_argnames=("tb",))
def lenet5_forward(prepped, x, tb=128):
    (w1, b1, w2, b2, wf1, bf1, wf2, bf2, wf3, bf3) = prepped
    B = x.shape[0]
    TB = min(tb, _round_up(B, 16))        # images per grid step (sublane dim)
    Bp = _round_up(B, TB)

    # Input prep: batch pad, row-parity split, columns 28->128 lane pad, bf16.
    xi = x[:, 0, :, :]
    xi = jnp.pad(xi, ((0, Bp - B), (0, 0), (0, 128 - 28)))         # (Bp, 28, 128)
    xi = xi.transpose(1, 0, 2).reshape(14, 2, Bp, 128).transpose(1, 0, 2, 3)
    xi = xi.astype(jnp.bfloat16)                                    # (2, 14, Bp, 128)

    flops_per_img = (20 * 2 * 12 * 128 * 128      # conv1 (padded)
                     + 5 * 2 * 8 * 128 * 128      # conv2 (padded)
                     + 8 * 2 * 128 * 128          # fc1
                     + 2 * 2 * 128 * 128)         # fc2 + fc3
    bytes_accessed = int(xi.size) * 2 + Bp * 128 * 4 + sum(
        int(p.size) * p.dtype.itemsize for p in prepped)

    out = pl.pallas_call(
        _lenet5_kernel,
        out_shape=jax.ShapeDtypeStruct((Bp, 128), jnp.float32),
        grid_spec=pltpu.PrefetchScalarGridSpec(
            num_scalar_prefetch=0,
            grid=(Bp // TB,),
            in_specs=[
                pl.BlockSpec((2, 14, TB, 128), lambda i: (0, 0, i, 0)),  # image
                pl.BlockSpec((2, 5, 128, 128), lambda i: (0, 0, 0, 0)),  # conv1 w
                pl.BlockSpec((1, 128), lambda i: (0, 0)),                # conv1 b
                pl.BlockSpec((5, 128, 128), lambda i: (0, 0, 0)),        # conv2 w
                pl.BlockSpec((1, 128), lambda i: (0, 0)),                # conv2 b
                pl.BlockSpec((8, 128, 128), lambda i: (0, 0, 0)),        # fc1 w
                pl.BlockSpec((1, 128), lambda i: (0, 0)),                # fc1 b
                pl.BlockSpec((128, 128), lambda i: (0, 0)),              # fc2 w
                pl.BlockSpec((1, 128), lambda i: (0, 0)),                # fc2 b
                pl.BlockSpec((128, 128), lambda i: (0, 0)),              # fc3 w
                pl.BlockSpec((1, 128), lambda i: (0, 0)),                # fc3 b
            ],
            out_specs=pl.BlockSpec((TB, 128), lambda i: (i, 0)),
            scratch_shapes=[pltpu.VMEM((12 * TB, 128), jnp.float32)],
        ),
        compiler_params=pltpu.CompilerParams(
            dimension_semantics=("parallel",)),
        cost_estimate=pl.CostEstimate(
            flops=Bp * flops_per_img,
            transcendentals=0,
            bytes_accessed=int(bytes_accessed)),
    )(xi, w1, b1, w2, b2, wf1, bf1, wf2, bf2, wf3, bf3)

    return out[:B, :10]


# ------------------------------ LeNet5 params -------------------------------

def init_params(key):
    """Deterministic init mirroring PyTorch default U(-1/sqrt(fan_in), ...)."""
    def uni(k, shape, fan_in):
        bound = 1.0 / math.sqrt(fan_in)
        return jax.random.uniform(k, shape, jnp.float32, -bound, bound)

    ks = jax.random.split(key, 10)
    return {
        "conv1_w": uni(ks[0], (6, 1, 5, 5), 1 * 25),
        "conv1_b": uni(ks[1], (6,), 1 * 25),
        "conv2_w": uni(ks[2], (16, 6, 5, 5), 6 * 25),
        "conv2_b": uni(ks[3], (16,), 6 * 25),
        "fc1_w": uni(ks[4], (120, 1024), 1024),
        "fc1_b": uni(ks[5], (120,), 1024),
        "fc2_w": uni(ks[6], (84, 120), 120),
        "fc2_b": uni(ks[7], (84,), 120),
        "fc3_w": uni(ks[8], (10, 84), 84),
        "fc3_b": uni(ks[9], (10,), 84),
    }


def lenet5_reference(params, x):
    """Pure-JAX (f32) reference for correctness checking."""
    def conv(y, w, b):
        z = jax.lax.conv_general_dilated(
            y, w, (1, 1), "VALID", dimension_numbers=("NCHW", "OIHW", "NCHW"))
        return jax.nn.relu(z + b[None, :, None, None])

    x = conv(x, params["conv1_w"], params["conv1_b"])
    x = jax.lax.reduce_window(x, -jnp.inf, jax.lax.max,
                              (1, 1, 2, 2), (1, 1, 2, 2), "VALID")
    x = conv(x, params["conv2_w"], params["conv2_b"])   # max_pool2d(.,1) == identity
    B = x.shape[0]
    x = x.reshape(B, -1)
    x = jax.nn.relu(x @ params["fc1_w"].T + params["fc1_b"])
    x = jax.nn.relu(x @ params["fc2_w"].T + params["fc2_b"])
    return x @ params["fc3_w"].T + params["fc3_b"]


# TODO(synk): the `toKnowMaxPoolSize` debug branch (prints x.size(), returns
# None) is a training-time introspection hook and is intentionally not implemented.

if __name__ == "__main__":
    key = jax.random.PRNGKey(0)
    k_params, k_x = jax.random.split(key)
    params = init_params(k_params)
    # LeNet5 with fc1 of 1024 = 16*8*8 inputs implies 1x28x28 MNIST-sized input.
    x = jax.random.normal(k_x, (2, 1, 28, 28), dtype=jnp.float32)

    prepped = prepare_params(params)          # one-time weight packing (host)
    out = jax.block_until_ready(lenet5_forward(prepped, x))
    ref = jax.block_until_ready(lenet5_reference(params, x))

    assert out.shape == (2, 10), out.shape
    max_diff = float(jnp.max(jnp.abs(out - ref)))
    assert jnp.allclose(out, ref, rtol=2e-2, atol=2e-2), (
        "max abs diff = %g" % max_diff)
    print("KERNEL_OK")
</pallas_src>

<mosaic_0001>
module attributes {stable_mosaic.version = 11 : i64} {
  func.func @_lenet5_kernel(%arg0: i32, %arg1: memref<2x14x16x128xbf16, #tpu.memory_space<vmem>>, %arg2: memref<2x5x128x128xbf16, #tpu.memory_space<vmem>>, %arg3: memref<1x128xf32, #tpu.memory_space<vmem>>, %arg4: memref<5x128x128xbf16, #tpu.memory_space<vmem>>, %arg5: memref<1x128xf32, #tpu.memory_space<vmem>>, %arg6: memref<8x128x128xbf16, #tpu.memory_space<vmem>>, %arg7: memref<1x128xf32, #tpu.memory_space<vmem>>, %arg8: memref<128x128xbf16, #tpu.memory_space<vmem>>, %arg9: memref<1x128xf32, #tpu.memory_space<vmem>>, %arg10: memref<128x128xbf16, #tpu.memory_space<vmem>>, %arg11: memref<1x128xf32, #tpu.memory_space<vmem>>, %arg12: memref<16x128xf32, #tpu.memory_space<vmem>>, %arg13: memref<192x128xf32, #tpu.memory_space<vmem>>) attributes {dimension_semantics = [#tpu.dimension_semantics<parallel>], iteration_bounds = array<i64: 1>, scalar_prefetch = 0 : i64, scratch_operands = 1 : i64, tpu.core_type = #tpu.core_type<tc>, window_params = [{transform_indices = @transform_0, window_bounds = array<i64: 2, 14, 16, 128>}, {pipeline_mode = #tpu.pipeline_mode<synchronous>, transform_indices = @transform_1, window_bounds = array<i64: 2, 5, 128, 128>}, {pipeline_mode = #tpu.pipeline_mode<synchronous>, transform_indices = @transform_2, window_bounds = array<i64: 1, 128>}, {pipeline_mode = #tpu.pipeline_mode<synchronous>, transform_indices = @transform_3, window_bounds = array<i64: 5, 128, 128>}, {pipeline_mode = #tpu.pipeline_mode<synchronous>, transform_indices = @transform_4, window_bounds = array<i64: 1, 128>}, {pipeline_mode = #tpu.pipeline_mode<synchronous>, transform_indices = @transform_5, window_bounds = array<i64: 8, 128, 128>}, {pipeline_mode = #tpu.pipeline_mode<synchronous>, transform_indices = @transform_6, window_bounds = array<i64: 1, 128>}, {pipeline_mode = #tpu.pipeline_mode<synchronous>, transform_indices = @transform_7, window_bounds = array<i64: 128, 128>}, {pipeline_mode = #tpu.pipeline_mode<synchronous>, transform_indices = @transform_8, window_bounds = array<i64: 1, 128>}, {pipeline_mode = #tpu.pipeline_mode<synchronous>, transform_indices = @transform_9, window_bounds = array<i64: 128, 128>}, {pipeline_mode = #tpu.pipeline_mode<synchronous>, transform_indices = @transform_10, window_bounds = array<i64: 1, 128>}, {transform_indices = @transform_11, window_bounds = array<i64: 16, 128>}]} {
    %c0 = arith.constant 0 : index
    %c0_0 = arith.constant 0 : index
    %c0_1 = arith.constant 0 : index
    %c0_2 = arith.constant 0 : index
    %0 = vector.load %arg1[%c0, %c0_0, %c0_1, %c0_2] : memref<2x14x16x128xbf16, #tpu.memory_space<vmem>>, vector<1x12x16x128xbf16>
    %1 = vector.shape_cast %0 : vector<1x12x16x128xbf16> to vector<12x16x128xbf16>
    %2 = vector.shape_cast %1 : vector<12x16x128xbf16> to vector<192x128xbf16>
    %c0_3 = arith.constant 0 : index
    %c0_4 = arith.constant 0 : index
    %c0_5 = arith.constant 0 : index
    %c0_6 = arith.constant 0 : index
    %3 = vector.load %arg2[%c0_3, %c0_4, %c0_5, %c0_6] : memref<2x5x128x128xbf16, #tpu.memory_space<vmem>>, vector<1x1x128x128xbf16>
    %4 = vector.shape_cast %3 : vector<1x1x128x128xbf16> to vector<128x128xbf16>
    %cst = arith.constant dense<0.000000e+00> : vector<192x128xf32>
    %5 = tpu.matmul %2, %4, %cst {dimension_numbers = #tpu.dot_dimension_numbers<[1], [0], [0], [1], [0, 0, 1, 1], [], []>} : vector<192x128xbf16>, vector<128x128xbf16>, vector<192x128xf32> -> vector<192x128xf32>
    %c1 = arith.constant 1 : index
    %c0_7 = arith.constant 0 : index
    %c0_8 = arith.constant 0 : index
    %c0_9 = arith.constant 0 : index
    %6 = vector.load %arg1[%c1, %c0_7, %c0_8, %c0_9] : memref<2x14x16x128xbf16, #tpu.memory_space<vmem>>, vector<1x12x16x128xbf16>
    %7 = vector.shape_cast %6 : vector<1x12x16x128xbf16> to vector<12x16x128xbf16>
    %8 = vector.shape_cast %7 : vector<12x16x128xbf16> to vector<192x128xbf16>
    %c0_10 = arith.constant 0 : index
    %c1_11 = arith.constant 1 : index
    %c0_12 = arith.constant 0 : index
    %c0_13 = arith.constant 0 : index
    %9 = vector.load %arg2[%c0_10, %c1_11, %c0_12, %c0_13] : memref<2x5x128x128xbf16, #tpu.memory_space<vmem>>, vector<1x1x128x128xbf16>
    %10 = vector.shape_cast %9 : vector<1x1x128x128xbf16> to vector<128x128xbf16>
    %cst_14 = arith.constant dense<0.000000e+00> : vector<192x128xf32>
    %11 = tpu.matmul %8, %10, %cst_14 {dimension_numbers = #tpu.dot_dimension_numbers<[1], [0], [0], [1], [0, 0, 1, 1], [], []>} : vector<192x128xbf16>, vector<128x128xbf16>, vector<192x128xf32> -> vector<192x128xf32>
    %12 = arith.addf %5, %11 : vector<192x128xf32>
    %c0_15 = arith.constant 0 : index
    %c1_16 = arith.constant 1 : index
    %c0_17 = arith.constant 0 : index
    %c0_18 = arith.constant 0 : index
    %13 = vector.load %arg1[%c0_15, %c1_16, %c0_17, %c0_18] : memref<2x14x16x128xbf16, #tpu.memory_space<vmem>>, vector<1x12x16x128xbf16>
    %14 = vector.shape_cast %13 : vector<1x12x16x128xbf16> to vector<12x16x128xbf16>
    %15 = vector.shape_cast %14 : vector<12x16x128xbf16> to vector<192x128xbf16>
    %c0_19 = arith.constant 0 : index
    %c2 = arith.constant 2 : index
    %c0_20 = arith.constant 0 : index
    %c0_21 = arith.constant 0 : index
    %16 = vector.load %arg2[%c0_19, %c2, %c0_20, %c0_21] : memref<2x5x128x128xbf16, #tpu.memory_space<vmem>>, vector<1x1x128x128xbf16>
    %17 = vector.shape_cast %16 : vector<1x1x128x128xbf16> to vector<128x128xbf16>
    %cst_22 = arith.constant dense<0.000000e+00> : vector<192x128xf32>
    %18 = tpu.matmul %15, %17, %cst_22 {dimension_numbers = #tpu.dot_dimension_numbers<[1], [0], [0], [1], [0, 0, 1, 1], [], []>} : vector<192x128xbf16>, vector<128x128xbf16>, vector<192x128xf32> -> vector<192x128xf32>
    %19 = arith.addf %12, %18 : vector<192x128xf32>
    %c1_23 = arith.constant 1 : index
    %c1_24 = arith.constant 1 : index
    %c0_25 = arith.constant 0 : index
    %c0_26 = arith.constant 0 : index
    %20 = vector.load %arg1[%c1_23, %c1_24, %c0_25, %c0_26] : memref<2x14x16x128xbf16, #tpu.memory_space<vmem>>, vector<1x12x16x128xbf16>
    %21 = vector.shape_cast %20 : vector<1x12x16x128xbf16> to vector<12x16x128xbf16>
    %22 = vector.shape_cast %21 : vector<12x16x128xbf16> to vector<192x128xbf16>
    %c0_27 = arith.constant 0 : index
    %c3 = arith.constant 3 : index
    %c0_28 = arith.constant 0 : index
    %c0_29 = arith.constant 0 : index
    %23 = vector.load %arg2[%c0_27, %c3, %c0_28, %c0_29] : memref<2x5x128x128xbf16, #tpu.memory_space<vmem>>, vector<1x1x128x128xbf16>
    %24 = vector.shape_cast %23 : vector<1x1x128x128xbf16> to vector<128x128xbf16>
    %cst_30 = arith.constant dense<0.000000e+00> : vector<192x128xf32>
    %25 = tpu.matmul %22, %24, %cst_30 {dimension_numbers = #tpu.dot_dimension_numbers<[1], [0], [0], [1], [0, 0, 1, 1], [], []>} : vector<192x128xbf16>, vector<128x128xbf16>, vector<192x128xf32> -> vector<192x128xf32>
    %26 = arith.addf %19, %25 : vector<192x128xf32>
    %c0_31 = arith.constant 0 : index
    %c2_32 = arith.constant 2 : index
    %c0_33 = arith.constant 0 : index
    %c0_34 = arith.constant 0 : index
    %27 = vector.load %arg1[%c0_31, %c2_32, %c0_33, %c0_34] : memref<2x14x16x128xbf16, #tpu.memory_space<vmem>>, vector<1x12x16x128xbf16>
    %28 = vector.shape_cast %27 : vector<1x12x16x128xbf16> to vector<12x16x128xbf16>
    %29 = vector.shape_cast %28 : vector<12x16x128xbf16> to vector<192x128xbf16>
    %c0_35 = arith.constant 0 : index
    %c4 = arith.constant 4 : index
    %c0_36 = arith.constant 0 : index
    %c0_37 = arith.constant 0 : index
    %30 = vector.load %arg2[%c0_35, %c4, %c0_36, %c0_37] : memref<2x5x128x128xbf16, #tpu.memory_space<vmem>>, vector<1x1x128x128xbf16>
    %31 = vector.shape_cast %30 : vector<1x1x128x128xbf16> to vector<128x128xbf16>
    %cst_38 = arith.constant dense<0.000000e+00> : vector<192x128xf32>
    %32 = tpu.matmul %29, %31, %cst_38 {dimension_numbers = #tpu.dot_dimension_numbers<[1], [0], [0], [1], [0, 0, 1, 1], [], []>} : vector<192x128xbf16>, vector<128x128xbf16>, vector<192x128xf32> -> vector<192x128xf32>
    %33 = arith.addf %26, %32 : vector<192x128xf32>
    %c0_39 = arith.constant 0 : index
    %c0_40 = arith.constant 0 : index
    %c0_41 = arith.constant 0 : index
    %c0_42 = arith.constant 0 : index
    %34 = vector.load %arg1[%c0_39, %c0_40, %c0_41, %c0_42] : memref<2x14x16x128xbf16, #tpu.memory_space<vmem>>, vector<1x12x16x128xbf16>
    %35 = vector.shape_cast %34 : vector<1x12x16x128xbf16> to vector<12x16x128xbf16>
    %36 = vector.shape_cast %35 : vector<12x16x128xbf16> to vector<192x128xbf16>
    %c1_43 = arith.constant 1 : index
    %c0_44 = arith.constant 0 : index
    %c0_45 = arith.constant 0 : index
    %c0_46 = arith.constant 0 : index
    %37 = vector.load %arg2[%c1_43, %c0_44, %c0_45, %c0_46] : memref<2x5x128x128xbf16, #tpu.memory_space<vmem>>, vector<1x1x128x128xbf16>
    %38 = vector.shape_cast %37 : vector<1x1x128x128xbf16> to vector<128x128xbf16>
    %cst_47 = arith.constant dense<0.000000e+00> : vector<192x128xf32>
    %39 = tpu.matmul %36, %38, %cst_47 {dimension_numbers = #tpu.dot_dimension_numbers<[1], [0], [0], [1], [0, 0, 1, 1], [], []>} : vector<192x128xbf16>, vector<128x128xbf16>, vector<192x128xf32> -> vector<192x128xf32>
    %c1_48 = arith.constant 1 : index
    %c0_49 = arith.constant 0 : index
    %c0_50 = arith.constant 0 : index
    %c0_51 = arith.constant 0 : index
    %40 = vector.load %arg1[%c1_48, %c0_49, %c0_50, %c0_51] : memref<2x14x16x128xbf16, #tpu.memory_space<vmem>>, vector<1x12x16x128xbf16>
    %41 = vector.shape_cast %40 : vector<1x12x16x128xbf16> to vector<12x16x128xbf16>
    %42 = vector.shape_cast %41 : vector<12x16x128xbf16> to vector<192x128xbf16>
    %c1_52 = arith.constant 1 : index
    %c1_53 = arith.constant 1 : index
    %c0_54 = arith.constant 0 : index
    %c0_55 = arith.constant 0 : index
    %43 = vector.load %arg2[%c1_52, %c1_53, %c0_54, %c0_55] : memref<2x5x128x128xbf16, #tpu.memory_space<vmem>>, vector<1x1x128x128xbf16>
    %44 = vector.shape_cast %43 : vector<1x1x128x128xbf16> to vector<128x128xbf16>
    %cst_56 = arith.constant dense<0.000000e+00> : vector<192x128xf32>
    %45 = tpu.matmul %42, %44, %cst_56 {dimension_numbers = #tpu.dot_dimension_numbers<[1], [0], [0], [1], [0, 0, 1, 1], [], []>} : vector<192x128xbf16>, vector<128x128xbf16>, vector<192x128xf32> -> vector<192x128xf32>
    %46 = arith.addf %39, %45 : vector<192x128xf32>
    %c0_57 = arith.constant 0 : index
    %c1_58 = arith.constant 1 : index
    %c0_59 = arith.constant 0 : index
    %c0_60 = arith.constant 0 : index
    %47 = vector.load %arg1[%c0_57, %c1_58, %c0_59, %c0_60] : memref<2x14x16x128xbf16, #tpu.memory_space<vmem>>, vector<1x12x16x128xbf16>
    %48 = vector.shape_cast %47 : vector<1x12x16x128xbf16> to vector<12x16x128xbf16>
    %49 = vector.shape_cast %48 : vector<12x16x128xbf16> to vector<192x128xbf16>
    %c1_61 = arith.constant 1 : index
    %c2_62 = arith.constant 2 : index
    %c0_63 = arith.constant 0 : index
    %c0_64 = arith.constant 0 : index
    %50 = vector.load %arg2[%c1_61, %c2_62, %c0_63, %c0_64] : memref<2x5x128x128xbf16, #tpu.memory_space<vmem>>, vector<1x1x128x128xbf16>
    %51 = vector.shape_cast %50 : vector<1x1x128x128xbf16> to vector<128x128xbf16>
    %cst_65 = arith.constant dense<0.000000e+00> : vector<192x128xf32>
    %52 = tpu.matmul %49, %51, %cst_65 {dimension_numbers = #tpu.dot_dimension_numbers<[1], [0], [0], [1], [0, 0, 1, 1], [], []>} : vector<192x128xbf16>, vector<128x128xbf16>, vector<192x128xf32> -> vector<192x128xf32>
    %53 = arith.addf %46, %52 : vector<192x128xf32>
    %c1_66 = arith.constant 1 : index
    %c1_67 = arith.constant 1 : index
    %c0_68 = arith.constant 0 : index
    %c0_69 = arith.constant 0 : index
    %54 = vector.load %arg1[%c1_66, %c1_67, %c0_68, %c0_69] : memref<2x14x16x128xbf16, #tpu.memory_space<vmem>>, vector<1x12x16x128xbf16>
    %55 = vector.shape_cast %54 : vector<1x12x16x128xbf16> to vector<12x16x128xbf16>
    %56 = vector.shape_cast %55 : vector<12x16x128xbf16> to vector<192x128xbf16>
    %c1_70 = arith.constant 1 : index
    %c3_71 = arith.constant 3 : index
    %c0_72 = arith.constant 0 : index
    %c0_73 = arith.constant 0 : index
    %57 = vector.load %arg2[%c1_70, %c3_71, %c0_72, %c0_73] : memref<2x5x128x128xbf16, #tpu.memory_space<vmem>>, vector<1x1x128x128xbf16>
    %58 = vector.shape_cast %57 : vector<1x1x128x128xbf16> to vector<128x128xbf16>
    %cst_74 = arith.constant dense<0.000000e+00> : vector<192x128xf32>
    %59 = tpu.matmul %56, %58, %cst_74 {dimension_numbers = #tpu.dot_dimension_numbers<[1], [0], [0], [1], [0, 0, 1, 1], [], []>} : vector<192x128xbf16>, vector<128x128xbf16>, vector<192x128xf32> -> vector<192x128xf32>
    %60 = arith.addf %53, %59 : vector<192x128xf32>
    %c0_75 = arith.constant 0 : index
    %c2_76 = arith.constant 2 : index
    %c0_77 = arith.constant 0 : index
    %c0_78 = arith.constant 0 : index
    %61 = vector.load %arg1[%c0_75, %c2_76, %c0_77, %c0_78] : memref<2x14x16x128xbf16, #tpu.memory_space<vmem>>, vector<1x12x16x128xbf16>
    %62 = vector.shape_cast %61 : vector<1x12x16x128xbf16> to vector<12x16x128xbf16>
    %63 = vector.shape_cast %62 : vector<12x16x128xbf16> to vector<192x128xbf16>
    %c1_79 = arith.constant 1 : index
    %c4_80 = arith.constant 4 : index
    %c0_81 = arith.constant 0 : index
    %c0_82 = arith.constant 0 : index
    %64 = vector.load %arg2[%c1_79, %c4_80, %c0_81, %c0_82] : memref<2x5x128x128xbf16, #tpu.memory_space<vmem>>, vector<1x1x128x128xbf16>
    %65 = vector.shape_cast %64 : vector<1x1x128x128xbf16> to vector<128x128xbf16>
    %cst_83 = arith.constant dense<0.000000e+00> : vector<192x128xf32>
    %66 = tpu.matmul %63, %65, %cst_83 {dimension_numbers = #tpu.dot_dimension_numbers<[1], [0], [0], [1], [0, 0, 1, 1], [], []>} : vector<192x128xbf16>, vector<128x128xbf16>, vector<192x128xf32> -> vector<192x128xf32>
    %67 = arith.addf %60, %66 : vector<192x128xf32>
    %68 = arith.maximumf %33, %67 : vector<192x128xf32>
    %c1_84 = arith.constant 1 : index
    %c0_85 = arith.constant 0 : index
    %c0_86 = arith.constant 0 : index
    %c0_87 = arith.constant 0 : index
    %69 = vector.load %arg1[%c1_84, %c0_85, %c0_86, %c0_87] : memref<2x14x16x128xbf16, #tpu.memory_space<vmem>>, vector<1x12x16x128xbf16>
    %70 = vector.shape_cast %69 : vector<1x12x16x128xbf16> to vector<12x16x128xbf16>
    %71 = vector.shape_cast %70 : vector<12x16x128xbf16> to vector<192x128xbf16>
    %c0_88 = arith.constant 0 : index
    %c0_89 = arith.constant 0 : index
    %c0_90 = arith.constant 0 : index
    %c0_91 = arith.constant 0 : index
    %72 = vector.load %arg2[%c0_88, %c0_89, %c0_90, %c0_91] : memref<2x5x128x128xbf16, #tpu.memory_space<vmem>>, vector<1x1x128x128xbf16>
    %73 = vector.shape_cast %72 : vector<1x1x128x128xbf16> to vector<128x128xbf16>
    %cst_92 = arith.constant dense<0.000000e+00> : vector<192x128xf32>
    %74 = tpu.matmul %71, %73, %cst_92 {dimension_numbers = #tpu.dot_dimension_numbers<[1], [0], [0], [1], [0, 0, 1, 1], [], []>} : vector<192x128xbf16>, vector<128x128xbf16>, vector<192x128xf32> -> vector<192x128xf32>
    %c0_93 = arith.constant 0 : index
    %c1_94 = arith.constant 1 : index
    %c0_95 = arith.constant 0 : index
    %c0_96 = arith.constant 0 : index
    %75 = vector.load %arg1[%c0_93, %c1_94, %c0_95, %c0_96] : memref<2x14x16x128xbf16, #tpu.memory_space<vmem>>, vector<1x12x16x128xbf16>
    %76 = vector.shape_cast %75 : vector<1x12x16x128xbf16> to vector<12x16x128xbf16>
    %77 = vector.shape_cast %76 : vector<12x16x128xbf16> to vector<192x128xbf16>
    %c0_97 = arith.constant 0 : index
    %c1_98 = arith.constant 1 : index
    %c0_99 = arith.constant 0 : index
    %c0_100 = arith.constant 0 : index
    %78 = vector.load %arg2[%c0_97, %c1_98, %c0_99, %c0_100] : memref<2x5x128x128xbf16, #tpu.memory_space<vmem>>, vector<1x1x128x128xbf16>
    %79 = vector.shape_cast %78 : vector<1x1x128x128xbf16> to vector<128x128xbf16>
    %cst_101 = arith.constant dense<0.000000e+00> : vector<192x128xf32>
    %80 = tpu.matmul %77, %79, %cst_101 {dimension_numbers = #tpu.dot_dimension_numbers<[1], [0], [0], [1], [0, 0, 1, 1], [], []>} : vector<192x128xbf16>, vector<128x128xbf16>, vector<192x128xf32> -> vector<192x128xf32>
    %81 = arith.addf %74, %80 : vector<192x128xf32>
    %c1_102 = arith.constant 1 : index
    %c1_103 = arith.constant 1 : index
    %c0_104 = arith.constant 0 : index
    %c0_105 = arith.constant 0 : index
    %82 = vector.load %arg1[%c1_102, %c1_103, %c0_104, %c0_105] : memref<2x14x16x128xbf16, #tpu.memory_space<vmem>>, vector<1x12x16x128xbf16>
    %83 = vector.shape_cast %82 : vector<1x12x16x128xbf16> to vector<12x16x128xbf16>
    %84 = vector.shape_cast %83 : vector<12x16x128xbf16> to vector<192x128xbf16>
    %c0_106 = arith.constant 0 : index
    %c2_107 = arith.constant 2 : index
    %c0_108 = arith.constant 0 : index
    %c0_109 = arith.constant 0 : index
    %85 = vector.load %arg2[%c0_106, %c2_107, %c0_108, %c0_109] : memref<2x5x128x128xbf16, #tpu.memory_space<vmem>>, vector<1x1x128x128xbf16>
    %86 = vector.shape_cast %85 : vector<1x1x128x128xbf16> to vector<128x128xbf16>
    %cst_110 = arith.constant dense<0.000000e+00> : vector<192x128xf32>
    %87 = tpu.matmul %84, %86, %cst_110 {dimension_numbers = #tpu.dot_dimension_numbers<[1], [0], [0], [1], [0, 0, 1, 1], [], []>} : vector<192x128xbf16>, vector<128x128xbf16>, vector<192x128xf32> -> vector<192x128xf32>
    %88 = arith.addf %81, %87 : vector<192x128xf32>
    %c0_111 = arith.constant 0 : index
    %c2_112 = arith.constant 2 : index
    %c0_113 = arith.constant 0 : index
    %c0_114 = arith.constant 0 : index
    %89 = vector.load %arg1[%c0_111, %c2_112, %c0_113, %c0_114] : memref<2x14x16x128xbf16, #tpu.memory_space<vmem>>, vector<1x12x16x128xbf16>
    %90 = vector.shape_cast %89 : vector<1x12x16x128xbf16> to vector<12x16x128xbf16>
    %91 = vector.shape_cast %90 : vector<12x16x128xbf16> to vector<192x128xbf16>
    %c0_115 = arith.constant 0 : index
    %c3_116 = arith.constant 3 : index
    %c0_117 = arith.constant 0 : index
    %c0_118 = arith.constant 0 : index
    %92 = vector.load %arg2[%c0_115, %c3_116, %c0_117, %c0_118] : memref<2x5x128x128xbf16, #tpu.memory_space<vmem>>, vector<1x1x128x128xbf16>
    %93 = vector.shape_cast %92 : vector<1x1x128x128xbf16> to vector<128x128xbf16>
    %cst_119 = arith.constant dense<0.000000e+00> : vector<192x128xf32>
    %94 = tpu.matmul %91, %93, %cst_119 {dimension_numbers = #tpu.dot_dimension_numbers<[1], [0], [0], [1], [0, 0, 1, 1], [], []>} : vector<192x128xbf16>, vector<128x128xbf16>, vector<192x128xf32> -> vector<192x128xf32>
    %95 = arith.addf %88, %94 : vector<192x128xf32>
    %c1_120 = arith.constant 1 : index
    %c2_121 = arith.constant 2 : index
    %c0_122 = arith.constant 0 : index
    %c0_123 = arith.constant 0 : index
    %96 = vector.load %arg1[%c1_120, %c2_121, %c0_122, %c0_123] : memref<2x14x16x128xbf16, #tpu.memory_space<vmem>>, vector<1x12x16x128xbf16>
    %97 = vector.shape_cast %96 : vector<1x12x16x128xbf16> to vector<12x16x128xbf16>
    %98 = vector.shape_cast %97 : vector<12x16x128xbf16> to vector<192x128xbf16>
    %c0_124 = arith.constant 0 : index
    %c4_125 = arith.constant 4 : index
    %c0_126 = arith.constant 0 : index
    %c0_127 = arith.constant 0 : index
    %99 = vector.load %arg2[%c0_124, %c4_125, %c0_126, %c0_127] : memref<2x5x128x128xbf16, #tpu.memory_space<vmem>>, vector<1x1x128x128xbf16>
    %100 = vector.shape_cast %99 : vector<1x1x128x128xbf16> to vector<128x128xbf16>
    %cst_128 = arith.constant dense<0.000000e+00> : vector<192x128xf32>
    %101 = tpu.matmul %98, %100, %cst_128 {dimension_numbers = #tpu.dot_dimension_numbers<[1], [0], [0], [1], [0, 0, 1, 1], [], []>} : vector<192x128xbf16>, vector<128x128xbf16>, vector<192x128xf32> -> vector<192x128xf32>
    %102 = arith.addf %95, %101 : vector<192x128xf32>
    %103 = arith.maximumf %68, %102 : vector<192x128xf32>
    %c1_129 = arith.constant 1 : index
    %c0_130 = arith.constant 0 : index
    %c0_131 = arith.constant 0 : index
    %c0_132 = arith.constant 0 : index
    %104 = vector.load %arg1[%c1_129, %c0_130, %c0_131, %c0_132] : memref<2x14x16x128xbf16, #tpu.memory_space<vmem>>, vector<1x12x16x128xbf16>
    %105 = vector.shape_cast %104 : vector<1x12x16x128xbf16> to vector<12x16x128xbf16>
    %106 = vector.shape_cast %105 : vector<12x16x128xbf16> to vector<192x128xbf16>
    %c1_133 = arith.constant 1 : index
    %c0_134 = arith.constant 0 : index
    %c0_135 = arith.constant 0 : index
    %c0_136 = arith.constant 0 : index
    %107 = vector.load %arg2[%c1_133, %c0_134, %c0_135, %c0_136] : memref<2x5x128x128xbf16, #tpu.memory_space<vmem>>, vector<1x1x128x128xbf16>
    %108 = vector.shape_cast %107 : vector<1x1x128x128xbf16> to vector<128x128xbf16>
    %cst_137 = arith.constant dense<0.000000e+00> : vector<192x128xf32>
    %109 = tpu.matmul %106, %108, %cst_137 {dimension_numbers = #tpu.dot_dimension_numbers<[1], [0], [0], [1], [0, 0, 1, 1], [], []>} : vector<192x128xbf16>, vector<128x128xbf16>, vector<192x128xf32> -> vector<192x128xf32>
    %c0_138 = arith.constant 0 : index
    %c1_139 = arith.constant 1 : index
    %c0_140 = arith.constant 0 : index
    %c0_141 = arith.constant 0 : index
    %110 = vector.load %arg1[%c0_138, %c1_139, %c0_140, %c0_141] : memref<2x14x16x128xbf16, #tpu.memory_space<vmem>>, vector<1x12x16x128xbf16>
    %111 = vector.shape_cast %110 : vector<1x12x16x128xbf16> to vector<12x16x128xbf16>
    %112 = vector.shape_cast %111 : vector<12x16x128xbf16> to vector<192x128xbf16>
    %c1_142 = arith.constant 1 : index
    %c1_143 = arith.constant 1 : index
    %c0_144 = arith.constant 0 : index
    %c0_145 = arith.constant 0 : index
    %113 = vector.load %arg2[%c1_142, %c1_143, %c0_144, %c0_145] : memref<2x5x128x128xbf16, #tpu.memory_space<vmem>>, vector<1x1x128x128xbf16>
    %114 = vector.shape_cast %113 : vector<1x1x128x128xbf16> to vector<128x128xbf16>
    %cst_146 = arith.constant dense<0.000000e+00> : vector<192x128xf32>
    %115 = tpu.matmul %112, %114, %cst_146 {dimension_numbers = #tpu.dot_dimension_numbers<[1], [0], [0], [1], [0, 0, 1, 1], [], []>} : vector<192x128xbf16>, vector<128x128xbf16>, vector<192x128xf32> -> vector<192x128xf32>
    %116 = arith.addf %109, %115 : vector<192x128xf32>
    %c1_147 = arith.constant 1 : index
    %c1_148 = arith.constant 1 : index
    %c0_149 = arith.constant 0 : index
    %c0_150 = arith.constant 0 : index
    %117 = vector.load %arg1[%c1_147, %c1_148, %c0_149, %c0_150] : memref<2x14x16x128xbf16, #tpu.memory_space<vmem>>, vector<1x12x16x128xbf16>
    %118 = vector.shape_cast %117 : vector<1x12x16x128xbf16> to vector<12x16x128xbf16>
    %119 = vector.shape_cast %118 : vector<12x16x128xbf16> to vector<192x128xbf16>
    %c1_151 = arith.constant 1 : index
    %c2_152 = arith.constant 2 : index
    %c0_153 = arith.constant 0 : index
    %c0_154 = arith.constant 0 : index
    %120 = vector.load %arg2[%c1_151, %c2_152, %c0_153, %c0_154] : memref<2x5x128x128xbf16, #tpu.memory_space<vmem>>, vector<1x1x128x128xbf16>
    %121 = vector.shape_cast %120 : vector<1x1x128x128xbf16> to vector<128x128xbf16>
    %cst_155 = arith.constant dense<0.000000e+00> : vector<192x128xf32>
    %122 = tpu.matmul %119, %121, %cst_155 {dimension_numbers = #tpu.dot_dimension_numbers<[1], [0], [0], [1], [0, 0, 1, 1], [], []>} : vector<192x128xbf16>, vector<128x128xbf16>, vector<192x128xf32> -> vector<192x128xf32>
    %123 = arith.addf %116, %122 : vector<192x128xf32>
    %c0_156 = arith.constant 0 : index
    %c2_157 = arith.constant 2 : index
    %c0_158 = arith.constant 0 : index
    %c0_159 = arith.constant 0 : index
    %124 = vector.load %arg1[%c0_156, %c2_157, %c0_158, %c0_159] : memref<2x14x16x128xbf16, #tpu.memory_space<vmem>>, vector<1x12x16x128xbf16>
    %125 = vector.shape_cast %124 : vector<1x12x16x128xbf16> to vector<12x16x128xbf16>
    %126 = vector.shape_cast %125 : vector<12x16x128xbf16> to vector<192x128xbf16>
    %c1_160 = arith.constant 1 : index
    %c3_161 = arith.constant 3 : index
    %c0_162 = arith.constant 0 : index
    %c0_163 = arith.constant 0 : index
    %127 = vector.load %arg2[%c1_160, %c3_161, %c0_162, %c0_163] : memref<2x5x128x128xbf16, #tpu.memory_space<vmem>>, vector<1x1x128x128xbf16>
    %128 = vector.shape_cast %127 : vector<1x1x128x128xbf16> to vector<128x128xbf16>
    %cst_164 = arith.constant dense<0.000000e+00> : vector<192x128xf32>
    %129 = tpu.matmul %126, %128, %cst_164 {dimension_numbers = #tpu.dot_dimension_numbers<[1], [0], [0], [1], [0, 0, 1, 1], [], []>} : vector<192x128xbf16>, vector<128x128xbf16>, vector<192x128xf32> -> vector<192x128xf32>
    %130 = arith.addf %123, %129 : vector<192x128xf32>
    %c1_165 = arith.constant 1 : index
    %c2_166 = arith.constant 2 : index
    %c0_167 = arith.constant 0 : index
    %c0_168 = arith.constant 0 : index
    %131 = vector.load %arg1[%c1_165, %c2_166, %c0_167, %c0_168] : memref<2x14x16x128xbf16, #tpu.memory_space<vmem>>, vector<1x12x16x128xbf16>
    %132 = vector.shape_cast %131 : vector<1x12x16x128xbf16> to vector<12x16x128xbf16>
    %133 = vector.shape_cast %132 : vector<12x16x128xbf16> to vector<192x128xbf16>
    %c1_169 = arith.constant 1 : index
    %c4_170 = arith.constant 4 : index
    %c0_171 = arith.constant 0 : index
    %c0_172 = arith.constant 0 : index
    %134 = vector.load %arg2[%c1_169, %c4_170, %c0_171, %c0_172] : memref<2x5x128x128xbf16, #tpu.memory_space<vmem>>, vector<1x1x128x128xbf16>
    %135 = vector.shape_cast %134 : vector<1x1x128x128xbf16> to vector<128x128xbf16>
    %cst_173 = arith.constant dense<0.000000e+00> : vector<192x128xf32>
    %136 = tpu.matmul %133, %135, %cst_173 {dimension_numbers = #tpu.dot_dimension_numbers<[1], [0], [0], [1], [0, 0, 1, 1], [], []>} : vector<192x128xbf16>, vector<128x128xbf16>, vector<192x128xf32> -> vector<192x128xf32>
    %137 = arith.addf %130, %136 : vector<192x128xf32>
    %138 = arith.maximumf %103, %137 : vector<192x128xf32>
    %c0_174 = arith.constant 0 : index
    %c0_175 = arith.constant 0 : index
    %139 = vector.load %arg3[%c0_174, %c0_175] : memref<1x128xf32, #tpu.memory_space<vmem>>, vector<1x128xf32>
    %140 = vector.broadcast %139 : vector<1x128xf32> to vector<192x128xf32>
    %141 = arith.addf %138, %140 : vector<192x128xf32>
    %cst_176 = arith.constant 0.000000e+00 : f32
    %142 = vector.broadcast %cst_176 : f32 to vector<192x128xf32>
    %143 = arith.maximumf %141, %142 : vector<192x128xf32>
    %c0_177 = arith.constant 0 : index
    %c0_178 = arith.constant 0 : index
    %144 = vector.load %arg13[%c0_177, %c0_178] : memref<192x128xf32, #tpu.memory_space<vmem>>, vector<192x128xf32>
    tpu.vector_store %arg13[%c0_177, %c0_178], %143 {strides = array<i32>} : memref<192x128xf32, #tpu.memory_space<vmem>>, vector<192x128xf32>,
    %c0_179 = arith.constant 0 : index
    %c0_180 = arith.constant 0 : index
    %145 = vector.load %arg13[%c0_179, %c0_180] : memref<192x128xf32, #tpu.memory_space<vmem>>, vector<128x128xf32>
    %146 = arith.truncf %145 : vector<128x128xf32> to vector<128x128xbf16>
    %c0_181 = arith.constant 0 : index
    %c0_182 = arith.constant 0 : index
    %c0_183 = arith.constant 0 : index
    %147 = vector.load %arg4[%c0_181, %c0_182, %c0_183] : memref<5x128x128xbf16, #tpu.memory_space<vmem>>, vector<1x128x128xbf16>
    %148 = vector.shape_cast %147 : vector<1x128x128xbf16> to vector<128x128xbf16>
    %cst_184 = arith.constant dense<0.000000e+00> : vector<128x128xf32>
    %149 = tpu.matmul %146, %148, %cst_184 {dimension_numbers = #tpu.dot_dimension_numbers<[1], [0], [0], [1], [0, 0, 1, 1], [], []>} : vector<128x128xbf16>, vector<128x128xbf16>, vector<128x128xf32> -> vector<128x128xf32>
    %c16 = arith.constant 16 : index
    %c0_185 = arith.constant 0 : index
    %150 = vector.load %arg13[%c16, %c0_185] : memref<192x128xf32, #tpu.memory_space<vmem>>, vector<128x128xf32>
    %151 = arith.truncf %150 : vector<128x128xf32> to vector<128x128xbf16>
    %c1_186 = arith.constant 1 : index
    %c0_187 = arith.constant 0 : index
    %c0_188 = arith.constant 0 : index
    %152 = vector.load %arg4[%c1_186, %c0_187, %c0_188] : memref<5x128x128xbf16, #tpu.memory_space<vmem>>, vector<1x128x128xbf16>
    %153 = vector.shape_cast %152 : vector<1x128x128xbf16> to vector<128x128xbf16>
    %cst_189 = arith.constant dense<0.000000e+00> : vector<128x128xf32>
    %154 = tpu.matmul %151, %153, %cst_189 {dimension_numbers = #tpu.dot_dimension_numbers<[1], [0], [0], [1], [0, 0, 1, 1], [], []>} : vector<128x128xbf16>, vector<128x128xbf16>, vector<128x128xf32> -> vector<128x128xf32>
    %155 = arith.addf %149, %154 : vector<128x128xf32>
    %c32 = arith.constant 32 : index
    %c0_190 = arith.constant 0 : index
    %156 = vector.load %arg13[%c32, %c0_190] : memref<192x128xf32, #tpu.memory_space<vmem>>, vector<128x128xf32>
    %157 = arith.truncf %156 : vector<128x128xf32> to vector<128x128xbf16>
    %c2_191 = arith.constant 2 : index
    %c0_192 = arith.constant 0 : index
    %c0_193 = arith.constant 0 : index
    %158 = vector.load %arg4[%c2_191, %c0_192, %c0_193] : memref<5x128x128xbf16, #tpu.memory_space<vmem>>, vector<1x128x128xbf16>
    %159 = vector.shape_cast %158 : vector<1x128x128xbf16> to vector<128x128xbf16>
    %cst_194 = arith.constant dense<0.000000e+00> : vector<128x128xf32>
    %160 = tpu.matmul %157, %159, %cst_194 {dimension_numbers = #tpu.dot_dimension_numbers<[1], [0], [0], [1], [0, 0, 1, 1], [], []>} : vector<128x128xbf16>, vector<128x128xbf16>, vector<128x128xf32> -> vector<128x128xf32>
    %161 = arith.addf %155, %160 : vector<128x128xf32>
    %c48 = arith.constant 48 : index
    %c0_195 = arith.constant 0 : index
    %162 = vector.load %arg13[%c48, %c0_195] : memref<192x128xf32, #tpu.memory_space<vmem>>, vector<128x128xf32>
    %163 = arith.truncf %162 : vector<128x128xf32> to vector<128x128xbf16>
    %c3_196 = arith.constant 3 : index
    %c0_197 = arith.constant 0 : index
    %c0_198 = arith.constant 0 : index
    %164 = vector.load %arg4[%c3_196, %c0_197, %c0_198] : memref<5x128x128xbf16, #tpu.memory_space<vmem>>, vector<1x128x128xbf16>
    %165 = vector.shape_cast %164 : vector<1x128x128xbf16> to vector<128x128xbf16>
    %cst_199 = arith.constant dense<0.000000e+00> : vector<128x128xf32>
    %166 = tpu.matmul %163, %165, %cst_199 {dimension_numbers = #tpu.dot_dimension_numbers<[1], [0], [0], [1], [0, 0, 1, 1], [], []>} : vector<128x128xbf16>, vector<128x128xbf16>, vector<128x128xf32> -> vector<128x128xf32>
    %167 = arith.addf %161, %166 : vector<128x128xf32>
    %c64 = arith.constant 64 : index
    %c0_200 = arith.constant 0 : index
    %168 = vector.load %arg13[%c64, %c0_200] : memref<192x128xf32, #tpu.memory_space<vmem>>, vector<128x128xf32>
    %169 = arith.truncf %168 : vector<128x128xf32> to vector<128x128xbf16>
    %c4_201 = arith.constant 4 : index
    %c0_202 = arith.constant 0 : index
    %c0_203 = arith.constant 0 : index
    %170 = vector.load %arg4[%c4_201, %c0_202, %c0_203] : memref<5x128x128xbf16, #tpu.memory_space<vmem>>, vector<1x128x128xbf16>
    %171 = vector.shape_cast %170 : vector<1x128x128xbf16> to vector<128x128xbf16>
    %cst_204 = arith.constant dense<0.000000e+00> : vector<128x128xf32>
    %172 = tpu.matmul %169, %171, %cst_204 {dimension_numbers = #tpu.dot_dimension_numbers<[1], [0], [0], [1], [0, 0, 1, 1], [], []>} : vector<128x128xbf16>, vector<128x128xbf16>, vector<128x128xf32> -> vector<128x128xf32>
    %173 = arith.addf %167, %172 : vector<128x128xf32>
    %c0_205 = arith.constant 0 : index
    %c0_206 = arith.constant 0 : index
    %174 = vector.load %arg5[%c0_205, %c0_206] : memref<1x128xf32, #tpu.memory_space<vmem>>, vector<1x128xf32>
    %175 = vector.broadcast %174 : vector<1x128xf32> to vector<128x128xf32>
    %176 = arith.addf %173, %175 : vector<128x128xf32>
    %cst_207 = arith.constant 0.000000e+00 : f32
    %177 = vector.broadcast %cst_207 : f32 to vector<128x128xf32>
    %178 = arith.maximumf %176, %177 : vector<128x128xf32>
    %179 = vector.extract_strided_slice %178 {offsets = [0, 0], sizes = [16, 128], strides = [1, 1]} : vector<128x128xf32> to vector<16x128xf32>
    %180 = arith.truncf %179 : vector<16x128xf32> to vector<16x128xbf16>
    %c0_208 = arith.constant 0 : index
    %c0_209 = arith.constant 0 : index
    %c0_210 = arith.constant 0 : index
    %181 = vector.load %arg6[%c0_208, %c0_209, %c0_210] : memref<8x128x128xbf16, #tpu.memory_space<vmem>>, vector<1x128x128xbf16>
    %182 = vector.shape_cast %181 : vector<1x128x128xbf16> to vector<128x128xbf16>
    %cst_211 = arith.constant dense<0.000000e+00> : vector<16x128xf32>
    %183 = tpu.matmul %180, %182, %cst_211 {dimension_numbers = #tpu.dot_dimension_numbers<[1], [0], [0], [1], [0, 0, 1, 1], [], []>} : vector<16x128xbf16>, vector<128x128xbf16>, vector<16x128xf32> -> vector<16x128xf32>
    %184 = vector.extract_strided_slice %178 {offsets = [16, 0], sizes = [16, 128], strides = [1, 1]} : vector<128x128xf32> to vector<16x128xf32>
    %185 = arith.truncf %184 : vector<16x128xf32> to vector<16x128xbf16>
    %c1_212 = arith.constant 1 : index
    %c0_213 = arith.constant 0 : index
    %c0_214 = arith.constant 0 : index
    %186 = vector.load %arg6[%c1_212, %c0_213, %c0_214] : memref<8x128x128xbf16, #tpu.memory_space<vmem>>, vector<1x128x128xbf16>
    %187 = vector.shape_cast %186 : vector<1x128x128xbf16> to vector<128x128xbf16>
    %cst_215 = arith.constant dense<0.000000e+00> : vector<16x128xf32>
    %188 = tpu.matmul %185, %187, %cst_215 {dimension_numbers = #tpu.dot_dimension_numbers<[1], [0], [0], [1], [0, 0, 1, 1], [], []>} : vector<16x128xbf16>, vector<128x128xbf16>, vector<16x128xf32> -> vector<16x128xf32>
    %189 = arith.addf %183, %188 : vector<16x128xf32>
    %190 = vector.extract_strided_slice %178 {offsets = [32, 0], sizes = [16, 128], strides = [1, 1]} : vector<128x128xf32> to vector<16x128xf32>
    %191 = arith.truncf %190 : vector<16x128xf32> to vector<16x128xbf16>
    %c2_216 = arith.constant 2 : index
    %c0_217 = arith.constant 0 : index
    %c0_218 = arith.constant 0 : index
    %192 = vector.load %arg6[%c2_216, %c0_217, %c0_218] : memref<8x128x128xbf16, #tpu.memory_space<vmem>>, vector<1x128x128xbf16>
    %193 = vector.shape_cast %192 : vector<1x128x128xbf16> to vector<128x128xbf16>
    %cst_219 = arith.constant dense<0.000000e+00> : vector<16x128xf32>
    %194 = tpu.matmul %191, %193, %cst_219 {dimension_numbers = #tpu.dot_dimension_numbers<[1], [0], [0], [1], [0, 0, 1, 1], [], []>} : vector<16x128xbf16>, vector<128x128xbf16>, vector<16x128xf32> -> vector<16x128xf32>
    %195 = arith.addf %189, %194 : vector<16x128xf32>
    %196 = vector.extract_strided_slice %178 {offsets = [48, 0], sizes = [16, 128], strides = [1, 1]} : vector<128x128xf32> to vector<16x128xf32>
    %197 = arith.truncf %196 : vector<16x128xf32> to vector<16x128xbf16>
    %c3_220 = arith.constant 3 : index
    %c0_221 = arith.constant 0 : index
    %c0_222 = arith.constant 0 : index
    %198 = vector.load %arg6[%c3_220, %c0_221, %c0_222] : memref<8x128x128xbf16, #tpu.memory_space<vmem>>, vector<1x128x128xbf16>
    %199 = vector.shape_cast %198 : vector<1x128x128xbf16> to vector<128x128xbf16>
    %cst_223 = arith.constant dense<0.000000e+00> : vector<16x128xf32>
    %200 = tpu.matmul %197, %199, %cst_223 {dimension_numbers = #tpu.dot_dimension_numbers<[1], [0], [0], [1], [0, 0, 1, 1], [], []>} : vector<16x128xbf16>, vector<128x128xbf16>, vector<16x128xf32> -> vector<16x128xf32>
    %201 = arith.addf %195, %200 : vector<16x128xf32>
    %202 = vector.extract_strided_slice %178 {offsets = [64, 0], sizes = [16, 128], strides = [1, 1]} : vector<128x128xf32> to vector<16x128xf32>
    %203 = arith.truncf %202 : vector<16x128xf32> to vector<16x128xbf16>
    %c4_224 = arith.constant 4 : index
    %c0_225 = arith.constant 0 : index
    %c0_226 = arith.constant 0 : index
    %204 = vector.load %arg6[%c4_224, %c0_225, %c0_226] : memref<8x128x128xbf16, #tpu.memory_space<vmem>>, vector<1x128x128xbf16>
    %205 = vector.shape_cast %204 : vector<1x128x128xbf16> to vector<128x128xbf16>
    %cst_227 = arith.constant dense<0.000000e+00> : vector<16x128xf32>
    %206 = tpu.matmul %203, %205, %cst_227 {dimension_numbers = #tpu.dot_dimension_numbers<[1], [0], [0], [1], [0, 0, 1, 1], [], []>} : vector<16x128xbf16>, vector<128x128xbf16>, vector<16x128xf32> -> vector<16x128xf32>
    %207 = arith.addf %201, %206 : vector<16x128xf32>
    %208 = vector.extract_strided_slice %178 {offsets = [80, 0], sizes = [16, 128], strides = [1, 1]} : vector<128x128xf32> to vector<16x128xf32>
    %209 = arith.truncf %208 : vector<16x128xf32> to vector<16x128xbf16>
    %c5 = arith.constant 5 : index
    %c0_228 = arith.constant 0 : index
    %c0_229 = arith.constant 0 : index
    %210 = vector.load %arg6[%c5, %c0_228, %c0_229] : memref<8x128x128xbf16, #tpu.memory_space<vmem>>, vector<1x128x128xbf16>
    %211 = vector.shape_cast %210 : vector<1x128x128xbf16> to vector<128x128xbf16>
    %cst_230 = arith.constant dense<0.000000e+00> : vector<16x128xf32>
    %212 = tpu.matmul %209, %211, %cst_230 {dimension_numbers = #tpu.dot_dimension_numbers<[1], [0], [0], [1], [0, 0, 1, 1], [], []>} : vector<16x128xbf16>, vector<128x128xbf16>, vector<16x128xf32> -> vector<16x128xf32>
    %213 = arith.addf %207, %212 : vector<16x128xf32>
    %214 = vector.extract_strided_slice %178 {offsets = [96, 0], sizes = [16, 128], strides = [1, 1]} : vector<128x128xf32> to vector<16x128xf32>
    %215 = arith.truncf %214 : vector<16x128xf32> to vector<16x128xbf16>
    %c6 = arith.constant 6 : index
    %c0_231 = arith.constant 0 : index
    %c0_232 = arith.constant 0 : index
    %216 = vector.load %arg6[%c6, %c0_231, %c0_232] : memref<8x128x128xbf16, #tpu.memory_space<vmem>>, vector<1x128x128xbf16>
    %217 = vector.shape_cast %216 : vector<1x128x128xbf16> to vector<128x128xbf16>
    %cst_233 = arith.constant dense<0.000000e+00> : vector<16x128xf32>
    %218 = tpu.matmul %215, %217, %cst_233 {dimension_numbers = #tpu.dot_dimension_numbers<[1], [0], [0], [1], [0, 0, 1, 1], [], []>} : vector<16x128xbf16>, vector<128x128xbf16>, vector<16x128xf32> -> vector<16x128xf32>
    %219 = arith.addf %213, %218 : vector<16x128xf32>
    %220 = vector.extract_strided_slice %178 {offsets = [112, 0], sizes = [16, 128], strides = [1, 1]} : vector<128x128xf32> to vector<16x128xf32>
    %221 = arith.truncf %220 : vector<16x128xf32> to vector<16x128xbf16>
    %c7 = arith.constant 7 : index
    %c0_234 = arith.constant 0 : index
    %c0_235 = arith.constant 0 : index
    %222 = vector.load %arg6[%c7, %c0_234, %c0_235] : memref<8x128x128xbf16, #tpu.memory_space<vmem>>, vector<1x128x128xbf16>
    %223 = vector.shape_cast %222 : vector<1x128x128xbf16> to vector<128x128xbf16>
    %cst_236 = arith.constant dense<0.000000e+00> : vector<16x128xf32>
    %224 = tpu.matmul %221, %223, %cst_236 {dimension_numbers = #tpu.dot_dimension_numbers<[1], [0], [0], [1], [0, 0, 1, 1], [], []>} : vector<16x128xbf16>, vector<128x128xbf16>, vector<16x128xf32> -> vector<16x128xf32>
    %225 = arith.addf %219, %224 : vector<16x128xf32>
    %c0_237 = arith.constant 0 : index
    %c0_238 = arith.constant 0 : index
    %226 = vector.load %arg7[%c0_237, %c0_238] : memref<1x128xf32, #tpu.memory_space<vmem>>, vector<1x128xf32>
    %227 = vector.broadcast %226 : vector<1x128xf32> to vector<16x128xf32>
    %228 = arith.addf %225, %227 : vector<16x128xf32>
    %cst_239 = arith.constant 0.000000e+00 : f32
    %229 = vector.broadcast %cst_239 : f32 to vector<16x128xf32>
    %230 = arith.maximumf %228, %229 : vector<16x128xf32>
    %231 = arith.truncf %230 : vector<16x128xf32> to vector<16x128xbf16>
    %c0_240 = arith.constant 0 : index
    %c0_241 = arith.constant 0 : index
    %232 = vector.load %arg8[%c0_240, %c0_241] : memref<128x128xbf16, #tpu.memory_space<vmem>>, vector<128x128xbf16>
    %cst_242 = arith.constant dense<0.000000e+00> : vector<16x128xf32>
    %233 = tpu.matmul %231, %232, %cst_242 {dimension_numbers = #tpu.dot_dimension_numbers<[1], [0], [0], [1], [0, 0, 1, 1], [], []>} : vector<16x128xbf16>, vector<128x128xbf16>, vector<16x128xf32> -> vector<16x128xf32>
    %c0_243 = arith.constant 0 : index
    %c0_244 = arith.constant 0 : index
    %234 = vector.load %arg9[%c0_243, %c0_244] : memref<1x128xf32, #tpu.memory_space<vmem>>, vector<1x128xf32>
    %235 = vector.broadcast %234 : vector<1x128xf32> to vector<16x128xf32>
    %236 = arith.addf %233, %235 : vector<16x128xf32>
    %cst_245 = arith.constant 0.000000e+00 : f32
    %237 = vector.broadcast %cst_245 : f32 to vector<16x128xf32>
    %238 = arith.maximumf %236, %237 : vector<16x128xf32>
    %239 = arith.truncf %238 : vector<16x128xf32> to vector<16x128xbf16>
    %c0_246 = arith.constant 0 : index
    %c0_247 = arith.constant 0 : index
    %240 = vector.load %arg10[%c0_246, %c0_247] : memref<128x128xbf16, #tpu.memory_space<vmem>>, vector<128x128xbf16>
    %cst_248 = arith.constant dense<0.000000e+00> : vector<16x128xf32>
    %241 = tpu.matmul %239, %240, %cst_248 {dimension_numbers = #tpu.dot_dimension_numbers<[1], [0], [0], [1], [0, 0, 1, 1], [], []>} : vector<16x128xbf16>, vector<128x128xbf16>, vector<16x128xf32> -> vector<16x128xf32>
    %c0_249 = arith.constant 0 : index
    %c0_250 = arith.constant 0 : index
    %242 = vector.load %arg11[%c0_249, %c0_250] : memref<1x128xf32, #tpu.memory_space<vmem>>, vector<1x128xf32>
    %243 = vector.broadcast %242 : vector<1x128xf32> to vector<16x128xf32>
    %244 = arith.addf %241, %243 : vector<16x128xf32>
    %c0_251 = arith.constant 0 : index
    %c0_252 = arith.constant 0 : index
    %245 = vector.load %arg12[%c0_251, %c0_252] : memref<16x128xf32, #tpu.memory_space<vmem>>, vector<16x128xf32>
    tpu.vector_store %arg12[%c0_251, %c0_252], %244 {strides = array<i32>} : memref<16x128xf32, #tpu.memory_space<vmem>>, vector<16x128xf32>,
    return
  }
  func.func @transform_0(%arg0: i32) -> (i32, i32, i32, i32) {
    %c0_i32 = arith.constant 0 : i32
    %c0_i32_0 = arith.constant 0 : i32
    %c0_i32_1 = arith.constant 0 : i32
    %c0_i32_2 = arith.constant 0 : i32
    return %c0_i32, %c0_i32_0, %arg0, %c0_i32_1 : i32, i32, i32, i32
  }
  func.func @transform_1(%arg0: i32) -> (i32, i32, i32, i32) {
    %c0_i32 = arith.constant 0 : i32
    %c0_i32_0 = arith.constant 0 : i32
    %c0_i32_1 = arith.constant 0 : i32
    %c0_i32_2 = arith.constant 0 : i32
    %c0_i32_3 = arith.constant 0 : i32
    return %c0_i32, %c0_i32_0, %c0_i32_1, %c0_i32_2 : i32, i32, i32, i32
  }
  func.func @transform_2(%arg0: i32) -> (i32, i32) {
    %c0_i32 = arith.constant 0 : i32
    %c0_i32_0 = arith.constant 0 : i32
    %c0_i32_1 = arith.constant 0 : i32
    return %c0_i32, %c0_i32_0 : i32, i32
  }
  func.func @transform_3(%arg0: i32) -> (i32, i32, i32) {
    %c0_i32 = arith.constant 0 : i32
    %c0_i32_0 = arith.constant 0 : i32
    %c0_i32_1 = arith.constant 0 : i32
    %c0_i32_2 = arith.constant 0 : i32
    return %c0_i32, %c0_i32_0, %c0_i32_1 : i32, i32, i32
  }
  func.func @transform_4(%arg0: i32) -> (i32, i32) {
    %c0_i32 = arith.constant 0 : i32
    %c0_i32_0 = arith.constant 0 : i32
    %c0_i32_1 = arith.constant 0 : i32
    return %c0_i32, %c0_i32_0 : i32, i32
  }
  func.func @transform_5(%arg0: i32) -> (i32, i32, i32) {
    %c0_i32 = arith.constant 0 : i32
    %c0_i32_0 = arith.constant 0 : i32
    %c0_i32_1 = arith.constant 0 : i32
    %c0_i32_2 = arith.constant 0 : i32
    return %c0_i32, %c0_i32_0, %c0_i32_1 : i32, i32, i32
  }
  func.func @transform_6(%arg0: i32) -> (i32, i32) {
    %c0_i32 = arith.constant 0 : i32
    %c0_i32_0 = arith.constant 0 : i32
    %c0_i32_1 = arith.constant 0 : i32
    return %c0_i32, %c0_i32_0 : i32, i32
  }
  func.func @transform_7(%arg0: i32) -> (i32, i32) {
    %c0_i32 = arith.constant 0 : i32
    %c0_i32_0 = arith.constant 0 : i32
    %c0_i32_1 = arith.constant 0 : i32
    return %c0_i32, %c0_i32_0 : i32, i32
  }
  func.func @transform_8(%arg0: i32) -> (i32, i32) {
    %c0_i32 = arith.constant 0 : i32
    %c0_i32_0 = arith.constant 0 : i32
    %c0_i32_1 = arith.constant 0 : i32
    return %c0_i32, %c0_i32_0 : i32, i32
  }
  func.func @transform_9(%arg0: i32) -> (i32, i32) {
    %c0_i32 = arith.constant 0 : i32
    %c0_i32_0 = arith.constant 0 : i32
    %c0_i32_1 = arith.constant 0 : i32
    return %c0_i32, %c0_i32_0 : i32, i32
  }
  func.func @transform_10(%arg0: i32) -> (i32, i32) {
    %c0_i32 = arith.constant 0 : i32
    %c0_i32_0 = arith.constant 0 : i32
    %c0_i32_1 = arith.constant 0 : i32
    return %c0_i32, %c0_i32_0 : i32, i32
  }
  func.func @transform_11(%arg0: i32) -> (i32, i32) {
    %c0_i32 = arith.constant 0 : i32
    %c0_i32_0 = arith.constant 0 : i32
    return %arg0, %c0_i32 : i32, i32
  }
}

</mosaic_0001>

<bundles_post_ra>
// kernel: lenet5_forward.1
= control target key start
LH: loop header
LB: loop body
LE: loop exit
PB: predicated region body
PF: predicated region fallthrough
CT: control target
= control target key end

     0   :  { %16 = vsyncpa [#allocation4], 0  ;;  %s11811_s0 = inlined_call_operand.vmem [shape: bf16[2,14,16,128], index: 0, kind: input, shape index: {}]   ;;  %s11812_s1 = inlined_call_operand.vmem [shape: bf16[2,5,128,128], index: 1, kind: input, shape index: {}]   ;;  %s11813_s2 = inlined_call_operand.vmem [shape: f32[1,128], index: 2, kind: input, shape index: {}]   ;;  %s11814_s3 = inlined_call_operand.hbm [shape: bf16[5,128,128], index: 3, kind: input, shape index: {}]   ;;  %s11815_s4 = inlined_call_operand.vmem [shape: f32[1,128], index: 4, kind: input, shape index: {}]   ;;  %s11816_s5 = inlined_call_operand.hbm [shape: bf16[8,128,128], index: 5, kind: input, shape index: {}]   ;;  %s11817_s6 = inlined_call_operand.vmem [shape: f32[1,128], index: 6, kind: input, shape index: {}]   ;;  %s11818_s7 = inlined_call_operand.vmem [shape: bf16[128,128], index: 7, kind: input, shape index: {}]   ;;  %s11819_s8 = inlined_call_operand.vmem [shape: f32[1,128], index: 8, kind: input, shape index: {}]   ;;  %s11820_s9 = inlined_call_operand.vmem [shape: bf16[128,128], index: 9, kind: input, shape index: {}]   ;;  %s11821_s10 = inlined_call_operand.vmem [shape: f32[1,128], index: 10, kind: input, shape index: {}]   ;;  %s11822_s11 = inlined_call_operand.vmem [shape: f32[16,128], index: 11, kind: output, shape index: {}]  }
   0x1   :  { %17 = vsyncpa [#allocation6], 0  ;;  %s9170_s17 = smov [#allocation3]  }
   0x2   :  { %s29_s18 = sshll.u32 %s9170_s17, 4  ;;  %s30_s18 = int_to_ptr.vmem [resolvable:$true] %s29_s18 }
   0x3   :  { %s9134_s19 = scalar_lea.vmem %s30_s18, 5120  ;;  %p9139_p1 = scmp.lt.s32.totalorder %s30_s18, %s30_s18 }
   0x4   :  { %p9135_p0 = scmp.ne.s32.totalorder %s30_s18, %s9134_s19  ;;  %p9140_p2 = scmp.lt.s32.totalorder %s9134_s19, %s9134_s19 }
   0x6   :  { %p9141_p3 = por %p9140_p2, %p9139_p1 }
   0x8   :  { %p9142_p4 = pnand %p9141_p3, %p9135_p0 }
   0xa   :  { %9145 = shalt.err (!%p9142_p4)
}
   0xb   :  { %s9171_s20 = smov 64   ;;  %s9172_s21 = smov 4  }
   0xc   :  { %35 = dma.hbm_to_vmem [thread:$0]  %s11814_s3, 5120, %s30_s18, [#allocation4], %s9171_s20, %s9171_s20, %s9172_s21  }
   0xd   :  { %s9173_s24 = smov [#allocation5]  }
   0xe   :  { %s43_s25 = sshll.u32 %s9173_s24, 4  ;;  %s44_s25 = int_to_ptr.vmem [resolvable:$true] %s43_s25 }
   0xf   :  { %s9154_s26 = scalar_lea.vmem %s44_s25, 8192  ;;  %p9159_p6 = scmp.lt.s32.totalorder %s44_s25, %s44_s25 }
  0x10   :  { %p9155_p5 = scmp.ne.s32.totalorder %s44_s25, %s9154_s26  ;;  %p9160_p7 = scmp.lt.s32.totalorder %s9154_s26, %s9154_s26 }
  0x12   :  { %p9161_p8 = por %p9160_p7, %p9159_p6 }
  0x14   :  { %p9162_p9 = pnand %p9161_p8, %p9155_p5 }
  0x16   :  { %9165 = shalt.err (!%p9162_p9)
}
  0x17   :  { %49 = dma.hbm_to_vmem [thread:$0]  %s11816_s5, 8192, %s44_s25, [#allocation6], %s9171_s20, %s9171_s20, %s9172_s21  }
  0x18   :  { %9166 = dma.done.wait [#allocation4], 5120  }
  0x19   :  { %9167 = vsyncadd [#allocation4], 4294962176 }
  0x1a   :  { %9168 = dma.done.wait [#allocation6], 8192  }
  0x1b   :  { %9169 = vsyncadd [#allocation6], 4294959104  ;;  %v8702_v0 = vld [vmem:[%s11812_s1 + $0x78] sm:$0xff]   ;;  %v8704_v2 = vld [vmem:[%s11812_s1 + $0x70] sm:$0xff]   ;;  %vm9175_vm0 = vmmov 0  }
  0x1c   :  { %v8703_v1 = vld [vmem:[%s11812_s1 + $0x38] sm:$0xff]   ;;  %7536 = vmatprep.subr.bf16.mxu0 %v8702_v0  ;;  %v8705_v3 = vld [vmem:[%s11812_s1 + $0x30] sm:$0xff]   ;;  %v8706_v4 = vld [vmem:[%s11812_s1 + $0x68] sm:$0xff]  }
  0x1d   :  { %7576 = vmatprep.subr.bf16.mxu1 %v8703_v1  ;;  %7537 = vmatpush3.bf16.msra.mxu0 %v8702_v0  ;;  %v8707_v5 = vld [vmem:[%s11812_s1 + $0x28] sm:$0xff]   ;;  %v8708_v6 = vld [vmem:[%s11812_s1 + $0x60] sm:$0xff]   ;;  %v8710_v8 = vld [vmem:[%s11812_s1 + $0x58] sm:$0xff]  }
  0x1e   :  { %7577 = vmatpush3.bf16.msra.mxu1 %v8703_v1  ;;  %7538 = vmatprep.subr.bf16.mxu0 %v8704_v2  ;;  %v8709_v7 = vld [vmem:[%s11812_s1 + $0x20] sm:$0xff]   ;;  %v8711_v9 = vld [vmem:[%s11812_s1 + $0x18] sm:$0xff]   ;;  %v8712_v10 = vld [vmem:[%s11812_s1 + $0x50] sm:$0xff]  }
  0x1f   :  { %7578 = vmatprep.subr.bf16.mxu1 %v8705_v3  ;;  %v8713_v11 = vld [vmem:[%s11812_s1 + $0x10] sm:$0xff]   ;;  %v8719_v13 = vld [vmem:[%s11811_s0] sm:$0xff]   ;;  %v8714_v14 = vld [vmem:[%s11812_s1 + $0x48] sm:$0xff]  }
  0x20   :  { %v9281_v12 = vld [vmem:[%s11811_s0 + $0x70] sm:$0xff]   ;;  %7592 = vmatprep.mubr.bf16.mxu1 %v8719_v13  ;;  %v8715_v15 = vld [vmem:[%s11812_s1 + $0x8] sm:$0xff]   ;;  %v8716_v16 = vld [vmem:[%s11812_s1 + $0x40] sm:$0xff]  }
  0x21   :  { %7539 = vmatpush3.bf16.msra.mxu0 %v8704_v2  ;;  %7552 = vmatprep.mubr.bf16.mxu0 %v9281_v12  ;;  %v8717_v17 = vld [vmem:[%s11812_s1] sm:$0xff]   ;;  %v9302_v18 = vld [vmem:[%s11811_s0 + $0x78] sm:$0xff]   ;;  %v8721_v21 = vld [vmem:[%s11811_s0 + $0x8] sm:$0xff]  }
  0x22   :  { %7579 = vmatpush3.bf16.msra.mxu1 %v8705_v3  ;;  %7540 = vmatprep.subr.bf16.mxu0 %v8706_v4  ;;  %v8722_v19 = vld [vmem:[%s11812_s1 + $0xb8] sm:$0xff]   ;;  %v8724_v22 = vld [vmem:[%s11812_s1 + $0xb0] sm:$0xff]   ;;  %v9319_v23 = vld [vmem:[%s11811_s0 + $0x80] sm:$0xff]  }
  0x23   :  { %7580 = vmatprep.subr.bf16.mxu1 %v8707_v5  ;;  %v8723_v20 = vld [vmem:[%s11812_s1 + $0xf8] sm:$0xff]   ;;  %v8726_v24 = vld [vmem:[%s11811_s0 + $0x10] sm:$0xff]   ;;  %v9331_v26 = vld [vmem:[%s11811_s0 + $0x88] sm:$0xff]  }
  0x24   :  { %v8729_v25 = vld [vmem:[%s11812_s1 + $0xf0] sm:$0xff]   ;;  %v8730_v27 = vld [vmem:[%s11812_s1 + $0xa8] sm:$0xff]   ;;  %v8728_v29 = vld [vmem:[%s11811_s0 + $0x18] sm:$0xff]  }
  0x25   :  { %7541 = vmatpush3.bf16.msra.mxu0 %v8706_v4  ;;  %v8731_v28 = vld [vmem:[%s11812_s1 + $0xe8] sm:$0xff]   ;;  %v9346_v30 = vld [vmem:[%s11811_s0 + $0x90] sm:$0xff]   ;;  %v8733_v31 = vld [vmem:[%s11811_s0 + $0x20] sm:$0xff]  }
  0x26   :  { %7581 = vmatpush3.bf16.msra.mxu1 %v8707_v5  ;;  %7542 = vmatprep.subr.bf16.mxu0 %v8708_v6  ;;  %v8736_v32 = vld [vmem:[%s11812_s1 + $0xa0] sm:$0xff]   ;;  %v9362_v34 = vld [vmem:[%s11811_s0 + $0x98] sm:$0xff]   ;;  %v8735_v36 = vld [vmem:[%s11811_s0 + $0x28] sm:$0xff]  }
  0x27   :  { %7582 = vmatprep.subr.bf16.mxu1 %v8709_v7  ;;  %v8737_v33 = vld [vmem:[%s11812_s1 + $0xe0] sm:$0xff]   ;;  %v8742_v35 = vld [vmem:[%s11812_s1 + $0x98] sm:$0xff]   ;;  %v8739_v39 = vld [vmem:[%s11811_s0 + $0x30] sm:$0xff]  }
  0x28   :  { %v8743_v37 = vld [vmem:[%s11812_s1 + $0xd8] sm:$0xff]   ;;  %v9376_v38 = vld [vmem:[%s11811_s0 + $0xa0] sm:$0xff]   ;;  %v8744_v40 = vld [vmem:[%s11812_s1 + $0x90] sm:$0xff]  }
  0x29   :  { %7543 = vmatpush3.bf16.msra.mxu0 %v8708_v6  ;;  %v8749_v41 = vld [vmem:[%s11812_s1 + $0xd0] sm:$0xff]   ;;  %v9392_v42 = vld [vmem:[%s11811_s0 + $0xa8] sm:$0xff]   ;;  %v8741_v43 = vld [vmem:[%s11811_s0 + $0x38] sm:$0xff]  }
  0x2a   :  { %7583 = vmatpush3.bf16.msra.mxu1 %v8709_v7  ;;  %7544 = vmatprep.subr.bf16.mxu0 %v8710_v8  ;;  %v8750_v44 = vld [vmem:[%s11812_s1 + $0x88] sm:$0xff]   ;;  %v9406_v46 = vld [vmem:[%s11811_s0 + $0xb0] sm:$0xff]   ;;  %v8746_v47 = vld [vmem:[%s11811_s0 + $0x40] sm:$0xff]  }
  0x2b   :  { %7584 = vmatprep.subr.bf16.mxu1 %v8711_v9  ;;  %v8751_v45 = vld [vmem:[%s11812_s1 + $0xc8] sm:$0xff]   ;;  %v8756_v48 = vld [vmem:[%s11812_s1 + $0x80] sm:$0xff]   ;;  %v9422_v50 = vld [vmem:[%s11811_s0 + $0xb8] sm:$0xff]  }
  0x2c   :  { %v8757_v49 = vld [vmem:[%s11812_s1 + $0xc0] sm:$0xff]   ;;  %v8748_v51 = vld [vmem:[%s11811_s0 + $0x48] sm:$0xff]   ;;  %v8762_v52 = vld [vmem:[%s11812_s1 + $0x138] sm:$0xff]  }
  0x2d   :  { %7545 = vmatpush3.bf16.msra.mxu0 %v8710_v8  ;;  %v8763_v53 = vld [vmem:[%s11812_s1 + $0x1b8] sm:$0xff]   ;;  %v9436_v54 = vld [vmem:[%s11811_s0 + $0xc0] sm:$0xff]   ;;  %v8753_v55 = vld [vmem:[%s11811_s0 + $0x50] sm:$0xff]  }
  0x2e   :  { %7585 = vmatpush3.bf16.msra.mxu1 %v8711_v9  ;;  %7546 = vmatprep.subr.bf16.mxu0 %v8712_v10  ;;  %v9446_v56 = vld [vmem:[%s11811_s0 + $0xc8] sm:$0xff]   ;;  %v8755_v57 = vld [vmem:[%s11811_s0 + $0x58] sm:$0xff]   ;;  %v9464_v60 = vld [vmem:[%s11811_s0 + $0x10] sm:$0xff]  }
  0x2f   :  { %7586 = vmatprep.subr.bf16.mxu1 %v8713_v11  ;;  %v9454_v58 = vld [vmem:[%s11811_s0 + $0x8] sm:$0xff]   ;;  %v8759_v59 = vld [vmem:[%s11811_s0 + $0x78] sm:$0xff]   ;;  %v8761_v61 = vld [vmem:[%s11811_s0 + $0x80] sm:$0xff]  }
  0x30   :  { %v8764_v62 = vld [vmem:[%s11812_s1 + $0x130] sm:$0xff]   ;;  %v9475_v63 = vld [vmem:[%s11811_s0 + $0x18] sm:$0xff]   ;;  %v8766_v0 = vld [vmem:[%s11811_s0 + $0x88] sm:$0xff]  }
  0x31   :  { %7547 = vmatpush3.bf16.msra.mxu0 %v8712_v10  ;;  %v8769_v1 = vld [vmem:[%s11812_s1 + $0x1b0] sm:$0xff]   ;;  %v9487_v2 = vld [vmem:[%s11811_s0 + $0x20] sm:$0xff]   ;;  %v8770_v3 = vld [vmem:[%s11812_s1 + $0x128] sm:$0xff]  }
  0x32   :  { %7587 = vmatpush3.bf16.msra.mxu1 %v8713_v11  ;;  %7548 = vmatprep.subr.bf16.mxu0 %v8714_v14  ;;  %v8771_v4 = vld [vmem:[%s11812_s1 + $0x1a8] sm:$0xff]   ;;  %v8768_v5 = vld [vmem:[%s11811_s0 + $0x90] sm:$0xff]   ;;  %v8773_v7 = vld [vmem:[%s11811_s0 + $0x98] sm:$0xff]  }
  0x33   :  { %7588 = vmatprep.subr.bf16.mxu1 %v8715_v15  ;;  %v9502_v6 = vld [vmem:[%s11811_s0 + $0x28] sm:$0xff]   ;;  %v8776_v8 = vld [vmem:[%s11812_s1 + $0x120] sm:$0xff]   ;;  %v9518_v10 = vld [vmem:[%s11811_s0 + $0x30] sm:$0xff]  }
  0x34   :  { %v8777_v9 = vld [vmem:[%s11812_s1 + $0x1a0] sm:$0xff]   ;;  %v8782_v11 = vld [vmem:[%s11812_s1 + $0x118] sm:$0xff]  }
  0x35   :  { %7549 = vmatpush3.bf16.msra.mxu0 %v8714_v14  ;;  %v8775_v13 = vld [vmem:[%s11811_s0 + $0xa0] sm:$0xff]   ;;  %v8783_v14 = vld [vmem:[%s11812_s1 + $0x198] sm:$0xff]  }
  0x36   :  { %7589 = vmatpush3.bf16.msra.mxu1 %v8715_v15  ;;  %7550 = vmatprep.subr.bf16.mxu0 %v8716_v16  ;;  %v9532_v15 = vld [vmem:[%s11811_s0 + $0x38] sm:$0xff]  }
  0x37   :  { %7590 = vmatprep.subr.bf16.mxu1 %v8717_v17 }
  0x39   :  { %7551 = vmatpush3.bf16.msra.mxu0 %v8716_v16  ;;  %v8779_v16 = vld [vmem:[%s11811_s0 + $0xa8] sm:$0xff]  }
  0x3a   :  { %7591 = vmatpush3.bf16.msra.mxu1 %v8717_v17  ;;  %7616 = vmatprep.subr.bf16.mxu0 %v8722_v19  ;;  %v8784_v17 = vld [vmem:[%s11812_s1 + $0x110] sm:$0xff]  }
  0x3b   :  { %7656 = vmatprep.subr.bf16.mxu1 %v8723_v20 }
  0x3c   :  { %7553 = vmatmul.mubr.bf16.vlgmr.msra.gmra.mxu0 %v9302_v18 }
  0x3d   :  { %7593 = vmatmul.mubr.bf16.vlgmr.msra.gmra.mxu1 %v8721_v21  ;;  %7617 = vmatpush3.bf16.msra.mxu0 %v8722_v19  ;;  %v8789_v19 = vld [vmem:[%s11812_s1 + $0x190] sm:$0xff]  }
  0x3e   :  { %7657 = vmatpush3.bf16.msra.mxu1 %v8723_v20  ;;  %7618 = vmatprep.subr.bf16.mxu0 %v8724_v22  ;;  %v9548_v20 = vld [vmem:[%s11811_s0 + $0x40] sm:$0xff]   ;;  %v8781_v21 = vld [vmem:[%s11811_s0 + $0xb0] sm:$0xff]  }
  0x3f   :  { %7556 = vmatprep.mubr.bf16.mxu0 %v9319_v23  ;;  %7596 = vmatprep.mubr.bf16.mxu1 %v8726_v24  ;;  %v8791_v24 = vld [vmem:[%s11812_s1 + $0x188] sm:$0xff]  }
  0x40   :  { %7658 = vmatprep.subr.bf16.mxu1 %v8729_v25 }
  0x41   :  { %7619 = vmatpush3.bf16.msra.mxu0 %v8724_v22  ;;  %v8790_v22 = vld [vmem:[%s11812_s1 + $0x108] sm:$0xff]  }
  0x42   :  { %7659 = vmatpush3.bf16.msra.mxu1 %v8729_v25  ;;  %7620 = vmatprep.subr.bf16.mxu0 %v8730_v27  ;;  %v9562_v25 = vld [vmem:[%s11811_s0 + $0x48] sm:$0xff]  }
  0x43   :  { %7660 = vmatprep.subr.bf16.mxu1 %v8731_v28 }
  0x44   :  { %7557 = vmatmul.mubr.bf16.gmra.mxu0 %v9331_v26 }
  0x45   :  { %7597 = vmatmul.mubr.bf16.gmra.mxu1 %v8728_v29  ;;  %7621 = vmatpush3.bf16.msra.mxu0 %v8730_v27  ;;  %v8786_v27 = vld [vmem:[%s11811_s0 + $0xb8] sm:$0xff]   ;;  %v8797_v29 = vld [vmem:[%s11812_s1 + $0x180] sm:$0xff]  }
  0x46   :  { %7560 = vmatprep.mubr.bf16.mxu0 %v9346_v30  ;;  %7600 = vmatprep.mubr.bf16.mxu1 %v8733_v31  ;;  %v9578_v31 = vld [vmem:[%s11811_s0 + $0x50] sm:$0xff]  }
  0x47   :  { %7661 = vmatpush3.bf16.msra.mxu1 %v8731_v28  ;;  %7622 = vmatprep.subr.bf16.mxu0 %v8736_v32  ;;  %v8796_v28 = vld [vmem:[%s11812_s1 + $0x100] sm:$0xff]  }
  0x48   :  { %7662 = vmatprep.subr.bf16.mxu1 %v8737_v33 }
  0x49   :  { %7623 = vmatpush3.bf16.msra.mxu0 %v8736_v32  ;;  %v8788_v32 = vld [vmem:[%s11811_s0 + $0xc0] sm:$0xff]  }
  0x4a   :  { %7624 = vmatprep.subr.bf16.mxu0 %v8742_v35 }
  0x4b   :  { %7663 = vmatpush3.bf16.msra.mxu1 %v8737_v33  ;;  %v8800_v33 = vld [vmem:[%s11812_s1 + $0x178] sm:$0xff]  }
  0x4c   :  { %7561 = vmatmul.mubr.bf16.gmra.mxu0 %v9362_v34  ;;  %7664 = vmatprep.subr.bf16.mxu1 %v8743_v37 }
  0x4d   :  { %7601 = vmatmul.mubr.bf16.gmra.mxu1 %v8735_v36  ;;  %7564 = vmatprep.mubr.bf16.mxu0 %v9376_v38  ;;  %v9592_v36 = vld [vmem:[%s11811_s0 + $0x58] sm:$0xff]  }
  0x4e   :  { %7604 = vmatprep.mubr.bf16.mxu1 %v8739_v39  ;;  %7625 = vmatpush3.bf16.msra.mxu0 %v8742_v35  ;;  %v8801_v35 = vld [vmem:[%s11812_s1 + $0x1f8] sm:$0xff]   ;;  %v9602_v39 = vld [vmem:[%s11811_s0 + $0x60] sm:$0xff]  }
  0x4f   :  { %7665 = vmatpush3.bf16.msra.mxu1 %v8743_v37  ;;  %7626 = vmatprep.subr.bf16.mxu0 %v8744_v40  ;;  %v8793_v37 = vld [vmem:[%s11811_s0 + $0xc8] sm:$0xff]  }
  0x50   :  { %7666 = vmatprep.subr.bf16.mxu1 %v8749_v41 }
  0x52   :  { %7627 = vmatpush3.bf16.msra.mxu0 %v8744_v40  ;;  %v8795_v40 = vld [vmem:[%s11811_s0 + $0xd0] sm:$0xff]  }
  0x53   :  { %7667 = vmatpush3.bf16.msra.mxu1 %v8749_v41  ;;  %7628 = vmatprep.subr.bf16.mxu0 %v8750_v44  ;;  %v9610_v41 = vld [vmem:[%s11811_s0 + $0x10] sm:$0xff]  }
  0x54   :  { %7565 = vmatmul.mubr.bf16.gmra.mxu0 %v9392_v42  ;;  %7668 = vmatprep.subr.bf16.mxu1 %v8751_v45 }
  0x55   :  { %7605 = vmatmul.mubr.bf16.gmra.mxu1 %v8741_v43  ;;  %7568 = vmatprep.mubr.bf16.mxu0 %v9406_v46  ;;  %v9618_v43 = vld [vmem:[%s11811_s0 + $0x18] sm:$0xff]  }
  0x56   :  { %7608 = vmatprep.mubr.bf16.mxu1 %v8746_v47  ;;  %7629 = vmatpush3.bf16.msra.mxu0 %v8750_v44  ;;  %v8802_v44 = vld [vmem:[%s11812_s1 + $0x170] sm:$0xff]   ;;  %v8806_v47 = vld [vmem:[%s11812_s1 + $0x168] sm:$0xff]  }
  0x57   :  { %7669 = vmatpush3.bf16.msra.mxu1 %v8751_v45  ;;  %7630 = vmatprep.subr.bf16.mxu0 %v8756_v48  ;;  %v9626_v45 = vld [vmem:[%s11811_s0 + $0x20] sm:$0xff]  }
  0x58   :  { %7670 = vmatprep.subr.bf16.mxu1 %v8757_v49 }
  0x5a   :  { %7631 = vmatpush3.bf16.msra.mxu0 %v8756_v48  ;;  %v8807_v48 = vld [vmem:[%s11812_s1 + $0x1e8] sm:$0xff]  }
  0x5b   :  { %7671 = vmatpush3.bf16.msra.mxu1 %v8757_v49  ;;  %7696 = vmatprep.subr.bf16.mxu0 %v8762_v52  ;;  %v9644_v49 = vld [vmem:[%s11811_s0 + $0x28] sm:$0xff]  }
  0x5c   :  { %7569 = vmatmul.mubr.bf16.gmra.mxu0 %v9422_v50  ;;  %7736 = vmatprep.subr.bf16.mxu1 %v8763_v53 }
  0x5d   :  { %7609 = vmatmul.mubr.bf16.gmra.mxu1 %v8748_v51  ;;  %7572 = vmatprep.mubr.bf16.mxu0 %v9436_v54  ;;  %v8811_v51 = vld [vmem:[%s11812_s1 + $0x1e0] sm:$0xff]  }
  0x5e   :  { %7612 = vmatprep.mubr.bf16.mxu1 %v8753_v55  ;;  %v8815_v55 = vld [vmem:[%s11812_s1 + $0x1d8] sm:$0xff]  }
  0x64   :  { %7573 = vmatmul.mubr.bf16.gmra.mxu0 %v9446_v56 }
  0x65   :  { %7613 = vmatmul.mubr.bf16.gmra.mxu1 %v8755_v57  ;;  %7632 = vmatprep.mubr.bf16.mxu0 %v9454_v58  ;;  %v8819_v57 = vld [vmem:[%s11812_s1 + $0x1d0] sm:$0xff]  }
  0x66   :  { %7672 = vmatprep.mubr.bf16.mxu1 %v8759_v59  ;;  %v8820_v59 = vld [vmem:[%s11812_s1 + $0x148] sm:$0xff]  }
  0x6c   :  { %7633 = vmatmul.mubr.bf16.vlgmr.msra.gmra.mxu0 %v9464_v60 }
  0x6d   :  { %7673 = vmatmul.mubr.bf16.vlgmr.msra.gmra.mxu1 %v8761_v61  ;;  %7697 = vmatpush3.bf16.msra.mxu0 %v8762_v52  ;;  %v8814_v52 = vld [vmem:[%s11812_s1 + $0x158] sm:$0xff]   ;;  %v9693_v61 = vld [vmem:[%s11811_s0 + $0x48] sm:$0xff]  }
  0x6e   :  { %7737 = vmatpush3.bf16.msra.mxu1 %v8763_v53  ;;  %7698 = vmatprep.subr.bf16.mxu0 %v8764_v62  ;;  %v9667_v53 = vld [vmem:[%s11811_s0 + $0x38] sm:$0xff]  }
  0x6f   :  { %7636 = vmatprep.mubr.bf16.mxu0 %v9475_v63  ;;  %7676 = vmatprep.mubr.bf16.mxu1 %v8766_v0  ;;  %v8825_v0 = vld [vmem:[%s11812_s1 + $0x1c0] sm:$0xff]  }
  0x70   :  { %7738 = vmatprep.subr.bf16.mxu1 %v8769_v1 }
  0x71   :  { %7699 = vmatpush3.bf16.msra.mxu0 %v8764_v62  ;;  %v8821_v62 = vld [vmem:[%s11812_s1 + $0x1c8] sm:$0xff]  }
  0x72   :  { %7739 = vmatpush3.bf16.msra.mxu1 %v8769_v1  ;;  %7700 = vmatprep.subr.bf16.mxu0 %v8770_v3  ;;  %v8826_v1 = vld [vmem:[%s11812_s1 + $0x238] sm:$0xff]  }
  0x73   :  { %7740 = vmatprep.subr.bf16.mxu1 %v8771_v4 }
  0x74   :  { %7637 = vmatmul.mubr.bf16.gmra.mxu0 %v9487_v2 }
  0x75   :  { %7677 = vmatmul.mubr.bf16.gmra.mxu1 %v8768_v5  ;;  %7701 = vmatpush3.bf16.msra.mxu0 %v8770_v3  ;;  %v9719_v3 = vld [vmem:[%s11811_s0 + $0x58] sm:$0xff]   ;;  %v8974_v5 = vld [vmem:[%s11811_s0] sm:$0xff]  }
  0x76   :  { %7640 = vmatprep.mubr.bf16.mxu0 %v9502_v6  ;;  %7680 = vmatprep.mubr.bf16.mxu1 %v8773_v7  ;;  %v8975_v7 = vld [vmem:[%s11811_s0 + $0x8] sm:$0xff]  }
  0x77   :  { %7741 = vmatpush3.bf16.msra.mxu1 %v8771_v4  ;;  %7702 = vmatprep.subr.bf16.mxu0 %v8776_v8  ;;  %v8827_v4 = vld [vmem:[%s11812_s1 + $0x278] sm:$0xff]  }
  0x78   :  { %7742 = vmatprep.subr.bf16.mxu1 %v8777_v9 }
  0x79   :  { %7703 = vmatpush3.bf16.msra.mxu0 %v8776_v8  ;;  %v8976_v8 = vld [vmem:[%s11811_s0 + $0x10] sm:$0xff]  }
  0x7a   :  { %7704 = vmatprep.subr.bf16.mxu0 %v8782_v11 }
  0x7b   :  { %7743 = vmatpush3.bf16.msra.mxu1 %v8777_v9  ;;  %v8833_v9 = vld [vmem:[%s11812_s1 + $0x260] sm:$0xff]  }
  0x7c   :  { %7641 = vmatmul.mubr.bf16.gmra.mxu0 %v9518_v10  ;;  %7744 = vmatprep.subr.bf16.mxu1 %v8783_v14 }
  0x7d   :  { %7681 = vmatmul.mubr.bf16.gmra.mxu1 %v8775_v13  ;;  %7644 = vmatprep.mubr.bf16.mxu0 %v9532_v15  ;;  %v8978_v13 = vld [vmem:[%s11811_s0 + $0x20] sm:$0xff]  }
  0x7e   :  { %7684 = vmatprep.mubr.bf16.mxu1 %v8779_v16  ;;  %7705 = vmatpush3.bf16.msra.mxu0 %v8782_v11  ;;  %v8977_v11 = vld [vmem:[%s11811_s0 + $0x18] sm:$0xff]   ;;  %v8837_v16 = vld [vmem:[%s11812_s1 + $0x250] sm:$0xff]  }
  0x7f   :  { %7745 = vmatpush3.bf16.msra.mxu1 %v8783_v14  ;;  %7706 = vmatprep.subr.bf16.mxu0 %v8784_v17  ;;  %v8835_v14 = vld [vmem:[%s11812_s1 + $0x258] sm:$0xff]  }
  0x80   :  { %7746 = vmatprep.subr.bf16.mxu1 %v8789_v19 }
  0x82   :  { %7707 = vmatpush3.bf16.msra.mxu0 %v8784_v17  ;;  %v8980_v17 = vld [vmem:[%s11811_s0 + $0x30] sm:$0xff]  }
  0x83   :  { %7747 = vmatpush3.bf16.msra.mxu1 %v8789_v19  ;;  %7708 = vmatprep.subr.bf16.mxu0 %v8790_v22  ;;  %v8838_v19 = vld [vmem:[%s11812_s1 + $0x208] sm:$0xff]  }
  0x84   :  { %7645 = vmatmul.mubr.bf16.gmra.mxu0 %v9548_v20  ;;  %7748 = vmatprep.subr.bf16.mxu1 %v8791_v24 }
  0x85   :  { %7685 = vmatmul.mubr.bf16.gmra.mxu1 %v8781_v21  ;;  %7648 = vmatprep.mubr.bf16.mxu0 %v9562_v25  ;;  %v8839_v21 = vld [vmem:[%s11812_s1 + $0x248] sm:$0xff]  }
  0x86   :  { %7688 = vmatprep.mubr.bf16.mxu1 %v8786_v27  ;;  %7709 = vmatpush3.bf16.msra.mxu0 %v8790_v22  ;;  %v8841_v22 = vld [vmem:[%s11812_s1 + $0x240] sm:$0xff]   ;;  %v8983_v27 = vld [vmem:[%s11812_s1 + $0x78] sm:$0xff]  }
  0x87   :  { %7749 = vmatpush3.bf16.msra.mxu1 %v8791_v24  ;;  %7710 = vmatprep.subr.bf16.mxu0 %v8796_v28  ;;  %v8982_v24 = vld [vmem:[%s11811_s0 + $0x40] sm:$0xff]  }
  0x88   :  { %7750 = vmatprep.subr.bf16.mxu1 %v8797_v29 }
  0x8a   :  { %7711 = vmatpush3.bf16.msra.mxu0 %v8796_v28  ;;  %v8986_v28 = vld [vmem:[%s11811_s0 + $0x50] sm:$0xff]  }
  0x8b   :  { %7751 = vmatpush3.bf16.msra.mxu1 %v8797_v29  ;;  %7776 = vmatprep.subr.bf16.mxu0 %v8800_v33  ;;  %v8987_v29 = vld [vmem:[%s11811_s0 + $0x58] sm:$0xff]  }
  0x8c   :  { %7649 = vmatmul.mubr.bf16.gmra.mxu0 %v9578_v31  ;;  %7816 = vmatprep.subr.bf16.mxu1 %v8801_v35 }
  0x8d   :  { %7689 = vmatmul.mubr.bf16.gmra.mxu1 %v8788_v32  ;;  %7652 = vmatprep.mubr.bf16.mxu0 %v9592_v36  ;;  %v9839_v32 = vld [vmem:[%s11811_s0 + $0x78] sm:$0xff]  }
  0x8e   :  { %7692 = vmatprep.mubr.bf16.mxu1 %v8793_v37 }
  0x94   :  { %7653 = vmatmul.mubr.bf16.gmra.mxu0 %v9602_v39 }
  0x95   :  { %7693 = vmatmul.mubr.bf16.gmra.mxu1 %v8795_v40  ;;  %7712 = vmatprep.mubr.bf16.mxu0 %v9610_v41 }
  0x96   :  { %7752 = vmatprep.mubr.bf16.mxu1 %v9281_v12  ;;  %v8805_v12 = vld [vmem:[%s11812_s1 + $0x1f0] sm:$0xff]  }
  0x9c   :  { %7713 = vmatmul.mubr.bf16.vlgmr.msra.gmra.mxu0 %v9618_v43 }
  0x9d   :  { %7753 = vmatmul.mubr.bf16.vlgmr.msra.gmra.mxu1 %v9302_v18  ;;  %7777 = vmatpush3.bf16.msra.mxu0 %v8800_v33  ;;  %v9649_v18 = vld [vmem:[%s11811_s0 + $0x30] sm:$0xff]   ;;  %v9846_v33 = vld [vmem:[%s11811_s0 + $0x80] sm:$0xff]  }
  0x9e   :  { %7817 = vmatpush3.bf16.msra.mxu1 %v8801_v35  ;;  %7778 = vmatprep.subr.bf16.mxu0 %v8802_v44 }
  0x9f   :  { %7716 = vmatprep.mubr.bf16.mxu0 %v9626_v45  ;;  %7756 = vmatprep.mubr.bf16.mxu1 %v9319_v23  ;;  %v8810_v23 = vld [vmem:[%s11812_s1 + $0x160] sm:$0xff]  }
  0xa0   :  { %7818 = vmatprep.subr.bf16.mxu1 %v8805_v12 }
  0xa1   :  { %7779 = vmatpush3.bf16.msra.mxu0 %v8802_v44 }
  0xa2   :  { %7819 = vmatpush3.bf16.msra.mxu1 %v8805_v12  ;;  %7780 = vmatprep.subr.bf16.mxu0 %v8806_v47  ;;  %v8992_v12 = vld [vmem:[%s11812_s1 + $0x30] sm:$0xff]  }
  0xa3   :  { %7820 = vmatprep.subr.bf16.mxu1 %v8807_v48 }
  0xa4   :  { %7717 = vmatmul.mubr.bf16.gmra.mxu0 %v9644_v49 }
  0xa5   :  { %7757 = vmatmul.mubr.bf16.gmra.mxu1 %v9331_v26  ;;  %7781 = vmatpush3.bf16.msra.mxu0 %v8806_v47  ;;  %v9675_v26 = vld [vmem:[%s11811_s0 + $0x40] sm:$0xff]  }
  0xa6   :  { %7720 = vmatprep.mubr.bf16.mxu0 %v9649_v18  ;;  %7760 = vmatprep.mubr.bf16.mxu1 %v9346_v30  ;;  %v8816_v30 = vld [vmem:[%s11812_s1 + $0x150] sm:$0xff]  }
  0xa7   :  { %7821 = vmatpush3.bf16.msra.mxu1 %v8807_v48  ;;  %7782 = vmatprep.subr.bf16.mxu0 %v8810_v23 }
  0xa8   :  { %7822 = vmatprep.subr.bf16.mxu1 %v8811_v51 }
  0xa9   :  { %7783 = vmatpush3.bf16.msra.mxu0 %v8810_v23 }
  0xaa   :  { %7784 = vmatprep.subr.bf16.mxu0 %v8814_v52 }
  0xab   :  { %7823 = vmatpush3.bf16.msra.mxu1 %v8811_v51  ;;  %v8993_v51 = vld [vmem:[%s11812_s1 + $0x68] sm:$0xff]  }
  0xac   :  { %7721 = vmatmul.mubr.bf16.gmra.mxu0 %v9667_v53  ;;  %7824 = vmatprep.subr.bf16.mxu1 %v8815_v55 }
  0xad   :  { %7761 = vmatmul.mubr.bf16.gmra.mxu1 %v9362_v34  ;;  %7724 = vmatprep.mubr.bf16.mxu0 %v9675_v26  ;;  %v9701_v34 = vld [vmem:[%s11811_s0 + $0x50] sm:$0xff]  }
  0xae   :  { %7764 = vmatprep.mubr.bf16.mxu1 %v9376_v38  ;;  %7785 = vmatpush3.bf16.msra.mxu0 %v8814_v52  ;;  %v8824_v38 = vld [vmem:[%s11812_s1 + $0x140] sm:$0xff]   ;;  %v8994_v52 = vld [vmem:[%s11812_s1 + $0x28] sm:$0xff]  }
  0xaf   :  { %7825 = vmatpush3.bf16.msra.mxu1 %v8815_v55  ;;  %7786 = vmatprep.subr.bf16.mxu0 %v8816_v30 }
  0xb0   :  { %7826 = vmatprep.subr.bf16.mxu1 %v8819_v57 }
  0xb2   :  { %7787 = vmatpush3.bf16.msra.mxu0 %v8816_v30 }
  0xb3   :  { %7827 = vmatpush3.bf16.msra.mxu1 %v8819_v57  ;;  %7788 = vmatprep.subr.bf16.mxu0 %v8820_v59  ;;  %v9880_v57 = vld [vmem:[%s11811_s0 + $0x90] sm:$0xff]  }
  0xb4   :  { %7725 = vmatmul.mubr.bf16.gmra.mxu0 %v9693_v61  ;;  %7828 = vmatprep.subr.bf16.mxu1 %v8821_v62 }
  0xb5   :  { %7765 = vmatmul.mubr.bf16.gmra.mxu1 %v9392_v42  ;;  %7728 = vmatprep.mubr.bf16.mxu0 %v9701_v34  ;;  %v9727_v42 = vld [vmem:[%s11811_s0 + $0x60] sm:$0xff]  }
  0xb6   :  { %7768 = vmatprep.mubr.bf16.mxu1 %v9406_v46  ;;  %7789 = vmatpush3.bf16.msra.mxu0 %v8820_v59  ;;  %v9736_v46 = vld [vmem:[%s11811_s0 + $0x68] sm:$0xff]  }
  0xb7   :  { %7829 = vmatpush3.bf16.msra.mxu1 %v8821_v62  ;;  %7790 = vmatprep.subr.bf16.mxu0 %v8824_v38 }
  0xb8   :  { %7830 = vmatprep.subr.bf16.mxu1 %v8825_v0 }
  0xba   :  { %7791 = vmatpush3.bf16.msra.mxu0 %v8824_v38 }
  0xbb   :  { %7831 = vmatpush3.bf16.msra.mxu1 %v8825_v0  ;;  %7856 = vmatprep.subr.bf16.mxu0 %v8826_v1  ;;  %v9889_v0 = vld [vmem:[%s11811_s0 + $0x98] sm:$0xff]  }
  0xbc   :  { %7729 = vmatmul.mubr.bf16.gmra.mxu0 %v9719_v3  ;;  %7896 = vmatprep.subr.bf16.mxu1 %v8827_v4 }
  0xbd   :  { %7769 = vmatmul.mubr.bf16.gmra.mxu1 %v9422_v50  ;;  %7732 = vmatprep.mubr.bf16.mxu0 %v9727_v42  ;;  %v8828_v50 = vld [vmem:[%s11812_s1 + $0x230] sm:$0xff]  }
  0xbe   :  { %7772 = vmatprep.mubr.bf16.mxu1 %v9436_v54  ;;  %v8829_v54 = vld [vmem:[%s11812_s1 + $0x270] sm:$0xff]  }
  0xc4   :  { %7733 = vmatmul.mubr.bf16.gmra.mxu0 %v9736_v46 }
  0xc5   :  { %7773 = vmatmul.mubr.bf16.gmra.mxu1 %v9446_v56  ;;  %7792 = vmatprep.mubr.bf16.mxu0 %v8974_v5  ;;  %v8830_v56 = vld [vmem:[%s11812_s1 + $0x228] sm:$0xff]  }
  0xc6   :  { %7832 = vmatprep.mubr.bf16.mxu1 %v9454_v58  ;;  %v8831_v58 = vld [vmem:[%s11812_s1 + $0x268] sm:$0xff]  }
  0xcc   :  { %7793 = vmatmul.mubr.bf16.vlgmr.msra.gmra.mxu0 %v8975_v7 }
  0xcd   :  { %7833 = vmatmul.mubr.bf16.vlgmr.msra.gmra.mxu1 %v9464_v60  ;;  %7857 = vmatpush3.bf16.msra.mxu0 %v8826_v1  ;;  %v8832_v60 = vld [vmem:[%s11812_s1 + $0x220] sm:$0xff]  }
  0xce   :  { %7897 = vmatpush3.bf16.msra.mxu1 %v8827_v4  ;;  %7858 = vmatprep.subr.bf16.mxu0 %v8828_v50  ;;  %v8997_v4 = vld [vmem:[%s11812_s1 + $0x60] sm:$0xff]  }
  0xcf   :  { %7796 = vmatprep.mubr.bf16.mxu0 %v8976_v8  ;;  %7836 = vmatprep.mubr.bf16.mxu1 %v9475_v63  ;;  %v8834_v63 = vld [vmem:[%s11812_s1 + $0x218] sm:$0xff]  }
  0xd0   :  { %7898 = vmatprep.subr.bf16.mxu1 %v8829_v54 }
  0xd1   :  { %7859 = vmatpush3.bf16.msra.mxu0 %v8828_v50  ;;  %v8998_v50 = vld [vmem:[%s11812_s1 + $0x20] sm:$0xff]  }
  0xd2   :  { %7899 = vmatpush3.bf16.msra.mxu1 %v8829_v54  ;;  %7860 = vmatprep.subr.bf16.mxu0 %v8830_v56 }
  0xd3   :  { %7900 = vmatprep.subr.bf16.mxu1 %v8831_v58 }
  0xd4   :  { %7797 = vmatmul.mubr.bf16.gmra.mxu0 %v8977_v11  ;;  %v9001_v11 = vld [vmem:[%s11812_s1 + $0x18] sm:$0xff]  }
  0xd5   :  { %7837 = vmatmul.mubr.bf16.gmra.mxu1 %v9487_v2  ;;  %7861 = vmatpush3.bf16.msra.mxu0 %v8830_v56  ;;  %v8836_v2 = vld [vmem:[%s11812_s1 + $0x210] sm:$0xff]   ;;  %v8999_v56 = vld [vmem:[%s11812_s1 + $0x58] sm:$0xff]  }
  0xd6   :  { %7800 = vmatprep.mubr.bf16.mxu0 %v8978_v13  ;;  %7840 = vmatprep.mubr.bf16.mxu1 %v9502_v6  ;;  %v8979_v6 = vld [vmem:[%s11811_s0 + $0x28] sm:$0xff]  }
  0xd7   :  { %7901 = vmatpush3.bf16.msra.mxu1 %v8831_v58  ;;  %7862 = vmatprep.subr.bf16.mxu0 %v8832_v60  ;;  %v9921_v13 = vld [vmem:[%s11811_s0 + $0xa8] sm:$0xff]  }
  0xd8   :  { %7902 = vmatprep.subr.bf16.mxu1 %v8833_v9 }
  0xd9   :  { %7863 = vmatpush3.bf16.msra.mxu0 %v8832_v60 }
  0xda   :  { %7864 = vmatprep.subr.bf16.mxu0 %v8834_v63 }
  0xdb   :  { %7903 = vmatpush3.bf16.msra.mxu1 %v8833_v9  ;;  %v9911_v9 = vld [vmem:[%s11811_s0 + $0xa0] sm:$0xff]  }
  0xdc   :  { %7801 = vmatmul.mubr.bf16.gmra.mxu0 %v8979_v6  ;;  %7904 = vmatprep.subr.bf16.mxu1 %v8835_v14  ;;  %v9003_v6 = vld [vmem:[%s11812_s1 + $0x50] sm:$0xff]  }
  0xdd   :  { %7841 = vmatmul.mubr.bf16.gmra.mxu1 %v9518_v10  ;;  %7804 = vmatprep.mubr.bf16.mxu0 %v8980_v17  ;;  %v8840_v10 = vld [vmem:[%s11812_s1 + $0x200] sm:$0xff]  }
  0xde   :  { %7844 = vmatprep.mubr.bf16.mxu1 %v9532_v15  ;;  %7865 = vmatpush3.bf16.msra.mxu0 %v8834_v63  ;;  %v8981_v15 = vld [vmem:[%s11811_s0 + $0x38] sm:$0xff]  }
  0xdf   :  { %7905 = vmatpush3.bf16.msra.mxu1 %v8835_v14  ;;  %7866 = vmatprep.subr.bf16.mxu0 %v8836_v2 }
  0xe0   :  { %7906 = vmatprep.subr.bf16.mxu1 %v8837_v16 }
  0xe2   :  { %7867 = vmatpush3.bf16.msra.mxu0 %v8836_v2 }
  0xe3   :  { %7907 = vmatpush3.bf16.msra.mxu1 %v8837_v16  ;;  %7868 = vmatprep.subr.bf16.mxu0 %v8838_v19 }
  0xe4   :  { %7805 = vmatmul.mubr.bf16.gmra.mxu0 %v8981_v15  ;;  %7908 = vmatprep.subr.bf16.mxu1 %v8839_v21  ;;  %v9005_v15 = vld [vmem:[%s11812_s1 + $0x48] sm:$0xff]  }
  0xe5   :  { %7845 = vmatmul.mubr.bf16.gmra.mxu1 %v9548_v20  ;;  %7808 = vmatprep.mubr.bf16.mxu0 %v8982_v24  ;;  %v8984_v20 = vld [vmem:[%s11811_s0 + $0x48] sm:$0xff]  }
  0xe6   :  { %7848 = vmatprep.mubr.bf16.mxu1 %v9562_v25  ;;  %7869 = vmatpush3.bf16.msra.mxu0 %v8838_v19  ;;  %v8985_v25 = vld [vmem:[%s11812_s1 + $0x38] sm:$0xff]   ;;  %v9004_v19 = vld [vmem:[%s11812_s1 + $0x10] sm:$0xff]  }
  0xe7   :  { %7909 = vmatpush3.bf16.msra.mxu1 %v8839_v21  ;;  %7870 = vmatprep.subr.bf16.mxu0 %v8840_v10 }
  0xe8   :  { %7910 = vmatprep.subr.bf16.mxu1 %v8841_v22 }
  0xea   :  { %7871 = vmatpush3.bf16.msra.mxu0 %v8840_v10 }
  0xeb   :  { %7911 = vmatpush3.bf16.msra.mxu1 %v8841_v22  ;;  %7936 = vmatprep.subr.bf16.mxu0 %v8983_v27 }
  0xec   :  { %7809 = vmatmul.mubr.bf16.gmra.mxu0 %v8984_v20  ;;  %7976 = vmatprep.subr.bf16.mxu1 %v8985_v25  ;;  %v9945_v20 = vld [vmem:[%s11811_s0 + $0xb0] sm:$0xff]  }
  0xed   :  { %7849 = vmatmul.mubr.bf16.gmra.mxu1 %v9578_v31  ;;  %7812 = vmatprep.mubr.bf16.mxu0 %v8986_v28 }
  0xee   :  { %7852 = vmatprep.mubr.bf16.mxu1 %v9592_v36 }
  0xf4   :  { %7813 = vmatmul.mubr.bf16.gmra.mxu0 %v8987_v29  ;;  %v9955_v29 = vld [vmem:[%s11811_s0 + $0xb8] sm:$0xff]  }
  0xf5   :  { %7853 = vmatmul.mubr.bf16.gmra.mxu1 %v9602_v39  ;;  %7872 = vmatprep.mubr.bf16.mxu0 %v9839_v32  ;;  %v8990_v39 = vld [vmem:[%s11812_s1 + $0x70] sm:$0xff]  }
  0xf6   :  { %7912 = vmatprep.mubr.bf16.mxu1 %v9610_v41  ;;  %v9858_v41 = vld [vmem:[%s11811_s0 + $0x88] sm:$0xff]  }
  0xfc   :  { %v7554_v31 = vpop.f32.mrf.mxu0  ;;  %7873 = vmatmul.mubr.bf16.vlgmr.msra.gmra.mxu0 %v9846_v33 }
  0xfd   :  { %v7594_v35 = vpop.f32.mrf.mxu1  ;;  %7913 = vmatmul.mubr.bf16.vlgmr.msra.gmra.mxu1 %v9618_v43  ;;  %7937 = vmatpush3.bf16.msra.mxu0 %v8983_v27 }
  0xfe   :  { %v9850_v36 = vadd.f32 %v7594_v35, %v7554_v31  ;;  %v303_v37 = vpop.f32.mrf.mxu0  ;;  %7977 = vmatpush3.bf16.msra.mxu1 %v8985_v25  ;;  %7938 = vmatprep.subr.bf16.mxu0 %v8990_v39  ;;  %v9007_v25 = vld [vmem:[%s11812_s1 + $0x8] sm:$0xff]  }
  0xff   :  { %v552_v40 = vpop.f32.mrf.mxu1  ;;  %7876 = vmatprep.mubr.bf16.mxu0 %v9858_v41  ;;  %7916 = vmatprep.mubr.bf16.mxu1 %v9626_v45 }
 0x100   :  { %v9862_v43 = vadd.f32 %v552_v40, %v303_v37  ;;  %v7555_v44 = vpop.f32.mrf.mxu0  ;;  %7978 = vmatprep.subr.bf16.mxu1 %v8992_v12 }
 0x101   :  { %v7595_v47 = vpop.f32.mrf.mxu1  ;;  %7939 = vmatpush3.bf16.msra.mxu0 %v8990_v39  ;;  %v9009_v39 = vld [vmem:[%s11812_s1 + $0x40] sm:$0xff]  }
 0x102   :  { %v9867_v48 = vadd.f32 %v7595_v47, %v7555_v44  ;;  %v306_v23 = vpop.f32.mrf.mxu0  ;;  %7979 = vmatpush3.bf16.msra.mxu1 %v8992_v12  ;;  %7940 = vmatprep.subr.bf16.mxu0 %v8993_v51  ;;  %v9010_v44 = vld [vmem:[%s11812_s1] sm:$0xff]  }
 0x103   :  { %v555_v45 = vpop.f32.mrf.mxu1  ;;  %7980 = vmatprep.subr.bf16.mxu1 %v8994_v52 }
 0x104   :  { %v9875_v55 = vadd.f32 %v555_v45, %v306_v23  ;;  %v7558_v30 = vpop.f32.mrf.mxu0  ;;  %7877 = vmatmul.mubr.bf16.gmra.mxu0 %v9880_v57 }
 0x105   :  { %v7598_v59 = vpop.f32.mrf.mxu1  ;;  %7917 = vmatmul.mubr.bf16.gmra.mxu1 %v9644_v49  ;;  %7941 = vmatpush3.bf16.msra.mxu0 %v8993_v51  ;;  %v9011_v51 = vld [vmem:[%s11812_s1 + $0xb8] sm:$0xff]  }
 0x106   :  { %v9884_v62 = vadd.f32 %v7598_v59, %v7558_v30  ;;  %v319_v38 = vpop.f32.mrf.mxu0  ;;  %7880 = vmatprep.mubr.bf16.mxu0 %v9889_v0  ;;  %7920 = vmatprep.mubr.bf16.mxu1 %v9649_v18  ;;  %v9979_v30 = vld [vmem:[%s11811_s0 + $0xc0] sm:$0xff]   ;;  %v9013_v59 = vld [vmem:[%s11812_s1 + $0xf8] sm:$0xff]  }
 0x107   :  { %v568_v1 = vpop.f32.mrf.mxu1  ;;  %7981 = vmatpush3.bf16.msra.mxu1 %v8994_v52  ;;  %7942 = vmatprep.subr.bf16.mxu0 %v8997_v4 }
 0x108   :  { %v9896_v49 = vadd.f32 %v568_v1, %v319_v38  ;;  %v7559_v5 = vpop.f32.mrf.mxu0  ;;  %7982 = vmatprep.subr.bf16.mxu1 %v8998_v50  ;;  %v9989_v1 = vld [vmem:[%s11811_s0 + $0xc8] sm:$0xff]  }
 0x109   :  { %v7599_v54 = vpop.f32.mrf.mxu1  ;;  %7943 = vmatpush3.bf16.msra.mxu0 %v8997_v4 }
 0x10a   :  { %v9901_v7 = vadd.f32 %v7599_v54, %v7559_v5  ;;  %v322_v18 = vpop.f32.mrf.mxu0  ;;  %7944 = vmatprep.subr.bf16.mxu0 %v8999_v56 }
 0x10b   :  { %v571_v58 = vpop.f32.mrf.mxu1  ;;  %7983 = vmatpush3.bf16.msra.mxu1 %v8998_v50 }
 0x10c   :  { %v9906_v8 = vadd.f32 %v571_v58, %v322_v18  ;;  %v7562_v60 = vpop.f32.mrf.mxu0  ;;  %7881 = vmatmul.mubr.bf16.gmra.mxu0 %v9911_v9  ;;  %7984 = vmatprep.subr.bf16.mxu1 %v9001_v11 }
 0x10d   :  { %v7602_v63 = vpop.f32.mrf.mxu1  ;;  %7921 = vmatmul.mubr.bf16.gmra.mxu1 %v9667_v53  ;;  %7884 = vmatprep.mubr.bf16.mxu0 %v9921_v13 }
 0x10e   :  { %v9924_v14 = vadd.f32 %v7602_v63, %v7562_v60  ;;  %v335_v2 = vpop.f32.mrf.mxu0  ;;  %7924 = vmatprep.mubr.bf16.mxu1 %v9675_v26  ;;  %7945 = vmatpush3.bf16.msra.mxu0 %v8999_v56 }
 0x10f   :  { %v584_v16 = vpop.f32.mrf.mxu1  ;;  %7985 = vmatpush3.bf16.msra.mxu1 %v9001_v11  ;;  %7946 = vmatprep.subr.bf16.mxu0 %v9003_v6 }
 0x110   :  { %v9930_v53 = vadd.f32 %v584_v16, %v335_v2  ;;  %v7563_v17 = vpop.f32.mrf.mxu0  ;;  %7986 = vmatprep.subr.bf16.mxu1 %v9004_v19  ;;  %v10004_v2 = vld [vmem:[%s11811_s0 + $0xd0] sm:$0xff]   ;;  %v10011_v16 = vld [vmem:[%s11811_s0 + $0x8] sm:$0xff]  }
 0x111   :  { %v7603_v21 = vpop.f32.mrf.mxu1 }
 0x112   :  { %v9935_v10 = vadd.f32 %v7603_v21, %v7563_v17  ;;  %v338_v26 = vpop.f32.mrf.mxu0  ;;  %7947 = vmatpush3.bf16.msra.mxu0 %v9003_v6 }
 0x113   :  { %v587_v22 = vpop.f32.mrf.mxu1  ;;  %7987 = vmatpush3.bf16.msra.mxu1 %v9004_v19  ;;  %7948 = vmatprep.subr.bf16.mxu0 %v9005_v15  ;;  %v10019_v19 = vld [vmem:[%s11811_s0 + $0x70] sm:$0xff]  }
 0x114   :  { %v9940_v24 = vadd.f32 %v587_v22, %v338_v26  ;;  %v7566_v27 = vpop.f32.mrf.mxu0  ;;  %7885 = vmatmul.mubr.bf16.gmra.mxu0 %v9945_v20  ;;  %7988 = vmatprep.subr.bf16.mxu1 %v9007_v25  ;;  %11878 = vst [vmem:[#allocation9_spill] sm:$0xff] %v10019_v19 }
 0x115   :  { %v7606_v28 = vpop.f32.mrf.mxu1  ;;  %7925 = vmatmul.mubr.bf16.gmra.mxu1 %v9693_v61  ;;  %7888 = vmatprep.mubr.bf16.mxu0 %v9955_v29 }
 0x116   :  { %v9958_v31 = vadd.f32 %v7606_v28, %v7566_v27  ;;  %v351_v35 = vpop.f32.mrf.mxu0  ;;  %7928 = vmatprep.mubr.bf16.mxu1 %v9701_v34  ;;  %7949 = vmatpush3.bf16.msra.mxu0 %v9005_v15 }
 0x117   :  { %v600_v37 = vpop.f32.mrf.mxu1  ;;  %7989 = vmatpush3.bf16.msra.mxu1 %v9007_v25  ;;  %7950 = vmatprep.subr.bf16.mxu0 %v9009_v39 }
 0x118   :  { %v9964_v61 = vadd.f32 %v600_v37, %v351_v35  ;;  %v7567_v40 = vpop.f32.mrf.mxu0  ;;  %7990 = vmatprep.subr.bf16.mxu1 %v9010_v44  ;;  %v10031_v37 = vld [vmem:[%s11811_s0 + $0x10] sm:$0xff]  }
 0x119   :  { %v7607_v12 = vpop.f32.mrf.mxu1 }
 0x11a   :  { %v9969_v47 = vadd.f32 %v7607_v12, %v7567_v40  ;;  %v354_v34 = vpop.f32.mrf.mxu0  ;;  %7951 = vmatpush3.bf16.msra.mxu0 %v9009_v39 }
 0x11b   :  { %v603_v23 = vpop.f32.mrf.mxu1  ;;  %7991 = vmatpush3.bf16.msra.mxu1 %v9010_v44  ;;  %8016 = vmatprep.subr.bf16.mxu0 %v9011_v51  ;;  %v10038_v44 = vld [vmem:[%s11811_s0 + $0x78] sm:$0xff]  }
 0x11c   :  { %v9974_v45 = vadd.f32 %v603_v23, %v354_v34  ;;  %v7570_v52 = vpop.f32.mrf.mxu0  ;;  %7889 = vmatmul.mubr.bf16.gmra.mxu0 %v9979_v30  ;;  %8056 = vmatprep.subr.bf16.mxu1 %v9013_v59  ;;  %11879 = vst [vmem:[#allocation10_spill] sm:$0xff] %v10038_v44  ;;  %v9020_v34 = vld [vmem:[%s11812_s1 + $0xb0] sm:$0xff]  }
 0x11d   :  { %v7610_v38 = vpop.f32.mrf.mxu1  ;;  %7929 = vmatmul.mubr.bf16.gmra.mxu1 %v9719_v3  ;;  %7892 = vmatprep.mubr.bf16.mxu0 %v9989_v1 }
 0x11e   :  { %v9992_v4 = vadd.f32 %v7610_v38, %v7570_v52  ;;  %v367_v5 = vpop.f32.mrf.mxu0  ;;  %7932 = vmatprep.mubr.bf16.mxu1 %v9727_v42  ;;  %v10050_v38 = vld [vmem:[%s11811_s0 + $0x18] sm:$0xff]  }
 0x11f   :  { %v616_v50 = vpop.f32.mrf.mxu1 }
 0x120   :  { %v9995_v54 = vadd.f32 %v616_v50, %v367_v5  ;;  %v7571_v18 = vpop.f32.mrf.mxu0 }
 0x121   :  { %v7611_v56 = vpop.f32.mrf.mxu1 }
 0x122   :  { %v9997_v58 = vadd.f32 %v7611_v56, %v7571_v18  ;;  %v370_v3 = vpop.f32.mrf.mxu0 }
 0x123   :  { %v619_v60 = vpop.f32.mrf.mxu1 }
 0x124   :  { %v9999_v11 = vadd.f32 %v619_v60, %v370_v3  ;;  %v7574_v63 = vpop.f32.mrf.mxu0  ;;  %7893 = vmatmul.mubr.bf16.gmra.mxu0 %v10004_v2  ;;  %v9024_v3 = vld [vmem:[%s11812_s1 + $0xa8] sm:$0xff]  }
 0x125   :  { %v7614_v42 = vpop.f32.mrf.mxu1  ;;  %7933 = vmatmul.mubr.bf16.gmra.mxu1 %v9736_v46  ;;  %7952 = vmatprep.mubr.bf16.mxu0 %v10011_v16 }
 0x126   :  { %v10014_v6 = vadd.f32 %v7614_v42, %v7574_v63  ;;  %v383_v17 = vpop.f32.mrf.mxu0  ;;  %7992 = vmatprep.mubr.bf16.mxu1 %v10019_v19 }
 0x127   :  { %v632_v21 = vpop.f32.mrf.mxu1 }
 0x128   :  { %v10022_v26 = vadd.f32 %v632_v21, %v383_v17  ;;  %v7575_v46 = vpop.f32.mrf.mxu0  ;;  %v9025_v17 = vld [vmem:[%s11812_s1 + $0xe8] sm:$0xff]   ;;  %v10077_v21 = vld [vmem:[%s11811_s0 + $0x20] sm:$0xff]  }
 0x129   :  { %v7615_v22 = vpop.f32.mrf.mxu1 }
 0x12a   :  { %v10024_v15 = vadd.f32 %v7615_v22, %v7575_v46  ;;  %v386_v27 = vpop.f32.mrf.mxu0 }
 0x12b   :  { %v635_v25 = vpop.f32.mrf.mxu1 }
 0x12c   :  { %v10026_v28 = vadd.f32 %v635_v25, %v386_v27  ;;  %v7634_v35 = vpop.f32.mrf.mxu0  ;;  %7953 = vmatmul.mubr.bf16.vlgmr.msra.gmra.mxu0 %v10031_v37 }
 0x12d   :  { %v940_v39 = vadd.f32 %v7634_v35, %v9850_v36  ;;  %v7674_v40 = vpop.f32.mrf.mxu1  ;;  %7993 = vmatmul.mubr.bf16.vlgmr.msra.gmra.mxu1 %v10038_v44  ;;  %8017 = vmatpush3.bf16.msra.mxu0 %v9011_v51  ;;  %v10056_v51 = vld [vmem:[%s11811_s0 + $0x80] sm:$0xff]   ;;  %v10092_v35 = vld [vmem:[%s11811_s0 + $0x28] sm:$0xff]  }
 0x12e   :  { %v843_v12 = vpop.f32.mrf.mxu0  ;;  %8057 = vmatpush3.bf16.msra.mxu1 %v9013_v59  ;;  %8018 = vmatprep.subr.bf16.mxu0 %v9020_v34  ;;  %11880 = vst [vmem:[#allocation11_spill] sm:$0xff] %v10056_v51 }
 0x12f   :  { %v10044_v23 = vadd.f32 %v7674_v40, %v940_v39  ;;  %v938_v36 = vadd.f32 %v843_v12, %v9862_v43  ;;  %v1158_v52 = vpop.f32.mrf.mxu1  ;;  %7956 = vmatprep.mubr.bf16.mxu0 %v10050_v38  ;;  %7996 = vmatprep.mubr.bf16.mxu1 %v10056_v51  ;;  %v9023_v43 = vld [vmem:[%s11812_s1 + $0xf0] sm:$0xff]  }
 0x130   :  { %v7635_v59 = vpop.f32.mrf.mxu0  ;;  %8058 = vmatprep.subr.bf16.mxu1 %v9023_v43 }
 0x131   :  { %v10062_v5 = vadd.f32 %v1158_v52, %v938_v36  ;;  %v941_v50 = vadd.f32 %v7635_v59, %v9867_v48  ;;  %v7675_v18 = vpop.f32.mrf.mxu1  ;;  %8019 = vmatpush3.bf16.msra.mxu0 %v9020_v34  ;;  %v9030_v34 = vld [vmem:[%s11812_s1 + $0xa0] sm:$0xff]  }
 0x132   :  { %v846_v56 = vpop.f32.mrf.mxu0  ;;  %8059 = vmatpush3.bf16.msra.mxu1 %v9023_v43  ;;  %8020 = vmatprep.subr.bf16.mxu0 %v9024_v3  ;;  %v9031_v52 = vld [vmem:[%s11812_s1 + $0xe0] sm:$0xff]  }
 0x133   :  { %v10068_v60 = vadd.f32 %v7675_v18, %v941_v50  ;;  %v939_v63 = vadd.f32 %v846_v56, %v9875_v55  ;;  %v1161_v42 = vpop.f32.mrf.mxu1  ;;  %8060 = vmatprep.subr.bf16.mxu1 %v9025_v17  ;;  %v10086_v55 = vld [vmem:[%s11811_s0 + $0x88] sm:$0xff]   ;;  %v9032_v18 = vld [vmem:[%s11812_s1 + $0x98] sm:$0xff]  }
 0x134   :  { %v7638_v48 = vpop.f32.mrf.mxu0  ;;  %7957 = vmatmul.mubr.bf16.gmra.mxu0 %v10077_v21  ;;  %11881 = vst [vmem:[#allocation12_spill] sm:$0xff] %v10086_v55 }
 0x135   :  { %v10080_v46 = vadd.f32 %v1161_v42, %v939_v63  ;;  %v944_v22 = vadd.f32 %v7638_v48, %v9884_v62  ;;  %v7678_v27 = vpop.f32.mrf.mxu1  ;;  %7997 = vmatmul.mubr.bf16.gmra.mxu1 %v10086_v55  ;;  %8021 = vmatpush3.bf16.msra.mxu0 %v9024_v3  ;;  %v10098_v62 = vld [vmem:[%s11811_s0 + $0x90] sm:$0xff]  }
 0x136   :  { %v859_v25 = vpop.f32.mrf.mxu0  ;;  %7960 = vmatprep.mubr.bf16.mxu0 %v10092_v35  ;;  %11882 = vst [vmem:[#allocation13_spill] sm:$0xff] %v10098_v62  ;;  %8000 = vmatprep.mubr.bf16.mxu1 %v10098_v62 }
 0x137   :  { %v10101_v39 = vadd.f32 %v7678_v27, %v944_v22  ;;  %v942_v40 = vadd.f32 %v859_v25, %v9896_v49  ;;  %v1174_v12 = vpop.f32.mrf.mxu1  ;;  %8061 = vmatpush3.bf16.msra.mxu1 %v9025_v17  ;;  %8022 = vmatprep.subr.bf16.mxu0 %v9030_v34  ;;  %v10122_v17 = vld [vmem:[%s11811_s0 + $0x30] sm:$0xff]   ;;  %v10134_v27 = vld [vmem:[%s11811_s0 + $0x98] sm:$0xff]  }
 0x138   :  { %v7639_v36 = vpop.f32.mrf.mxu0  ;;  %8062 = vmatprep.subr.bf16.mxu1 %v9031_v52  ;;  %11883 = vst [vmem:[#allocation14_spill] sm:$0xff] %v10134_v27  ;;  %v10140_v25 = vld [vmem:[%s11811_s0 + $0x38] sm:$0xff]  }
 0x139   :  { %v10110_v59 = vadd.f32 %v1174_v12, %v942_v40  ;;  %v945_v43 = vadd.f32 %v7639_v36, %v9901_v7  ;;  %v7679_v50 = vpop.f32.mrf.mxu1  ;;  %8023 = vmatpush3.bf16.msra.mxu0 %v9030_v34  ;;  %v9034_v7 = vld [vmem:[%s11812_s1 + $0xd8] sm:$0xff]  }
 0x13a   :  { %v862_v49 = vpop.f32.mrf.mxu0  ;;  %8024 = vmatprep.subr.bf16.mxu0 %v9032_v18 }
 0x13b   :  { %v10116_v56 = vadd.f32 %v7679_v50, %v945_v43  ;;  %v943_v3 = vadd.f32 %v862_v49, %v9906_v8  ;;  %v1177_v63 = vpop.f32.mrf.mxu1  ;;  %8063 = vmatpush3.bf16.msra.mxu1 %v9031_v52  ;;  %v9038_v52 = vld [vmem:[%s11812_s1 + $0x90] sm:$0xff]  }
 0x13c   :  { %v7642_v42 = vpop.f32.mrf.mxu0  ;;  %7961 = vmatmul.mubr.bf16.gmra.mxu0 %v10122_v17  ;;  %8064 = vmatprep.subr.bf16.mxu1 %v9034_v7  ;;  %v9039_v50 = vld [vmem:[%s11812_s1 + $0xd0] sm:$0xff]  }
 0x13d   :  { %v10128_v48 = vadd.f32 %v1177_v63, %v943_v3  ;;  %v948_v22 = vadd.f32 %v7642_v42, %v9924_v14  ;;  %v7682_v8 = vpop.f32.mrf.mxu1  ;;  %8001 = vmatmul.mubr.bf16.gmra.mxu1 %v10134_v27  ;;  %7964 = vmatprep.mubr.bf16.mxu0 %v10140_v25  ;;  %v10146_v14 = vld [vmem:[%s11811_s0 + $0xa0] sm:$0xff]  }
 0x13e   :  { %v875_v40 = vpop.f32.mrf.mxu0  ;;  %11884 = vst [vmem:[#allocation15_spill] sm:$0xff] %v10146_v14  ;;  %8004 = vmatprep.mubr.bf16.mxu1 %v10146_v14  ;;  %8025 = vmatpush3.bf16.msra.mxu0 %v9032_v18 }
 0x13f   :  { %v10149_v12 = vadd.f32 %v7682_v8, %v948_v22  ;;  %v946_v34 = vadd.f32 %v875_v40, %v9930_v53  ;;  %v1190_v36 = vpop.f32.mrf.mxu1  ;;  %8065 = vmatpush3.bf16.msra.mxu1 %v9034_v7  ;;  %8026 = vmatprep.subr.bf16.mxu0 %v9038_v52  ;;  %v9040_v22 = vld [vmem:[%s11812_s1 + $0x88] sm:$0xff]   ;;  %v10170_v40 = vld [vmem:[%s11811_s0 + $0x40] sm:$0xff]  }
 0x140   :  { %v7643_v43 = vpop.f32.mrf.mxu0  ;;  %8066 = vmatprep.subr.bf16.mxu1 %v9039_v50 }
 0x141   :  { %v10158_v49 = vadd.f32 %v1190_v36, %v946_v34  ;;  %v949_v18 = vadd.f32 %v7643_v43, %v9935_v10  ;;  %v7683_v3 = vpop.f32.mrf.mxu1  ;;  %v9042_v10 = vld [vmem:[%s11812_s1 + $0xc8] sm:$0xff]  }
 0x142   :  { %v878_v63 = vpop.f32.mrf.mxu0  ;;  %8027 = vmatpush3.bf16.msra.mxu0 %v9038_v52  ;;  %v10182_v52 = vld [vmem:[%s11811_s0 + $0xa8] sm:$0xff]  }
 0x143   :  { %v10161_v53 = vadd.f32 %v7683_v3, %v949_v18  ;;  %v947_v42 = vadd.f32 %v878_v63, %v9940_v24  ;;  %v1193_v7 = vpop.f32.mrf.mxu1  ;;  %8067 = vmatpush3.bf16.msra.mxu1 %v9039_v50  ;;  %8028 = vmatprep.subr.bf16.mxu0 %v9040_v22  ;;  %11885 = vst [vmem:[#allocation16_spill] sm:$0xff] %v10182_v52  ;;  %v10188_v43 = vld [vmem:[%s11811_s0 + $0x48] sm:$0xff]  }
 0x144   :  { %v7646_v8 = vpop.f32.mrf.mxu0  ;;  %7965 = vmatmul.mubr.bf16.gmra.mxu0 %v10170_v40  ;;  %8068 = vmatprep.subr.bf16.mxu1 %v9042_v10 }
 0x145   :  { %v10176_v24 = vadd.f32 %v1193_v7, %v947_v42  ;;  %v952_v34 = vadd.f32 %v7646_v8, %v9958_v31  ;;  %v7686_v36 = vpop.f32.mrf.mxu1  ;;  %8005 = vmatmul.mubr.bf16.gmra.mxu1 %v10182_v52  ;;  %7968 = vmatprep.mubr.bf16.mxu0 %v10188_v43  ;;  %v10194_v31 = vld [vmem:[%s11811_s0 + $0xb0] sm:$0xff]   ;;  %v9046_v42 = vld [vmem:[%s11812_s1 + $0x80] sm:$0xff]  }
 0x146   :  { %v891_v50 = vpop.f32.mrf.mxu0  ;;  %11886 = vst [vmem:[#allocation17_spill] sm:$0xff] %v10194_v31  ;;  %8008 = vmatprep.mubr.bf16.mxu1 %v10194_v31  ;;  %8029 = vmatpush3.bf16.msra.mxu0 %v9040_v22  ;;  %v9047_v8 = vld [vmem:[%s11812_s1 + $0xc0] sm:$0xff]   ;;  %v9048_v31 = vld [vmem:[%s11812_s1 + $0x138] sm:$0xff]  }
 0x147   :  { %v10197_v18 = vadd.f32 %v7686_v36, %v952_v34  ;;  %v950_v3 = vadd.f32 %v891_v50, %v9964_v61  ;;  %v1206_v63 = vpop.f32.mrf.mxu1  ;;  %8069 = vmatpush3.bf16.msra.mxu1 %v9042_v10  ;;  %8030 = vmatprep.subr.bf16.mxu0 %v9046_v42 }
 0x148   :  { %v7647_v7 = vpop.f32.mrf.mxu0  ;;  %8070 = vmatprep.subr.bf16.mxu1 %v9047_v8 }
 0x149   :  { %v10206_v52 = vadd.f32 %v1206_v63, %v950_v3  ;;  %v953_v22 = vadd.f32 %v7647_v7, %v9969_v47  ;;  %v7687_v34 = vpop.f32.mrf.mxu1  ;;  %v10218_v3 = vld [vmem:[%s11811_s0 + $0x50] sm:$0xff]   ;;  %v9050_v47 = vld [vmem:[%s11812_s1 + $0x1b8] sm:$0xff]  }
 0x14a   :  { %v894_v36 = vpop.f32.mrf.mxu0  ;;  %8031 = vmatpush3.bf16.msra.mxu0 %v9046_v42  ;;  %v10230_v7 = vld [vmem:[%s11811_s0 + $0xb8] sm:$0xff]  }
 0x14b   :  { %v10209_v61 = vadd.f32 %v7687_v34, %v953_v22  ;;  %v951_v10 = vadd.f32 %v894_v36, %v9974_v45  ;;  %v1209_v50 = vpop.f32.mrf.mxu1  ;;  %8071 = vmatpush3.bf16.msra.mxu1 %v9047_v8  ;;  %8096 = vmatprep.subr.bf16.mxu0 %v9048_v31  ;;  %11887 = vst [vmem:[#allocation18_spill] sm:$0xff] %v10230_v7  ;;  %v10236_v8 = vld [vmem:[%s11811_s0 + $0x58] sm:$0xff]  }
 0x14c   :  { %v7650_v14 = vpop.f32.mrf.mxu0  ;;  %7969 = vmatmul.mubr.bf16.gmra.mxu0 %v10218_v3  ;;  %8136 = vmatprep.subr.bf16.mxu1 %v9050_v47 }
 0x14d   :  { %v10224_v45 = vadd.f32 %v1209_v50, %v951_v10  ;;  %v956_v63 = vadd.f32 %v7650_v14, %v9992_v4  ;;  %v7690_v42 = vpop.f32.mrf.mxu1  ;;  %8009 = vmatmul.mubr.bf16.gmra.mxu1 %v10230_v7  ;;  %7972 = vmatprep.mubr.bf16.mxu0 %v10236_v8  ;;  %v10242_v4 = vld [vmem:[%s11811_s0 + $0xc0] sm:$0xff]  }
 0x14e   :  { %v907_v22 = vpop.f32.mrf.mxu0  ;;  %11888 = vst [vmem:[#allocation19_spill] sm:$0xff] %v10242_v4  ;;  %8012 = vmatprep.mubr.bf16.mxu1 %v10242_v4 }
 0x14f   :  { %v10245_v14 = vadd.f32 %v7690_v42, %v956_v63  ;;  %v954_v34 = vadd.f32 %v907_v22, %v9995_v54  ;;  %v1222_v36 = vpop.f32.mrf.mxu1  ;;  %v10257_v63 = vld [vmem:[%s11811_s0 + $0x60] sm:$0xff]  }
 0x150   :  { %v7651_v10 = vpop.f32.mrf.mxu0 }
 0x151   :  { %v10248_v50 = vadd.f32 %v1222_v36, %v954_v34  ;;  %v957_v7 = vadd.f32 %v7651_v10, %v9997_v58  ;;  %v7691_v27 = vpop.f32.mrf.mxu1 }
 0x152   :  { %v910_v62 = vpop.f32.mrf.mxu0 }
 0x153   :  { %v10251_v55 = vadd.f32 %v7691_v27, %v957_v7  ;;  %v955_v51 = vadd.f32 %v910_v62, %v9999_v11  ;;  %v1225_v44 = vpop.f32.mrf.mxu1  ;;  %v10266_v27 = vld [vmem:[%s11811_s0 + $0xc8] sm:$0xff]   ;;  %v10273_v62 = vld [vmem:[%s11811_s0 + $0x10] sm:$0xff]  }
 0x154   :  { %v7654_v19 = vpop.f32.mrf.mxu0  ;;  %7973 = vmatmul.mubr.bf16.gmra.mxu0 %v10257_v63  ;;  %11889 = vst [vmem:[#allocation20_spill] sm:$0xff] %v10266_v27  ;;  %11890 = vst [vmem:[#allocation21_spill] sm:$0xff] %v10273_v62 }
 0x155   :  { %v10260_v54 = vadd.f32 %v1225_v44, %v955_v51  ;;  %v960_v42 = vadd.f32 %v7654_v19, %v10014_v6  ;;  %v7694_v58 = vpop.f32.mrf.mxu1  ;;  %8013 = vmatmul.mubr.bf16.gmra.mxu1 %v10266_v27  ;;  %8032 = vmatprep.mubr.bf16.mxu0 %v9839_v32 }
 0x156   :  { %v923_v11 = vpop.f32.mrf.mxu0  ;;  %8072 = vmatprep.mubr.bf16.mxu1 %v10273_v62 }
 0x157   :  { %v10276_v44 = vadd.f32 %v7694_v58, %v960_v42  ;;  %v958_v6 = vadd.f32 %v923_v11, %v10022_v26  ;;  %v1238_v19 = vpop.f32.mrf.mxu1 }
 0x158   :  { %v7655_v51 = vpop.f32.mrf.mxu0 }
 0x159   :  { %v10279_v7 = vadd.f32 %v1238_v19, %v958_v6  ;;  %v961_v22 = vadd.f32 %v7655_v51, %v10024_v15  ;;  %v7695_v34 = vpop.f32.mrf.mxu1  ;;  %v10296_v15 = vld [vmem:[%s11811_s0 + $0x18] sm:$0xff]   ;;  %v9061_v6 = vld [vmem:[%s11812_s1 + $0x128] sm:$0xff]  }
 0x15a   :  { %v926_v32 = vpop.f32.mrf.mxu0  ;;  %11891 = vst [vmem:[#allocation22_spill] sm:$0xff] %v10296_v15 }
 0x15b   :  { %v10282_v36 = vadd.f32 %v7695_v34, %v961_v22  ;;  %v959_v10 = vadd.f32 %v926_v32, %v10026_v28  ;;  %v1241_v27 = vpop.f32.mrf.mxu1 }
 0x15c   :  { %v7714_v4 = vpop.f32.mrf.mxu0  ;;  %8033 = vmatmul.mubr.bf16.vlgmr.msra.gmra.mxu0 %v9846_v33  ;;  %v9058_v33 = vld [vmem:[%s11812_s1 + $0x130] sm:$0xff]  }
 0x15d   :  { %v10286_v42 = vadd.f32 %v1241_v27, %v959_v10  ;;  %v10289_v26 = vadd.f32 %v7714_v4, %v10044_v23  ;;  %v10291_v58 = vpop.f32.mrf.mxu1  ;;  %8073 = vmatmul.mubr.bf16.vlgmr.msra.gmra.mxu1 %v10296_v15  ;;  %8097 = vmatpush3.bf16.msra.mxu0 %v9048_v31  ;;  %v10311_v27 = vld [vmem:[%s11811_s0 + $0x20] sm:$0xff]  }
 0x15e   :  { %v1473_v28 = vpop.f32.mrf.mxu0  ;;  %8137 = vmatpush3.bf16.msra.mxu1 %v9050_v47  ;;  %8098 = vmatprep.subr.bf16.mxu0 %v9058_v33  ;;  %11892 = vst [vmem:[#allocation23_spill] sm:$0xff] %v10311_v27  ;;  %v9060_v47 = vld [vmem:[%s11812_s1 + $0x1b0] sm:$0xff]  }
 0x15f   :  { %v10303_v23 = vadd.f32 %v1473_v28, %v10062_v5  ;;  %v10305_v4 = vpop.f32.mrf.mxu1  ;;  %8036 = vmatprep.mubr.bf16.mxu0 %v9858_v41  ;;  %8076 = vmatprep.mubr.bf16.mxu1 %v10311_v27  ;;  %v9079_v27 = vld [vmem:[%s11812_s1 + $0x178] sm:$0xff]  }
 0x160   :  { %v7715_v31 = vpop.f32.mrf.mxu0  ;;  %8138 = vmatprep.subr.bf16.mxu1 %v9060_v47 }
 0x161   :  { %v10318_v5 = vadd.f32 %v7715_v31, %v10068_v60  ;;  %v10320_v11 = vpop.f32.mrf.mxu1  ;;  %8099 = vmatpush3.bf16.msra.mxu0 %v9058_v33  ;;  %v9062_v60 = vld [vmem:[%s11812_s1 + $0x1a8] sm:$0xff]   ;;  %v9065_v33 = vld [vmem:[%s11812_s1 + $0x120] sm:$0xff]  }
 0x162   :  { %v1476_v41 = vpop.f32.mrf.mxu0  ;;  %8139 = vmatpush3.bf16.msra.mxu1 %v9060_v47  ;;  %8100 = vmatprep.subr.bf16.mxu0 %v9061_v6 }
 0x163   :  { %v10326_v19 = vadd.f32 %v1476_v41, %v10080_v46  ;;  %v10328_v51 = vpop.f32.mrf.mxu1  ;;  %8140 = vmatprep.subr.bf16.mxu1 %v9062_v60  ;;  %v10342_v46 = vld [vmem:[%s11811_s0 + $0x28] sm:$0xff]  }
 0x164   :  { %v7718_v22 = vpop.f32.mrf.mxu0  ;;  %8037 = vmatmul.mubr.bf16.gmra.mxu0 %v9880_v57  ;;  %11893 = vst [vmem:[#allocation24_spill] sm:$0xff] %v10342_v46  ;;  %v10349_v57 = vld [vmem:[%s11811_s0 + $0x30] sm:$0xff]  }
 0x165   :  { %v10335_v34 = vadd.f32 %v7718_v22, %v10101_v39  ;;  %v10337_v32 = vpop.f32.mrf.mxu1  ;;  %8077 = vmatmul.mubr.bf16.gmra.mxu1 %v10342_v46  ;;  %8101 = vmatpush3.bf16.msra.mxu0 %v9061_v6  ;;  %11894 = vst [vmem:[#allocation25_spill] sm:$0xff] %v10349_v57  ;;  %v9067_v6 = vld [vmem:[%s11812_s1 + $0x118] sm:$0xff]  }
 0x166   :  { %v1489_v10 = vpop.f32.mrf.mxu0  ;;  %8040 = vmatprep.mubr.bf16.mxu0 %v9889_v0  ;;  %8080 = vmatprep.mubr.bf16.mxu1 %v10349_v57  ;;  %v9066_v0 = vld [vmem:[%s11812_s1 + $0x1a0] sm:$0xff]   ;;  %v9073_v57 = vld [vmem:[%s11812_s1 + $0x108] sm:$0xff]  }
 0x167   :  { %v10353_v39 = vadd.f32 %v1489_v10, %v10110_v59  ;;  %v10355_v28 = vpop.f32.mrf.mxu1  ;;  %8141 = vmatpush3.bf16.msra.mxu1 %v9062_v60  ;;  %8102 = vmatprep.subr.bf16.mxu0 %v9065_v33 }
 0x168   :  { %v7719_v31 = vpop.f32.mrf.mxu0  ;;  %8142 = vmatprep.subr.bf16.mxu1 %v9066_v0 }
 0x169   :  { %v10364_v47 = vadd.f32 %v7719_v31, %v10116_v56  ;;  %v10366_v41 = vpop.f32.mrf.mxu1  ;;  %8103 = vmatpush3.bf16.msra.mxu0 %v9065_v33  ;;  %v9068_v56 = vld [vmem:[%s11812_s1 + $0x198] sm:$0xff]  }
 0x16a   :  { %v1492_v59 = vpop.f32.mrf.mxu0  ;;  %8104 = vmatprep.subr.bf16.mxu0 %v9067_v6 }
 0x16b   :  { %v10372_v60 = vadd.f32 %v1492_v59, %v10128_v48  ;;  %v10374_v22 = vpop.f32.mrf.mxu1  ;;  %8143 = vmatpush3.bf16.msra.mxu1 %v9066_v0  ;;  %v10388_v48 = vld [vmem:[%s11811_s0 + $0x38] sm:$0xff]   ;;  %v10395_v0 = vld [vmem:[%s11811_s0 + $0x40] sm:$0xff]  }
 0x16c   :  { %v7722_v10 = vpop.f32.mrf.mxu0  ;;  %8041 = vmatmul.mubr.bf16.gmra.mxu0 %v9911_v9  ;;  %8144 = vmatprep.subr.bf16.mxu1 %v9068_v56  ;;  %11895 = vst [vmem:[#allocation26_spill] sm:$0xff] %v10388_v48  ;;  %11896 = vst [vmem:[#allocation27_spill] sm:$0xff] %v10395_v0 }
 0x16d   :  { %v10381_v33 = vadd.f32 %v7722_v10, %v10149_v12  ;;  %v10383_v31 = vpop.f32.mrf.mxu1  ;;  %8081 = vmatmul.mubr.bf16.gmra.mxu1 %v10388_v48  ;;  %8044 = vmatprep.mubr.bf16.mxu0 %v9921_v13  ;;  %v9071_v10 = vld [vmem:[%s11812_s1 + $0x110] sm:$0xff]  }
 0x16e   :  { %v1505_v9 = vpop.f32.mrf.mxu0  ;;  %8084 = vmatprep.mubr.bf16.mxu1 %v10395_v0  ;;  %8105 = vmatpush3.bf16.msra.mxu0 %v9067_v6  ;;  %v9072_v48 = vld [vmem:[%s11812_s1 + $0x190] sm:$0xff]  }
 0x16f   :  { %v10399_v12 = vadd.f32 %v1505_v9, %v10158_v49  ;;  %v10401_v59 = vpop.f32.mrf.mxu1  ;;  %8145 = vmatpush3.bf16.msra.mxu1 %v9068_v56  ;;  %8106 = vmatprep.subr.bf16.mxu0 %v9071_v10 }
 0x170   :  { %v7723_v13 = vpop.f32.mrf.mxu0  ;;  %8146 = vmatprep.subr.bf16.mxu1 %v9072_v48 }
 0x171   :  { %v10410_v0 = vadd.f32 %v7723_v13, %v10161_v53  ;;  %v10412_v6 = vpop.f32.mrf.mxu1  ;;  %v9074_v53 = vld [vmem:[%s11812_s1 + $0x188] sm:$0xff]   ;;  %v10441_v13 = vld [vmem:[%s11811_s0 + $0x50] sm:$0xff]  }
 0x172   :  { %v1508_v49 = vpop.f32.mrf.mxu0  ;;  %8107 = vmatpush3.bf16.msra.mxu0 %v9071_v10  ;;  %11899 = vst [vmem:[#allocation30_spill] sm:$0xff] %v10441_v13 }
 0x173   :  { %v10415_v56 = vadd.f32 %v1508_v49, %v10176_v24  ;;  %v10417_v9 = vpop.f32.mrf.mxu1  ;;  %8147 = vmatpush3.bf16.msra.mxu1 %v9072_v48  ;;  %8108 = vmatprep.subr.bf16.mxu0 %v9073_v57  ;;  %v10434_v48 = vld [vmem:[%s11811_s0 + $0x48] sm:$0xff]   ;;  %v9077_v49 = vld [vmem:[%s11812_s1 + $0x100] sm:$0xff]  }
 0x174   :  { %v7726_v46 = vpop.f32.mrf.mxu0  ;;  %8045 = vmatmul.mubr.bf16.gmra.mxu0 %v9945_v20  ;;  %8148 = vmatprep.subr.bf16.mxu1 %v9074_v53  ;;  %11898 = vst [vmem:[#allocation29_spill] sm:$0xff] %v10434_v48 }
 0x175   :  { %11897 = vst [vmem:[#allocation28_spill] sm:$0xff] %v10415_v56  ;;  %v10427_v10 = vadd.f32 %v7726_v46, %v10197_v18  ;;  %v10429_v24 = vpop.f32.mrf.mxu1  ;;  %8085 = vmatmul.mubr.bf16.gmra.mxu1 %v10434_v48  ;;  %8048 = vmatprep.mubr.bf16.mxu0 %v9955_v29  ;;  %v9078_v48 = vld [vmem:[%s11812_s1 + $0x180] sm:$0xff]  }
 0x176   :  { %v1521_v20 = vpop.f32.mrf.mxu0  ;;  %8088 = vmatprep.mubr.bf16.mxu1 %v10441_v13  ;;  %8109 = vmatpush3.bf16.msra.mxu0 %v9073_v57 }
 0x177   :  { %v10445_v18 = vadd.f32 %v1521_v20, %v10206_v52  ;;  %v10447_v46 = vpop.f32.mrf.mxu1  ;;  %8149 = vmatpush3.bf16.msra.mxu1 %v9074_v53  ;;  %8110 = vmatprep.subr.bf16.mxu0 %v9077_v49 }
 0x178   :  { %v7727_v29 = vpop.f32.mrf.mxu0  ;;  %8150 = vmatprep.subr.bf16.mxu1 %v9078_v48 }
 0x179   :  { %v10456_v13 = vadd.f32 %v7727_v29, %v10209_v61  ;;  %v10458_v57 = vpop.f32.mrf.mxu1  ;;  %v9080_v61 = vld [vmem:[%s11812_s1 + $0x1f8] sm:$0xff]   ;;  %v10487_v29 = vld [vmem:[%s11811_s0 + $0x60] sm:$0xff]  }
 0x17a   :  { %v1524_v52 = vpop.f32.mrf.mxu0  ;;  %8111 = vmatpush3.bf16.msra.mxu0 %v9077_v49  ;;  %11904 = vst [vmem:[#allocation35_spill] sm:$0xff] %v10487_v29 }
 0x17b   :  { %11900 = vst [vmem:[#allocation31_spill] sm:$0xff] %v10456_v13  ;;  %v10461_v53 = vadd.f32 %v1524_v52, %v10224_v45  ;;  %v10463_v20 = vpop.f32.mrf.mxu1  ;;  %8151 = vmatpush3.bf16.msra.mxu1 %v9078_v48  ;;  %8176 = vmatprep.subr.bf16.mxu0 %v9079_v27  ;;  %v10480_v48 = vld [vmem:[%s11811_s0 + $0x58] sm:$0xff]  }
 0x17c   :  { %v7730_v15 = vpop.f32.mrf.mxu0  ;;  %8049 = vmatmul.mubr.bf16.gmra.mxu0 %v9979_v30  ;;  %8216 = vmatprep.subr.bf16.mxu1 %v9080_v61  ;;  %11903 = vst [vmem:[#allocation34_spill] sm:$0xff] %v10480_v48 }
 0x17d   :  { %11901 = vst [vmem:[#allocation32_spill] sm:$0xff] %v10461_v53  ;;  %v10473_v49 = vadd.f32 %v7730_v15, %v10245_v14  ;;  %v10475_v45 = vpop.f32.mrf.mxu1  ;;  %8089 = vmatmul.mubr.bf16.gmra.mxu1 %v10480_v48  ;;  %8052 = vmatprep.mubr.bf16.mxu0 %v9989_v1  ;;  %v10503_v1 = vld [vmem:[%s11811_s0 + $0x80] sm:$0xff]  }
 0x17e   :  { %v1537_v30 = vpop.f32.mrf.mxu0  ;;  %8092 = vmatprep.mubr.bf16.mxu1 %v10487_v29  ;;  %11907 = vst [vmem:[#allocation38_spill] sm:$0xff] %v10503_v1 }
 0x17f   :  { %11902 = vst [vmem:[#allocation33_spill] sm:$0xff] %v10473_v49  ;;  %v10491_v14 = vadd.f32 %v1537_v30, %v10248_v50  ;;  %v10493_v15 = vpop.f32.mrf.mxu1 }
 0x180   :  { %v7731_v52 = vpop.f32.mrf.mxu0 }
 0x181   :  { %11905 = vst [vmem:[#allocation36_spill] sm:$0xff] %v10491_v14  ;;  %v10496_v62 = vadd.f32 %v7731_v52, %v10251_v55  ;;  %v10498_v48 = vpop.f32.mrf.mxu1  ;;  %v10519_v52 = vld [vmem:[%s11811_s0 + $0x68] sm:$0xff]   ;;  %v8856_v14 = vld [vmem:[#allocation3 + $0x38] sm:$0xff]  }
 0x182   :  { %v1540_v49 = vpop.f32.mrf.mxu0  ;;  %11910 = vst [vmem:[#allocation41_spill] sm:$0xff] %v10519_v52 }
 0x183   :  { %11906 = vst [vmem:[#allocation37_spill] sm:$0xff] %v10496_v62  ;;  %v10506_v53 = vadd.f32 %v1540_v49, %v10260_v54  ;;  %v10508_v29 = vpop.f32.mrf.mxu1 }
 0x184   :  { %v7734_v50 = vpop.f32.mrf.mxu0  ;;  %8053 = vmatmul.mubr.bf16.gmra.mxu0 %v10004_v2 }
 0x185   :  { %11908 = vst [vmem:[#allocation39_spill] sm:$0xff] %v10506_v53  ;;  %v10512_v30 = vadd.f32 %v7734_v50, %v10276_v44  ;;  %v10514_v55 = vpop.f32.mrf.mxu1  ;;  %8093 = vmatmul.mubr.bf16.gmra.mxu1 %v10519_v52  ;;  %8112 = vmatprep.mubr.bf16.mxu0 %v10503_v1  ;;  %v10532_v50 = vld [vmem:[%s11811_s0 + $0x88] sm:$0xff]  }
 0x186   :  { %v1553_v54 = vpop.f32.mrf.mxu0  ;;  %8152 = vmatprep.mubr.bf16.mxu1 %v10011_v16 }
 0x187   :  { %11909 = vst [vmem:[#allocation40_spill] sm:$0xff] %v10512_v30  ;;  %v10525_v49 = vadd.f32 %v1553_v54, %v10279_v7  ;;  %v10527_v2 = vpop.f32.mrf.mxu1  ;;  %v10547_v7 = vld [vmem:[%s11811_s0 + $0x90] sm:$0xff]  }
 0x188   :  { %v7735_v44 = vpop.f32.mrf.mxu0  ;;  %11914 = vst [vmem:[#allocation45_spill] sm:$0xff] %v10547_v7 }
 0x189   :  { %11911 = vst [vmem:[#allocation42_spill] sm:$0xff] %v10525_v49  ;;  %v10535_v30 = vadd.f32 %v7735_v44, %v10282_v36  ;;  %v10537_v52 = vpop.f32.mrf.mxu1 }
 0x18a   :  { %v1556_v53 = vpop.f32.mrf.mxu0 }
 0x18b   :  { %11912 = vst [vmem:[#allocation43_spill] sm:$0xff] %v10535_v30  ;;  %v10540_v1 = vadd.f32 %v1556_v53, %v10286_v42  ;;  %v10542_v16 = vpop.f32.mrf.mxu1  ;;  %v9084_v42 = vld [vmem:[%s11812_s1 + $0x170] sm:$0xff]  }
 0x18c   :  { %v7794_v54 = vpop.f32.mrf.mxu0  ;;  %8113 = vmatmul.mubr.bf16.vlgmr.msra.gmra.mxu0 %v10532_v50 }
 0x18d   :  { %11913 = vst [vmem:[#allocation44_spill] sm:$0xff] %v10540_v1  ;;  %v1894_v49 = vadd.f32 %v7794_v54, %v10291_v58  ;;  %v7834_v36 = vpop.f32.mrf.mxu1  ;;  %8153 = vmatmul.mubr.bf16.vlgmr.msra.gmra.mxu1 %v10031_v37  ;;  %8177 = vmatpush3.bf16.msra.mxu0 %v9079_v27  ;;  %v10563_v37 = vld [vmem:[%s11811_s0 + $0x98] sm:$0xff]   ;;  %v9085_v27 = vld [vmem:[%s11812_s1 + $0x1f0] sm:$0xff]  }
 0x18e   :  { %v1885_v44 = vpop.f32.mrf.mxu0  ;;  %8217 = vmatpush3.bf16.msra.mxu1 %v9080_v61  ;;  %8178 = vmatprep.subr.bf16.mxu0 %v9084_v42 }
 0x18f   :  { %v10555_v53 = vadd.f32 %v7834_v36, %v1894_v49  ;;  %v1886_v1 = vadd.f32 %v1885_v44, %v10305_v4  ;;  %v2079_v30 = vpop.f32.mrf.mxu1  ;;  %8116 = vmatprep.mubr.bf16.mxu0 %v10547_v7  ;;  %8156 = vmatprep.mubr.bf16.mxu1 %v10050_v38  ;;  %v9086_v38 = vld [vmem:[%s11812_s1 + $0x168] sm:$0xff]   ;;  %v10577_v36 = vld [vmem:[%s11811_s0 + $0xa0] sm:$0xff]  }
 0x190   :  { %v7795_v58 = vpop.f32.mrf.mxu0  ;;  %8218 = vmatprep.subr.bf16.mxu1 %v9085_v27  ;;  %11915 = vst [vmem:[#allocation46_spill] sm:$0xff] %v10577_v36 }
 0x191   :  { %v10568_v61 = vadd.f32 %v2079_v30, %v1886_v1  ;;  %v1897_v4 = vadd.f32 %v7795_v58, %v10320_v11  ;;  %v7835_v49 = vpop.f32.mrf.mxu1  ;;  %8179 = vmatpush3.bf16.msra.mxu0 %v9084_v42  ;;  %v9087_v11 = vld [vmem:[%s11812_s1 + $0x1e8] sm:$0xff]  }
 0x192   :  { %v1888_v54 = vpop.f32.mrf.mxu0  ;;  %8219 = vmatpush3.bf16.msra.mxu1 %v9085_v27  ;;  %8180 = vmatprep.subr.bf16.mxu0 %v9086_v38 }
 0x193   :  { %v10579_v44 = vadd.f32 %v7835_v49, %v1897_v4  ;;  %v1889_v1 = vadd.f32 %v1888_v54, %v10328_v51  ;;  %v2082_v30 = vpop.f32.mrf.mxu1  ;;  %8220 = vmatprep.subr.bf16.mxu1 %v9087_v11 }
 0x194   :  { %v7798_v42 = vpop.f32.mrf.mxu0  ;;  %8117 = vmatmul.mubr.bf16.gmra.mxu0 %v10563_v37 }
 0x195   :  { %v10586_v58 = vadd.f32 %v2082_v30, %v1889_v1  ;;  %v1910_v27 = vadd.f32 %v7798_v42, %v10337_v32  ;;  %v7838_v7 = vpop.f32.mrf.mxu1  ;;  %8157 = vmatmul.mubr.bf16.gmra.mxu1 %v10077_v21  ;;  %8181 = vmatpush3.bf16.msra.mxu0 %v9086_v38  ;;  %v9088_v1 = vld [vmem:[%s11812_s1 + $0x160] sm:$0xff]   ;;  %v10601_v21 = vld [vmem:[%s11811_s0 + $0xa8] sm:$0xff]   ;;  %v10612_v30 = vld [vmem:[%s11811_s0 + $0xb0] sm:$0xff]  }
 0x196   :  { %v1901_v4 = vpop.f32.mrf.mxu0  ;;  %8120 = vmatprep.mubr.bf16.mxu0 %v10577_v36  ;;  %8160 = vmatprep.mubr.bf16.mxu1 %v10092_v35  ;;  %v9089_v35 = vld [vmem:[%s11812_s1 + $0x1e0] sm:$0xff]   ;;  %v9090_v42 = vld [vmem:[%s11812_s1 + $0x158] sm:$0xff]  }
 0x197   :  { %v10592_v51 = vadd.f32 %v7838_v7, %v1910_v27  ;;  %v1902_v49 = vadd.f32 %v1901_v4, %v10355_v28  ;;  %v2095_v54 = vpop.f32.mrf.mxu1  ;;  %8221 = vmatpush3.bf16.msra.mxu1 %v9087_v11  ;;  %8182 = vmatprep.subr.bf16.mxu0 %v9088_v1 }
 0x198   :  { %v7799_v32 = vpop.f32.mrf.mxu0  ;;  %8222 = vmatprep.subr.bf16.mxu1 %v9089_v35 }
 0x199   :  { %v10606_v7 = vadd.f32 %v2095_v54, %v1902_v49  ;;  %v1913_v28 = vadd.f32 %v7799_v32, %v10366_v41  ;;  %v7839_v38 = vpop.f32.mrf.mxu1  ;;  %8183 = vmatpush3.bf16.msra.mxu0 %v9088_v1  ;;  %v9091_v54 = vld [vmem:[%s11812_s1 + $0x1d8] sm:$0xff]  }
 0x19a   :  { %v1904_v11 = vpop.f32.mrf.mxu0  ;;  %8184 = vmatprep.subr.bf16.mxu0 %v9090_v42 }
 0x19b   :  { %v10617_v27 = vadd.f32 %v7839_v38, %v1913_v28  ;;  %v1905_v4 = vadd.f32 %v1904_v11, %v10374_v22  ;;  %v2098_v49 = vpop.f32.mrf.mxu1  ;;  %8223 = vmatpush3.bf16.msra.mxu1 %v9089_v35  ;;  %v9092_v11 = vld [vmem:[%s11812_s1 + $0x150] sm:$0xff]  }
 0x19c   :  { %v7802_v41 = vpop.f32.mrf.mxu0  ;;  %8121 = vmatmul.mubr.bf16.gmra.mxu0 %v10601_v21  ;;  %8224 = vmatprep.subr.bf16.mxu1 %v9091_v54 }
 0x19d   :  { %v10624_v1 = vadd.f32 %v2098_v49, %v1905_v4  ;;  %v1926_v32 = vadd.f32 %v7802_v41, %v10383_v31  ;;  %v7842_v36 = vpop.f32.mrf.mxu1  ;;  %8161 = vmatmul.mubr.bf16.gmra.mxu1 %v10122_v17  ;;  %8124 = vmatprep.mubr.bf16.mxu0 %v10612_v30  ;;  %v10639_v17 = vld [vmem:[%s11811_s0 + $0xb8] sm:$0xff]   ;;  %v10650_v4 = vld [vmem:[%s11811_s0 + $0xc0] sm:$0xff]  }
 0x19e   :  { %v1917_v22 = vpop.f32.mrf.mxu0  ;;  %8164 = vmatprep.mubr.bf16.mxu1 %v10140_v25  ;;  %8185 = vmatpush3.bf16.msra.mxu0 %v9090_v42  ;;  %v9093_v25 = vld [vmem:[%s11812_s1 + $0x1d0] sm:$0xff]   ;;  %11916 = vst [vmem:[#allocation47_spill] sm:$0xff] %v10650_v4 }
 0x19f   :  { %v10630_v35 = vadd.f32 %v7842_v36, %v1926_v32  ;;  %v1918_v28 = vadd.f32 %v1917_v22, %v10401_v59  ;;  %v2111_v38 = vpop.f32.mrf.mxu1  ;;  %8225 = vmatpush3.bf16.msra.mxu1 %v9091_v54  ;;  %8186 = vmatprep.subr.bf16.mxu0 %v9092_v11  ;;  %v9094_v22 = vld [vmem:[%s11812_s1 + $0x148] sm:$0xff]  }
 0x1a0   :  { %v7803_v31 = vpop.f32.mrf.mxu0  ;;  %8226 = vmatprep.subr.bf16.mxu1 %v9093_v25 }
 0x1a1   :  { %v10644_v36 = vadd.f32 %v2111_v38, %v1918_v28  ;;  %v1929_v59 = vadd.f32 %v7803_v31, %v10412_v6  ;;  %v7843_v42 = vpop.f32.mrf.mxu1  ;;  %v9095_v28 = vld [vmem:[%s11812_s1 + $0x1c8] sm:$0xff]  }
 0x1a2   :  { %v1920_v49 = vpop.f32.mrf.mxu0  ;;  %8187 = vmatpush3.bf16.msra.mxu0 %v9092_v11 }
 0x1a3   :  { %v10652_v41 = vadd.f32 %v7843_v42, %v1929_v59  ;;  %v1921_v54 = vadd.f32 %v1920_v49, %v10417_v9  ;;  %v2114_v32 = vpop.f32.mrf.mxu1  ;;  %8227 = vmatpush3.bf16.msra.mxu1 %v9093_v25  ;;  %8188 = vmatprep.subr.bf16.mxu0 %v9094_v22  ;;  %v9096_v49 = vld [vmem:[%s11812_s1 + $0x140] sm:$0xff]  }
 0x1a4   :  { %v7806_v6 = vpop.f32.mrf.mxu0  ;;  %8125 = vmatmul.mubr.bf16.gmra.mxu0 %v10639_v17  ;;  %8228 = vmatprep.subr.bf16.mxu1 %v9095_v28 }
 0x1a5   :  { %v10662_v38 = vadd.f32 %v2114_v32, %v1921_v54  ;;  %v1942_v11 = vadd.f32 %v7806_v6, %v10429_v24  ;;  %v7846_v9 = vpop.f32.mrf.mxu1  ;;  %8165 = vmatmul.mubr.bf16.gmra.mxu1 %v10170_v40  ;;  %8128 = vmatprep.mubr.bf16.mxu0 %v10650_v4  ;;  %v10677_v40 = vld [vmem:[%s11811_s0 + $0xc8] sm:$0xff]  }
 0x1a6   :  { %v1933_v31 = vpop.f32.mrf.mxu0  ;;  %8168 = vmatprep.mubr.bf16.mxu1 %v10188_v43  ;;  %8189 = vmatpush3.bf16.msra.mxu0 %v9094_v22  ;;  %11917 = vst [vmem:[#allocation48_spill] sm:$0xff] %v10677_v40  ;;  %v9097_v43 = vld [vmem:[%s11812_s1 + $0x1c0] sm:$0xff]   ;;  %v10688_v22 = vld [vmem:[%s11811_s0 + $0xd0] sm:$0xff]   ;;  %v11921_v4 = vld [vmem:[#allocation10_spill] sm:$0xff] }
 0x1a7   :  { %v10668_v25 = vadd.f32 %v7846_v9, %v1942_v11  ;;  %v1934_v59 = vadd.f32 %v1933_v31, %v10447_v46  ;;  %v2127_v42 = vpop.f32.mrf.mxu1  ;;  %8229 = vmatpush3.bf16.msra.mxu1 %v9095_v28  ;;  %8190 = vmatprep.subr.bf16.mxu0 %v9096_v49  ;;  %11918 = vst [vmem:[#allocation49_spill] sm:$0xff] %v10688_v22  ;;  %v9098_v31 = vld [vmem:[%s11812_s1 + $0x238] sm:$0xff]  }
 0x1a8   :  { %v7807_v24 = vpop.f32.mrf.mxu0  ;;  %8230 = vmatprep.subr.bf16.mxu1 %v9097_v43 }
 0x1a9   :  { %v10682_v54 = vadd.f32 %v2127_v42, %v1934_v59  ;;  %v1945_v46 = vadd.f32 %v7807_v24, %v10458_v57  ;;  %v7847_v32 = vpop.f32.mrf.mxu1  ;;  %v9099_v59 = vld [vmem:[%s11812_s1 + $0x278] sm:$0xff]  }
 0x1aa   :  { %v1936_v6 = vpop.f32.mrf.mxu0  ;;  %8191 = vmatpush3.bf16.msra.mxu0 %v9096_v49 }
 0x1ab   :  { %v10690_v28 = vadd.f32 %v7847_v32, %v1945_v46  ;;  %v1937_v11 = vadd.f32 %v1936_v6, %v10463_v20  ;;  %v2130_v9 = vpop.f32.mrf.mxu1  ;;  %8231 = vmatpush3.bf16.msra.mxu1 %v9097_v43  ;;  %8256 = vmatprep.subr.bf16.mxu0 %v9098_v31 }
 0x1ac   :  { %v7810_v57 = vpop.f32.mrf.mxu0  ;;  %8129 = vmatmul.mubr.bf16.gmra.mxu0 %v10677_v40  ;;  %8296 = vmatprep.subr.bf16.mxu1 %v9099_v59 }
 0x1ad   :  { %v10700_v42 = vadd.f32 %v2130_v9, %v1937_v11  ;;  %v1958_v49 = vadd.f32 %v7810_v57, %v10475_v45  ;;  %v7850_v20 = vpop.f32.mrf.mxu1  ;;  %8169 = vmatmul.mubr.bf16.gmra.mxu1 %v10218_v3  ;;  %8132 = vmatprep.mubr.bf16.mxu0 %v10688_v22  ;;  %v10712_v11 = vld [vmem:[%s11811_s0 + $0xd8] sm:$0xff]  }
 0x1ae   :  { %v1949_v24 = vpop.f32.mrf.mxu0  ;;  %8172 = vmatprep.mubr.bf16.mxu1 %v10236_v8  ;;  %11919 = vst [vmem:[#allocation50_spill] sm:$0xff] %v10712_v11 }
 0x1af   :  { %v10706_v43 = vadd.f32 %v7850_v20, %v1958_v49  ;;  %v1950_v46 = vadd.f32 %v1949_v24, %v10493_v15  ;;  %v2143_v32 = vpop.f32.mrf.mxu1 }
 0x1b0   :  { %v7811_v6 = vpop.f32.mrf.mxu0 }
 0x1b1   :  { %v10714_v45 = vadd.f32 %v2143_v32, %v1950_v46  ;;  %v1961_v3 = vadd.f32 %v7811_v6, %v10498_v48  ;;  %v7851_v9 = vpop.f32.mrf.mxu1  ;;  %v11920_v46 = vld [vmem:[#allocation9_spill] sm:$0xff]  ;;  %v9100_v32 = vld [vmem:[%s11811_s0 + $0x78] sm:$0xff]  }
 0x1b2   :  { %v1952_v57 = vpop.f32.mrf.mxu0 }
 0x1b3   :  { %v10717_v22 = vadd.f32 %v7851_v9, %v1961_v3  ;;  %v1953_v8 = vadd.f32 %v1952_v57, %v10508_v29  ;;  %v2146_v49 = vpop.f32.mrf.mxu1 }
 0x1b4   :  { %v7814_v20 = vpop.f32.mrf.mxu0  ;;  %8133 = vmatmul.mubr.bf16.gmra.mxu0 %v10712_v11 }
 0x1b5   :  { %v10721_v15 = vadd.f32 %v2146_v49, %v1953_v8  ;;  %v1974_v24 = vadd.f32 %v7814_v20, %v10514_v55  ;;  %v7854_v40 = vpop.f32.mrf.mxu1  ;;  %8173 = vmatmul.mubr.bf16.gmra.mxu1 %v10257_v63  ;;  %8192 = vmatprep.mubr.bf16.mxu0 %v11920_v46 }
 0x1b6   :  { %v1965_v48 = vpop.f32.mrf.mxu0  ;;  %8232 = vmatprep.mubr.bf16.mxu1 %v9100_v32 }
 0x1b7   :  { %v10729_v29 = vadd.f32 %v7854_v40, %v1974_v24  ;;  %v1966_v6 = vadd.f32 %v1965_v48, %v10527_v2  ;;  %v2159_v3 = vpop.f32.mrf.mxu1  ;;  %v9101_v48 = vld [vmem:[%s11811_s0 + $0x80] sm:$0xff]  }
 0x1b8   :  { %v7815_v9 = vpop.f32.mrf.mxu0 }
 0x1b9   :  { %v10732_v57 = vadd.f32 %v2159_v3, %v1966_v6  ;;  %v1977_v55 = vadd.f32 %v7815_v9, %v10537_v52  ;;  %v7855_v8 = vpop.f32.mrf.mxu1 }
 0x1ba   :  { %v1968_v63 = vpop.f32.mrf.mxu0 }
 0x1bb   :  { %v10735_v49 = vadd.f32 %v7855_v8, %v1977_v55  ;;  %v1969_v20 = vadd.f32 %v1968_v63, %v10542_v16  ;;  %v2162_v46 = vpop.f32.mrf.mxu1  ;;  %v9102_v16 = vld [vmem:[%s11812_s1 + $0x230] sm:$0xff]   ;;  %v9105_v63 = vld [vmem:[%s11812_s1 + $0x228] sm:$0xff]  }
 0x1bc   :  { %v7874_v11 = vpop.f32.mrf.mxu0  ;;  %8193 = vmatmul.mubr.bf16.vlgmr.msra.gmra.mxu0 %v11921_v4 }
 0x1bd   :  { %v10739_v40 = vadd.f32 %v2162_v46, %v1969_v20  ;;  %v2394_v2 = vadd.f32 %v7874_v11, %v10555_v53  ;;  %v7914_v24 = vpop.f32.mrf.mxu1  ;;  %8233 = vmatmul.mubr.bf16.vlgmr.msra.gmra.mxu1 %v9101_v48  ;;  %8257 = vmatpush3.bf16.msra.mxu0 %v9098_v31  ;;  %v11922_v53 = vld [vmem:[#allocation11_spill] sm:$0xff]  ;;  %v9103_v11 = vld [vmem:[%s11811_s0 + $0x88] sm:$0xff]  }
 0x1be   :  { %v2297_v52 = vpop.f32.mrf.mxu0  ;;  %8297 = vmatpush3.bf16.msra.mxu1 %v9099_v59  ;;  %8258 = vmatprep.subr.bf16.mxu0 %v9102_v16  ;;  %v9104_v59 = vld [vmem:[%s11812_s1 + $0x270] sm:$0xff]  }
 0x1bf   :  { %v10748_v32 = vadd.f32 %v7914_v24, %v2394_v2  ;;  %v2392_v4 = vadd.f32 %v2297_v52, %v10568_v61  ;;  %v2515_v6 = vpop.f32.mrf.mxu1  ;;  %8196 = vmatprep.mubr.bf16.mxu0 %v11922_v53  ;;  %8236 = vmatprep.mubr.bf16.mxu1 %v9103_v11  ;;  %v11923_v52 = vld [vmem:[#allocation12_spill] sm:$0xff] }
 0x1c0   :  { %v7875_v31 = vpop.f32.mrf.mxu0  ;;  %8298 = vmatprep.subr.bf16.mxu1 %v9104_v59 }
 0x1c1   :  { %v10760_v9 = vadd.f32 %v2515_v6, %v2392_v4  ;;  %v2395_v61 = vadd.f32 %v7875_v31, %v10579_v44  ;;  %v7915_v55 = vpop.f32.mrf.mxu1  ;;  %8259 = vmatpush3.bf16.msra.mxu0 %v9102_v16  ;;  %v9106_v44 = vld [vmem:[%s11812_s1 + $0x268] sm:$0xff]   ;;  %v11924_v31 = vld [vmem:[#allocation13_spill] sm:$0xff] }
 0x1c2   :  { %v2300_v8 = vpop.f32.mrf.mxu0  ;;  %8299 = vmatpush3.bf16.msra.mxu1 %v9104_v59  ;;  %8260 = vmatprep.subr.bf16.mxu0 %v9105_v63  ;;  %v9108_v59 = vld [vmem:[%s11811_s0 + $0x98] sm:$0xff]  }
 0x1c3   :  { %v10768_v46 = vadd.f32 %v7915_v55, %v2395_v61  ;;  %v2393_v2 = vadd.f32 %v2300_v8, %v10586_v58  ;;  %v2518_v24 = vpop.f32.mrf.mxu1  ;;  %8300 = vmatprep.subr.bf16.mxu1 %v9106_v44  ;;  %v9107_v58 = vld [vmem:[%s11811_s0 + $0x90] sm:$0xff]   ;;  %v11931_v61 = vld [vmem:[#allocation18_spill] sm:$0xff] }
 0x1c4   :  { %v7878_v48 = vpop.f32.mrf.mxu0  ;;  %8197 = vmatmul.mubr.bf16.gmra.mxu0 %v11923_v52 }
 0x1c5   :  { %v10777_v4 = vadd.f32 %v2518_v24, %v2393_v2  ;;  %v2398_v6 = vadd.f32 %v7878_v48, %v10592_v51  ;;  %v7918_v53 = vpop.f32.mrf.mxu1  ;;  %8237 = vmatmul.mubr.bf16.gmra.mxu1 %v9107_v58  ;;  %8261 = vmatpush3.bf16.msra.mxu0 %v9105_v63  ;;  %v9109_v63 = vld [vmem:[%s11812_s1 + $0x220] sm:$0xff]  }
 0x1c6   :  { %v2313_v11 = vpop.f32.mrf.mxu0  ;;  %8200 = vmatprep.mubr.bf16.mxu0 %v11924_v31  ;;  %8240 = vmatprep.mubr.bf16.mxu1 %v9108_v59  ;;  %v9110_v24 = vld [vmem:[%s11812_s1 + $0x260] sm:$0xff]  }
 0x1c7   :  { %v10789_v55 = vadd.f32 %v7918_v53, %v2398_v6  ;;  %v2396_v51 = vadd.f32 %v2313_v11, %v10606_v7  ;;  %v2531_v8 = vpop.f32.mrf.mxu1  ;;  %8301 = vmatpush3.bf16.msra.mxu1 %v9106_v44  ;;  %8262 = vmatprep.subr.bf16.mxu0 %v9109_v63  ;;  %v9111_v53 = vld [vmem:[%s11812_s1 + $0x218] sm:$0xff]  }
 0x1c8   :  { %v7879_v2 = vpop.f32.mrf.mxu0  ;;  %8302 = vmatprep.subr.bf16.mxu1 %v9110_v24 }
 0x1c9   :  { %v10800_v52 = vadd.f32 %v2531_v8, %v2396_v51  ;;  %v2399_v7 = vadd.f32 %v7879_v2, %v10617_v27  ;;  %v7919_v6 = vpop.f32.mrf.mxu1  ;;  %8263 = vmatpush3.bf16.msra.mxu0 %v9109_v63  ;;  %v11925_v8 = vld [vmem:[#allocation14_spill] sm:$0xff]  ;;  %v9112_v27 = vld [vmem:[%s11812_s1 + $0x258] sm:$0xff]  }
 0x1ca   :  { %v2316_v44 = vpop.f32.mrf.mxu0  ;;  %8264 = vmatprep.subr.bf16.mxu0 %v9111_v53 }
 0x1cb   :  { %v10808_v11 = vadd.f32 %v7919_v6, %v2399_v7  ;;  %v2397_v31 = vadd.f32 %v2316_v44, %v10624_v1  ;;  %v2534_v59 = vpop.f32.mrf.mxu1  ;;  %8303 = vmatpush3.bf16.msra.mxu1 %v9110_v24  ;;  %v9113_v1 = vld [vmem:[%s11811_s0 + $0xa0] sm:$0xff]   ;;  %v11926_v24 = vld [vmem:[#allocation15_spill] sm:$0xff] }
 0x1cc   :  { %v7882_v51 = vpop.f32.mrf.mxu0  ;;  %8201 = vmatmul.mubr.bf16.gmra.mxu0 %v11925_v8  ;;  %8304 = vmatprep.subr.bf16.mxu1 %v9112_v27  ;;  %v9114_v8 = vld [vmem:[%s11811_s0 + $0xa8] sm:$0xff]  }
 0x1cd   :  { %v10817_v2 = vadd.f32 %v2534_v59, %v2397_v31  ;;  %v2402_v7 = vadd.f32 %v7882_v51, %v10630_v35  ;;  %v7922_v6 = vpop.f32.mrf.mxu1  ;;  %8241 = vmatmul.mubr.bf16.gmra.mxu1 %v9113_v1  ;;  %8204 = vmatprep.mubr.bf16.mxu0 %v11926_v24  ;;  %v9115_v1 = vld [vmem:[%s11812_s1 + $0x210] sm:$0xff]  }
 0x1ce   :  { %v2329_v44 = vpop.f32.mrf.mxu0  ;;  %8244 = vmatprep.mubr.bf16.mxu1 %v9114_v8  ;;  %8265 = vmatpush3.bf16.msra.mxu0 %v9111_v53  ;;  %v9116_v8 = vld [vmem:[%s11812_s1 + $0x250] sm:$0xff]   ;;  %v9117_v53 = vld [vmem:[%s11812_s1 + $0x208] sm:$0xff]  }
 0x1cf   :  { %v10829_v59 = vadd.f32 %v7922_v6, %v2402_v7  ;;  %v2400_v35 = vadd.f32 %v2329_v44, %v10644_v36  ;;  %v2547_v51 = vpop.f32.mrf.mxu1  ;;  %8305 = vmatpush3.bf16.msra.mxu1 %v9112_v27  ;;  %8266 = vmatprep.subr.bf16.mxu0 %v9115_v1 }
 0x1d0   :  { %v7883_v24 = vpop.f32.mrf.mxu0  ;;  %8306 = vmatprep.subr.bf16.mxu1 %v9116_v8 }
 0x1d1   :  { %v10840_v7 = vadd.f32 %v2547_v51, %v2400_v35  ;;  %v2403_v36 = vadd.f32 %v7883_v24, %v10652_v41  ;;  %v7923_v6 = vpop.f32.mrf.mxu1  ;;  %v11927_v51 = vld [vmem:[#allocation16_spill] sm:$0xff]  ;;  %v9118_v41 = vld [vmem:[%s11812_s1 + $0x248] sm:$0xff]  }
 0x1d2   :  { %v2332_v27 = vpop.f32.mrf.mxu0  ;;  %8267 = vmatpush3.bf16.msra.mxu0 %v9115_v1 }
 0x1d3   :  { %v10845_v31 = vadd.f32 %v7923_v6, %v2403_v36  ;;  %v2401_v63 = vadd.f32 %v2332_v27, %v10662_v38  ;;  %v2550_v58 = vpop.f32.mrf.mxu1  ;;  %8307 = vmatpush3.bf16.msra.mxu1 %v9116_v8  ;;  %8268 = vmatprep.subr.bf16.mxu0 %v9117_v53  ;;  %v9119_v36 = vld [vmem:[%s11811_s0 + $0xb0] sm:$0xff]   ;;  %v11929_v6 = vld [vmem:[#allocation17_spill] sm:$0xff] }
 0x1d4   :  { %v7886_v35 = vpop.f32.mrf.mxu0  ;;  %8205 = vmatmul.mubr.bf16.gmra.mxu0 %v11927_v51  ;;  %8308 = vmatprep.subr.bf16.mxu1 %v9118_v41  ;;  %v9120_v51 = vld [vmem:[%s11811_s0 + $0xb8] sm:$0xff]  }
 0x1d5   :  { %v10857_v24 = vadd.f32 %v2550_v58, %v2401_v63  ;;  %v2406_v38 = vadd.f32 %v7886_v35, %v10668_v25  ;;  %v7926_v8 = vpop.f32.mrf.mxu1  ;;  %8245 = vmatmul.mubr.bf16.gmra.mxu1 %v9119_v36  ;;  %8208 = vmatprep.mubr.bf16.mxu0 %v11929_v6  ;;  %v9121_v36 = vld [vmem:[%s11812_s1 + $0x200] sm:$0xff]  }
 0x1d6   :  { %v2345_v27 = vpop.f32.mrf.mxu0  ;;  %8248 = vmatprep.mubr.bf16.mxu1 %v9120_v51  ;;  %8269 = vmatpush3.bf16.msra.mxu0 %v9117_v53  ;;  %v9122_v51 = vld [vmem:[%s11812_s1 + $0x240] sm:$0xff]  }
 0x1d7   :  { %11928 = vst [vmem:[#allocation9_spill] sm:$0xff] %v10857_v24  ;;  %v10869_v63 = vadd.f32 %v7926_v8, %v2406_v38  ;;  %v2404_v25 = vadd.f32 %v2345_v27, %v10682_v54  ;;  %v2563_v35 = vpop.f32.mrf.mxu1  ;;  %8309 = vmatpush3.bf16.msra.mxu1 %v9118_v41  ;;  %8270 = vmatprep.subr.bf16.mxu0 %v9121_v36 }
 0x1d8   :  { %v7887_v6 = vpop.f32.mrf.mxu0  ;;  %8310 = vmatprep.subr.bf16.mxu1 %v9122_v51 }
 0x1d9   :  { %v10880_v38 = vadd.f32 %v2563_v35, %v2404_v25  ;;  %v2407_v54 = vadd.f32 %v7887_v6, %v10690_v28  ;;  %v7927_v8 = vpop.f32.mrf.mxu1  ;;  %v9123_v6 = vld [vmem:[%s11811_s0 + $0xc0] sm:$0xff]  }
 0x1da   :  { %v2348_v41 = vpop.f32.mrf.mxu0  ;;  %8271 = vmatpush3.bf16.msra.mxu0 %v9121_v36 }
 0x1db   :  { %v10885_v58 = vadd.f32 %v7927_v8, %v2407_v54  ;;  %v2405_v1 = vadd.f32 %v2348_v41, %v10700_v42  ;;  %v2566_v44 = vpop.f32.mrf.mxu1  ;;  %8311 = vmatpush3.bf16.msra.mxu1 %v9122_v51  ;;  %v11933_v54 = vld [vmem:[#allocation19_spill] sm:$0xff] }
 0x1dc   :  { %v7890_v48 = vpop.f32.mrf.mxu0  ;;  %8209 = vmatmul.mubr.bf16.gmra.mxu0 %v11931_v61  ;;  %v9124_v61 = vld [vmem:[%s11811_s0 + $0xc8] sm:$0xff]   ;;  %8368 = vmatprep.subr.bf16.mxu1 %v8856_v14 }
 0x1dd   :  { %11930 = vst [vmem:[#allocation10_spill] sm:$0xff] %v10885_v58  ;;  %v10891_v35 = vadd.f32 %v2566_v44, %v2405_v1  ;;  %v2410_v28 = vadd.f32 %v7890_v48, %v10706_v43  ;;  %v7930_v36 = vpop.f32.mrf.mxu1  ;;  %8249 = vmatmul.mubr.bf16.gmra.mxu1 %v9123_v6  ;;  %8212 = vmatprep.mubr.bf16.mxu0 %v11933_v54 }
 0x1de   :  { %v2361_v42 = vpop.f32.mrf.mxu0  ;;  %8252 = vmatprep.mubr.bf16.mxu1 %v9124_v61 }
 0x1df   :  { %11932 = vst [vmem:[#allocation11_spill] sm:$0xff] %v10891_v35  ;;  %v10903_v1 = vadd.f32 %v7930_v36, %v2410_v28  ;;  %v2408_v43 = vadd.f32 %v2361_v42, %v10714_v45  ;;  %v2579_v48 = vpop.f32.mrf.mxu1  ;;  %v11939_v42 = vld [vmem:[#allocation20_spill] sm:$0xff] }
 0x1e0   :  { %v7891_v8 = vpop.f32.mrf.mxu0 }
 0x1e1   :  { %11935 = vst [vmem:[#allocation12_spill] sm:$0xff] %v10903_v1  ;;  %v10908_v25 = vadd.f32 %v2579_v48, %v2408_v43  ;;  %v2411_v54 = vadd.f32 %v7891_v8, %v10717_v22  ;;  %v7931_v27 = vpop.f32.mrf.mxu1  ;;  %v9125_v8 = vld [vmem:[%s11811_s0 + $0xd0] sm:$0xff]  }
 0x1e2   :  { %v2364_v53 = vpop.f32.mrf.mxu0 }
 0x1e3   :  { %11937 = vst [vmem:[#allocation13_spill] sm:$0xff] %v10908_v25  ;;  %v10913_v16 = vadd.f32 %v7931_v27, %v2411_v54  ;;  %v2409_v28 = vadd.f32 %v2364_v53, %v10721_v15  ;;  %v2582_v36 = vpop.f32.mrf.mxu1  ;;  %v11941_v27 = vld [vmem:[#allocation21_spill] sm:$0xff]  ;;  %v11942_v53 = vld [vmem:[#allocation38_spill] sm:$0xff]  ;;  %v8855_v25 = vld [vmem:[#allocation3 + $0x70] sm:$0xff]  }
 0x1e4   :  { %v7894_v45 = vpop.f32.mrf.mxu0  ;;  %8213 = vmatmul.mubr.bf16.gmra.mxu0 %v11939_v42 }
 0x1e5   :  { %11938 = vst [vmem:[#allocation14_spill] sm:$0xff] %v10913_v16  ;;  %v10919_v43 = vadd.f32 %v2582_v36, %v2409_v28  ;;  %v2414_v22 = vadd.f32 %v7894_v45, %v10729_v29  ;;  %v7934_v48 = vpop.f32.mrf.mxu1  ;;  %8253 = vmatmul.mubr.bf16.gmra.mxu1 %v9125_v8  ;;  %8272 = vmatprep.mubr.bf16.mxu0 %v11941_v27 }
 0x1e6   :  { %v2377_v15 = vpop.f32.mrf.mxu0  ;;  %8312 = vmatprep.mubr.bf16.mxu1 %v11942_v53 }
 0x1e7   :  { %11940 = vst [vmem:[#allocation15_spill] sm:$0xff] %v10919_v43  ;;  %v10929_v61 = vadd.f32 %v7934_v48, %v2414_v22  ;;  %v2412_v28 = vadd.f32 %v2377_v15, %v10732_v57  ;;  %v2595_v36 = vpop.f32.mrf.mxu1  ;;  %v11949_v15 = vld [vmem:[#allocation22_spill] sm:$0xff] }
 0x1e8   :  { %v7895_v29 = vpop.f32.mrf.mxu0 }
 0x1e9   :  { %11944 = vst [vmem:[#allocation16_spill] sm:$0xff] %v10929_v61  ;;  %v10934_v6 = vadd.f32 %v2595_v36, %v2412_v28  ;;  %v2415_v8 = vadd.f32 %v7895_v29, %v10735_v49  ;;  %v7935_v27 = vpop.f32.mrf.mxu1  ;;  %v11952_v49 = vld [vmem:[#allocation23_spill] sm:$0xff] }
 0x1ea   :  { %v2380_v20 = vpop.f32.mrf.mxu0 }
 0x1eb   :  { %11946 = vst [vmem:[#allocation17_spill] sm:$0xff] %v10934_v6  ;;  %v10939_v35 = vadd.f32 %v7935_v27, %v2415_v8  ;;  %v2413_v22 = vadd.f32 %v2380_v20, %v10739_v40  ;;  %v2598_v48 = vpop.f32.mrf.mxu1  ;;  %v11953_v27 = vld [vmem:[#allocation45_spill] sm:$0xff] }
 0x1ec   :  { %v7954_v57 = vpop.f32.mrf.mxu0  ;;  %8273 = vmatmul.mubr.bf16.vlgmr.msra.gmra.mxu0 %v11949_v15 }
 0x1ed   :  { %11948 = vst [vmem:[#allocation18_spill] sm:$0xff] %v10939_v35  ;;  %v10945_v28 = vadd.f32 %v2598_v48, %v2413_v22  ;;  %v7994_v36 = vpop.f32.mrf.mxu1  ;;  %8313 = vmatmul.mubr.bf16.vlgmr.msra.gmra.mxu1 %v10532_v50  ;;  %8276 = vmatprep.mubr.bf16.mxu0 %v11952_v49 }
 0x1ee   :  { %v10949_v29 = vadd.f32 %v7994_v36, %v7954_v57  ;;  %v2692_v8 = vpop.f32.mrf.mxu0  ;;  %8316 = vmatprep.mubr.bf16.mxu1 %v11953_v27  ;;  %v11955_v57 = vld [vmem:[#allocation24_spill] sm:$0xff]  ;;  %v11956_v27 = vld [vmem:[#allocation25_spill] sm:$0xff]  ;;  %8369 = vmatpush3.bf16.msra.mxu1 %v8856_v14  ;;  %v8859_v14 = vld [vmem:[#allocation3 + $0x28] sm:$0xff]  }
 0x1ef   :  { %11951 = vst [vmem:[#allocation19_spill] sm:$0xff] %v10945_v28  ;;  %v2821_v3 = vpop.f32.mrf.mxu1 }
 0x1f0   :  { %v10954_v15 = vadd.f32 %v2821_v3, %v2692_v8  ;;  %v7955_v43 = vpop.f32.mrf.mxu0  ;;  %v11957_v8 = vld [vmem:[#allocation46_spill] sm:$0xff] }
 0x1f1   :  { %v7995_v44 = vpop.f32.mrf.mxu1 }
 0x1f2   :  { %v10956_v22 = vadd.f32 %v7995_v44, %v7955_v43  ;;  %v2695_v48 = vpop.f32.mrf.mxu0 }
 0x1f3   :  { %v2824_v54 = vpop.f32.mrf.mxu1 }
 0x1f4   :  { %v10958_v50 = vadd.f32 %v2824_v54, %v2695_v48  ;;  %v7958_v49 = vpop.f32.mrf.mxu0  ;;  %8277 = vmatmul.mubr.bf16.gmra.mxu0 %v11955_v57 }
 0x1f5   :  { %v7998_v36 = vpop.f32.mrf.mxu1  ;;  %8317 = vmatmul.mubr.bf16.gmra.mxu1 %v10563_v37  ;;  %8280 = vmatprep.mubr.bf16.mxu0 %v11956_v27  ;;  %v11958_v37 = vld [vmem:[#allocation26_spill] sm:$0xff] }
 0x1f6   :  { %v10963_v20 = vadd.f32 %v7998_v36, %v7958_v49  ;;  %v2708_v3 = vpop.f32.mrf.mxu0  ;;  %8320 = vmatprep.mubr.bf16.mxu1 %v11957_v8  ;;  %v11959_v49 = vld [vmem:[#allocation27_spill] sm:$0xff] }
 0x1f7   :  { %v2837_v28 = vpop.f32.mrf.mxu1 }
 0x1f8   :  { %v10966_v44 = vadd.f32 %v2837_v28, %v2708_v3  ;;  %v7959_v43 = vpop.f32.mrf.mxu0 }
 0x1f9   :  { %v7999_v40 = vpop.f32.mrf.mxu1 }
 0x1fa   :  { %v10968_v54 = vadd.f32 %v7999_v40, %v7959_v43  ;;  %v2711_v48 = vpop.f32.mrf.mxu0 }
 0x1fb   :  { %v2840_v51 = vpop.f32.mrf.mxu1 }
 0x1fc   :  { %v10970_v57 = vadd.f32 %v2840_v51, %v2711_v48  ;;  %v7962_v24 = vpop.f32.mrf.mxu0  ;;  %8281 = vmatmul.mubr.bf16.gmra.mxu0 %v11958_v37 }
 0x1fd   :  { %v8002_v27 = vpop.f32.mrf.mxu1  ;;  %8321 = vmatmul.mubr.bf16.gmra.mxu1 %v10601_v21  ;;  %8284 = vmatprep.mubr.bf16.mxu0 %v11959_v49  ;;  %v11962_v21 = vld [vmem:[#allocation29_spill] sm:$0xff] }
 0x1fe   :  { %v10975_v36 = vadd.f32 %v8002_v27, %v7962_v24  ;;  %v2724_v28 = vpop.f32.mrf.mxu0  ;;  %8324 = vmatprep.mubr.bf16.mxu1 %v10612_v30  ;;  %v11963_v24 = vld [vmem:[#allocation30_spill] sm:$0xff] }
 0x1ff   :  { %v2853_v3 = vpop.f32.mrf.mxu1 }
 0x200   :  { %v10978_v40 = vadd.f32 %v2853_v3, %v2724_v28  ;;  %v7963_v8 = vpop.f32.mrf.mxu0  ;;  %v11964_v28 = vld [vmem:[#allocation47_spill] sm:$0xff] }
 0x201   :  { %v8003_v43 = vpop.f32.mrf.mxu1 }
 0x202   :  { %v10980_v51 = vadd.f32 %v8003_v43, %v7963_v8  ;;  %v10982_v48 = vpop.f32.mrf.mxu0 }
 0x203   :  { %11960 = vst [vmem:[#allocation20_spill] sm:$0xff] %v10982_v48  ;;  %v10984_v37 = vpop.f32.mrf.mxu1 }
 0x204   :  { %11961 = vst [vmem:[#allocation21_spill] sm:$0xff] %v10984_v37  ;;  %v7966_v56 = vpop.f32.mrf.mxu0  ;;  %8285 = vmatmul.mubr.bf16.gmra.mxu0 %v11962_v21 }
 0x205   :  { %v8006_v49 = vpop.f32.mrf.mxu1  ;;  %8325 = vmatmul.mubr.bf16.gmra.mxu1 %v10639_v17  ;;  %8288 = vmatprep.mubr.bf16.mxu0 %v11963_v24  ;;  %v11967_v17 = vld [vmem:[#allocation34_spill] sm:$0xff] }
 0x206   :  { %v10989_v30 = vadd.f32 %v8006_v49, %v7966_v56  ;;  %v2740_v27 = vpop.f32.mrf.mxu0  ;;  %8328 = vmatprep.mubr.bf16.mxu1 %v11964_v28  ;;  %v11968_v56 = vld [vmem:[#allocation48_spill] sm:$0xff]  ;;  %v11969_v49 = vld [vmem:[#allocation35_spill] sm:$0xff] }
 0x207   :  { %v2869_v3 = vpop.f32.mrf.mxu1 }
 0x208   :  { %v10992_v8 = vadd.f32 %v2869_v3, %v2740_v27  ;;  %v7967_v43 = vpop.f32.mrf.mxu0  ;;  %v11970_v3 = vld [vmem:[#allocation49_spill] sm:$0xff] }
 0x209   :  { %v8007_v48 = vpop.f32.mrf.mxu1 }
 0x20a   :  { %v10994_v35 = vadd.f32 %v8007_v48, %v7967_v43  ;;  %v10996_v37 = vpop.f32.mrf.mxu0 }
 0x20b   :  { %11965 = vst [vmem:[#allocation38_spill] sm:$0xff] %v10996_v37  ;;  %v10998_v21 = vpop.f32.mrf.mxu1 }
 0x20c   :  { %11966 = vst [vmem:[#allocation22_spill] sm:$0xff] %v10998_v21  ;;  %v7970_v42 = vpop.f32.mrf.mxu0  ;;  %8289 = vmatmul.mubr.bf16.gmra.mxu0 %v11967_v17 }
 0x20d   :  { %v8010_v24 = vpop.f32.mrf.mxu1  ;;  %8329 = vmatmul.mubr.bf16.gmra.mxu1 %v11968_v56  ;;  %8292 = vmatprep.mubr.bf16.mxu0 %v11969_v49  ;;  %v11973_v56 = vld [vmem:[#allocation41_spill] sm:$0xff] }
 0x20e   :  { %v11003_v28 = vadd.f32 %v8010_v24, %v7970_v42  ;;  %v2756_v27 = vpop.f32.mrf.mxu0  ;;  %8332 = vmatprep.mubr.bf16.mxu1 %v11970_v3  ;;  %v11974_v42 = vld [vmem:[#allocation50_spill] sm:$0xff] }
 0x20f   :  { %v2885_v6 = vpop.f32.mrf.mxu1 }
 0x210   :  { %v11006_v48 = vadd.f32 %v2885_v6, %v2756_v27  ;;  %v7971_v43 = vpop.f32.mrf.mxu0 }
 0x211   :  { %v8011_v37 = vpop.f32.mrf.mxu1 }
 0x212   :  { %v11008_v53 = vadd.f32 %v8011_v37, %v7971_v43  ;;  %v11010_v21 = vpop.f32.mrf.mxu0  ;;  %v8854_v37 = vld [vmem:[#allocation3 + $0x78] sm:$0xff]  }
 0x213   :  { %11971 = vst [vmem:[#allocation23_spill] sm:$0xff] %v11010_v21  ;;  %v11012_v17 = vpop.f32.mrf.mxu1  ;;  %8336 = vmatprep.subr.bf16.mxu0 %v8854_v37 }
 0x214   :  { %11972 = vst [vmem:[#allocation45_spill] sm:$0xff] %v11012_v17  ;;  %v7974_v61 = vpop.f32.mrf.mxu0  ;;  %8293 = vmatmul.mubr.bf16.gmra.mxu0 %v11973_v56 }
 0x215   :  { %v8014_v49 = vpop.f32.mrf.mxu1  ;;  %8333 = vmatmul.mubr.bf16.gmra.mxu1 %v11974_v42  ;;  %8337 = vmatpush3.bf16.msra.mxu0 %v8854_v37 }
 0x216   :  { %v11016_v24 = vadd.f32 %v8014_v49, %v7974_v61  ;;  %v2772_v3 = vpop.f32.mrf.mxu0  ;;  %8338 = vmatprep.subr.bf16.mxu0 %v8855_v25 }
 0x217   :  { %v2901_v45 = vpop.f32.mrf.mxu1 }
 0x218   :  { %v11018_v6 = vadd.f32 %v2901_v45, %v2772_v3  ;;  %v7975_v27 = vpop.f32.mrf.mxu0 }
 0x219   :  { %v8015_v16 = vpop.f32.mrf.mxu1  ;;  %8339 = vmatpush3.bf16.msra.mxu0 %v8855_v25 }
 0x21a   :  { %v11020_v43 = vadd.f32 %v8015_v16, %v7975_v27  ;;  %v11022_v21 = vpop.f32.mrf.mxu0 }
 0x21b   :  { %11975 = vst [vmem:[#allocation24_spill] sm:$0xff] %v11022_v21  ;;  %v11024_v17 = vpop.f32.mrf.mxu1 }
 0x21c   :  { %11976 = vst [vmem:[#allocation25_spill] sm:$0xff] %v11024_v17  ;;  %v8034_v56 = vpop.f32.mrf.mxu0 }
 0x21d   :  { %v3047_v42 = vadd.f32 %v8034_v56, %v10949_v29  ;;  %v8074_v61 = vpop.f32.mrf.mxu1 }
 0x21e   :  { %v2950_v49 = vpop.f32.mrf.mxu0 }
 0x21f   :  { %v11027_v62 = vadd.f32 %v8074_v61, %v3047_v42  ;;  %v3045_v45 = vadd.f32 %v2950_v49, %v10954_v15  ;;  %v3103_v3 = vpop.f32.mrf.mxu1  ;;  %v8858_v15 = vld [vmem:[#allocation3 + $0x30] sm:$0xff]  }
 0x220   :  { %v8035_v16 = vpop.f32.mrf.mxu0  ;;  %8370 = vmatprep.subr.bf16.mxu1 %v8858_v15 }
 0x221   :  { %v11030_v27 = vadd.f32 %v3103_v3, %v3045_v45  ;;  %v3048_v21 = vadd.f32 %v8035_v16, %v10956_v22  ;;  %v8075_v17 = vpop.f32.mrf.mxu1  ;;  %v8857_v45 = vld [vmem:[#allocation3 + $0x68] sm:$0xff]   ;;  %8371 = vmatpush3.bf16.msra.mxu1 %v8858_v15 }
 0x222   :  { %v11033_v37 = vpop.f32.mrf.mxu0  ;;  %8340 = vmatprep.subr.bf16.mxu0 %v8857_v45  ;;  %8372 = vmatprep.subr.bf16.mxu1 %v8859_v14 }
 0x223   :  { %v11035_v29 = vadd.f32 %v8075_v17, %v3048_v21  ;;  %v11037_v56 = vpop.f32.mrf.mxu1  ;;  %8341 = vmatpush3.bf16.msra.mxu0 %v8857_v45 }
 0x224   :  { %v8038_v42 = vpop.f32.mrf.mxu0 }
 0x225   :  { %v3051_v61 = vadd.f32 %v8038_v42, %v10963_v20  ;;  %v8078_v49 = vpop.f32.mrf.mxu1  ;;  %8373 = vmatpush3.bf16.msra.mxu1 %v8859_v14 }
 0x226   :  { %v2966_v3 = vpop.f32.mrf.mxu0 }
 0x227   :  { %v11040_v22 = vadd.f32 %v8078_v49, %v3051_v61  ;;  %v3049_v16 = vadd.f32 %v2966_v3, %v10966_v44  ;;  %v3119_v1 = vpop.f32.mrf.mxu1  ;;  %v8860_v61 = vld [vmem:[#allocation3 + $0x60] sm:$0xff]  }
 0x228   :  { %v8039_v25 = vpop.f32.mrf.mxu0  ;;  %v8861_v44 = vld [vmem:[#allocation3 + $0x20] sm:$0xff]   ;;  %8342 = vmatprep.subr.bf16.mxu0 %v8860_v61 }
 0x229   :  { %v11043_v21 = vadd.f32 %v3119_v1, %v3049_v16  ;;  %v3052_v17 = vadd.f32 %v8039_v25, %v10968_v54  ;;  %v8079_v41 = vpop.f32.mrf.mxu1  ;;  %8374 = vmatprep.subr.bf16.mxu1 %v8861_v44  ;;  %8343 = vmatpush3.bf16.msra.mxu0 %v8860_v61 }
 0x22a   :  { %v11046_v20 = vpop.f32.mrf.mxu0  ;;  %8375 = vmatpush3.bf16.msra.mxu1 %v8861_v44 }
 0x22b   :  { %v11048_v42 = vadd.f32 %v8079_v41, %v3052_v17  ;;  %v11050_v15 = vpop.f32.mrf.mxu1  ;;  %v8863_v41 = vld [vmem:[#allocation3 + $0x18] sm:$0xff]  }
 0x22c   :  { %v8042_v49 = vpop.f32.mrf.mxu0  ;;  %8376 = vmatprep.subr.bf16.mxu1 %v8863_v41 }
 0x22d   :  { %v3055_v3 = vadd.f32 %v8042_v49, %v10975_v36  ;;  %v8082_v58 = vpop.f32.mrf.mxu1 }
 0x22e   :  { %v2982_v1 = vpop.f32.mrf.mxu0  ;;  %8377 = vmatpush3.bf16.msra.mxu1 %v8863_v41 }
 0x22f   :  { %v11053_v54 = vadd.f32 %v8082_v58, %v3055_v3  ;;  %v3053_v45 = vadd.f32 %v2982_v1, %v10978_v40  ;;  %v3135_v16 = vpop.f32.mrf.mxu1  ;;  %v8864_v58 = vld [vmem:[#allocation3 + $0x10] sm:$0xff]  }
 0x230   :  { %v8043_v14 = vpop.f32.mrf.mxu0  ;;  %8378 = vmatprep.subr.bf16.mxu1 %v8864_v58 }
 0x231   :  { %v11056_v25 = vadd.f32 %v3135_v16, %v3053_v45  ;;  %v3056_v17 = vadd.f32 %v8043_v14, %v10980_v51  ;;  %v8083_v13 = vpop.f32.mrf.mxu1  ;;  %v8862_v45 = vld [vmem:[#allocation3 + $0x58] sm:$0xff]  }
 0x232   :  { %v11059_v36 = vpop.f32.mrf.mxu0  ;;  %8379 = vmatpush3.bf16.msra.mxu1 %v8864_v58  ;;  %8344 = vmatprep.subr.bf16.mxu0 %v8862_v45 }
 0x233   :  { %11977 = vst [vmem:[#allocation46_spill] sm:$0xff] %v11059_v36  ;;  %v11061_v49 = vadd.f32 %v8083_v13, %v3056_v17  ;;  %v11063_v61 = vpop.f32.mrf.mxu1  ;;  %v8866_v36 = vld [vmem:[#allocation3 + $0x8] sm:$0xff]   ;;  %8345 = vmatpush3.bf16.msra.mxu0 %v8862_v45 }
 0x234   :  { %11978 = vst [vmem:[#allocation26_spill] sm:$0xff] %v11063_v61  ;;  %v8046_v44 = vpop.f32.mrf.mxu0  ;;  %8380 = vmatprep.subr.bf16.mxu1 %v8866_v36 }
 0x235   :  { %v3059_v40 = vadd.f32 %v8046_v44, %v10989_v30  ;;  %v8086_v3 = vpop.f32.mrf.mxu1  ;;  %v8865_v44 = vld [vmem:[#allocation3 + $0x50] sm:$0xff]  }
 0x236   :  { %v2998_v1 = vpop.f32.mrf.mxu0  ;;  %8381 = vmatpush3.bf16.msra.mxu1 %v8866_v36  ;;  %8346 = vmatprep.subr.bf16.mxu0 %v8865_v44 }
 0x237   :  { %v11066_v16 = vadd.f32 %v8086_v3, %v3059_v40  ;;  %v3057_v51 = vadd.f32 %v2998_v1, %v10992_v8  ;;  %v3151_v14 = vpop.f32.mrf.mxu1  ;;  %v8868_v8 = vld [vmem:[#allocation3] sm:$0xff]   ;;  %8347 = vmatpush3.bf16.msra.mxu0 %v8865_v44 }
 0x238   :  { %v8047_v41 = vpop.f32.mrf.mxu0  ;;  %8382 = vmatprep.subr.bf16.mxu1 %v8868_v8 }
 0x239   :  { %v11069_v13 = vadd.f32 %v3151_v14, %v3057_v51  ;;  %v3060_v17 = vadd.f32 %v8047_v41, %v10994_v35  ;;  %v8087_v61 = vpop.f32.mrf.mxu1  ;;  %v8867_v14 = vld [vmem:[#allocation3 + $0x48] sm:$0xff]  }
 0x23a   :  { %v11072_v30 = vpop.f32.mrf.mxu0  ;;  %8383 = vmatpush3.bf16.msra.mxu1 %v8868_v8  ;;  %8348 = vmatprep.subr.bf16.mxu0 %v8867_v14  ;;  %v8870_v8 = vld [vmem:[#allocation3 + $0x40] sm:$0xff]  }
 0x23b   :  { %11979 = vst [vmem:[#allocation27_spill] sm:$0xff] %v11072_v30  ;;  %v11074_v58 = vadd.f32 %v8087_v61, %v3060_v17  ;;  %v11076_v40 = vpop.f32.mrf.mxu1  ;;  %v11082_v61 = vld [vmem:[#allocation3 + $0xf8] sm:$0xff]   ;;  %8349 = vmatpush3.bf16.msra.mxu0 %v8867_v14 }
 0x23c   :  { %11980 = vst [vmem:[#allocation29_spill] sm:$0xff] %v11076_v40  ;;  %v8050_v3 = vpop.f32.mrf.mxu0  ;;  %11981 = vst [vmem:[#allocation30_spill] sm:$0xff] %v11082_v61  ;;  %8432 = vmatprep.subr.bf16.mxu1 %v11082_v61  ;;  %8350 = vmatprep.subr.bf16.mxu0 %v8870_v8 }
 0x23d   :  { %v3063_v1 = vadd.f32 %v8050_v3, %v11003_v28  ;;  %v8090_v51 = vpop.f32.mrf.mxu1 }
 0x23e   :  { %v3014_v35 = vpop.f32.mrf.mxu0 }
 0x23f   :  { %v11079_v45 = vadd.f32 %v8090_v51, %v3063_v1  ;;  %v3061_v41 = vadd.f32 %v3014_v35, %v11006_v48  ;;  %v3167_v36 = vpop.f32.mrf.mxu1  ;;  %8351 = vmatpush3.bf16.msra.mxu0 %v8870_v8 }
 0x240   :  { %v8051_v17 = vpop.f32.mrf.mxu0 }
 0x241   :  { %v11084_v40 = vadd.f32 %v3167_v36, %v3061_v41  ;;  %v3064_v30 = vadd.f32 %v8051_v17, %v11008_v53  ;;  %v8091_v28 = vpop.f32.mrf.mxu1  ;;  %v11095_v36 = vld [vmem:[#allocation3 + $0xb8] sm:$0xff]  }
 0x242   :  { %v11088_v44 = vpop.f32.mrf.mxu0  ;;  %11984 = vst [vmem:[#allocation48_spill] sm:$0xff] %v11095_v36  ;;  %8400 = vmatprep.subr.bf16.mxu0 %v11095_v36 }
 0x243   :  { %11982 = vst [vmem:[#allocation47_spill] sm:$0xff] %v11088_v44  ;;  %v11090_v3 = vadd.f32 %v8091_v28, %v3064_v30  ;;  %v11092_v1 = vpop.f32.mrf.mxu1 }
 0x244   :  { %11983 = vst [vmem:[#allocation34_spill] sm:$0xff] %v11092_v1  ;;  %v8054_v48 = vpop.f32.mrf.mxu0 }
 0x245   :  { %v3067_v51 = vadd.f32 %v8054_v48, %v11016_v24  ;;  %v8094_v35 = vpop.f32.mrf.mxu1 }
 0x246   :  { %v3030_v41 = vpop.f32.mrf.mxu0 }
 0x247   :  { %v11097_v53 = vadd.f32 %v8094_v35, %v3067_v51  ;;  %v3065_v14 = vadd.f32 %v3030_v41, %v11018_v6  ;;  %v3183_v17 = vpop.f32.mrf.mxu1  ;;  %v3046_v51 = vadd.f32 %v11033_v37, %v10958_v50  ;;  %v11988_v50 = vmax.f32 %v10303_v23, %v10760_v9 }
 0x248   :  { %v8055_v44 = vpop.f32.mrf.mxu0  ;;  %v11990_v23 = vmax.f32 %v10326_v19, %v10777_v4  ;;  %v11992_v19 = vmax.f32 %v10353_v39, %v10800_v52 }
 0x249   :  { %v11101_v30 = vadd.f32 %v3183_v17, %v3065_v14  ;;  %v3068_v28 = vadd.f32 %v8055_v44, %v11020_v43  ;;  %v8095_v1 = vpop.f32.mrf.mxu1  ;;  %v11987_v14 = vmax.f32 %v10289_v26, %v10748_v32  ;;  %v11989_v26 = vmax.f32 %v10318_v5, %v10768_v46 }
 0x24a   :  { %v11104_v61 = vpop.f32.mrf.mxu0  ;;  %v11991_v5 = vmax.f32 %v10335_v34, %v10789_v55  ;;  %v11993_v34 = vmax.f32 %v10364_v47, %v10808_v11 }
 0x24b   :  { %11985 = vst [vmem:[#allocation35_spill] sm:$0xff] %v11104_v61  ;;  %v11106_v24 = vadd.f32 %v8095_v1, %v3068_v28  ;;  %v11108_v8 = vpop.f32.mrf.mxu1  ;;  %v3199_v28 = vadd.f32 %v11037_v56, %v3046_v51  ;;  %v3050_v56 = vadd.f32 %v11046_v20, %v10970_v57 }
 0x24c   :  { %11986 = vst [vmem:[#allocation49_spill] sm:$0xff] %v11108_v8  ;;  %v8114_v48 = vpop.f32.mrf.mxu0 }
 0x24d   :  { %v3450_v6 = vadd.f32 %v8114_v48, %v11027_v62  ;;  %v11113_v35 = vpop.f32.mrf.mxu1  ;;  %v3203_v20 = vadd.f32 %v11050_v15, %v3050_v56  ;;  %v11994_v15 = vmax.f32 %v10372_v60, %v10817_v2  ;;  %v11998_v60 = vmax.f32 %v10399_v12, %v10840_v7 }
 0x24e   :  { %v3353_v41 = vpop.f32.mrf.mxu0  ;;  %v12003_v7 = vmax.f32 %v10427_v10, %v10869_v63  ;;  %v12011_v10 = vld [vmem:[#allocation10_spill] sm:$0xff] }
 0x24f   :  { %v11118_v43 = vmax.f32 %v11987_v14, %v3450_v6  ;;  %v3448_v44 = vadd.f32 %v3353_v41, %v11030_v27  ;;  %v11121_v1 = vpop.f32.mrf.mxu1 }
 0x250   :  { %v8115_v17 = vpop.f32.mrf.mxu0 }
 0x251   :  { %v11127_v37 = vmax.f32 %v11988_v50, %v3448_v44  ;;  %v3451_v62 = vadd.f32 %v8115_v17, %v11035_v29  ;;  %v11130_v48 = vpop.f32.mrf.mxu1 }
 0x252   :  { %v3356_v8 = vpop.f32.mrf.mxu0 }
 0x253   :  { %v11135_v32 = vmax.f32 %v11989_v26, %v3451_v62  ;;  %v3449_v27 = vadd.f32 %v3356_v8, %v3199_v28  ;;  %v11137_v6 = vpop.f32.mrf.mxu1 }
 0x254   :  { %v8118_v41 = vpop.f32.mrf.mxu0 }
 0x255   :  { %v11144_v9 = vmax.f32 %v11990_v23, %v3449_v27  ;;  %v3454_v29 = vadd.f32 %v8118_v41, %v11040_v22  ;;  %v11147_v51 = vpop.f32.mrf.mxu1  ;;  %v11996_v27 = vmax.f32 %v10381_v33, %v10829_v59  ;;  %v12001_v33 = vmax.f32 %v10410_v0, %v10845_v31 }
 0x256   :  { %v3369_v14 = vpop.f32.mrf.mxu0  ;;  %v12006_v31 = vmax.f32 %v10445_v18, %v10880_v38  ;;  %v12015_v38 = vld [vmem:[#allocation33_spill] sm:$0xff] }
 0x257   :  { %v11152_v46 = vmax.f32 %v11991_v5, %v3454_v29  ;;  %v3452_v8 = vadd.f32 %v3369_v14, %v11043_v21  ;;  %v11155_v44 = vpop.f32.mrf.mxu1 }
 0x258   :  { %v8119_v57 = vpop.f32.mrf.mxu0 }
 0x259   :  { %v11161_v4 = vmax.f32 %v11992_v19, %v3452_v8  ;;  %v3455_v22 = vadd.f32 %v8119_v57, %v11048_v42  ;;  %v11164_v17 = vpop.f32.mrf.mxu1 }
 0x25a   :  { %v3372_v28 = vpop.f32.mrf.mxu0 }
 0x25b   :  { %v11169_v55 = vmax.f32 %v11993_v34, %v3455_v22  ;;  %v3453_v21 = vadd.f32 %v3372_v28, %v3203_v20  ;;  %v11171_v50 = vpop.f32.mrf.mxu1  ;;  %v12010_v34 = vld [vmem:[#allocation31_spill] sm:$0xff] }
 0x25c   :  { %v8122_v62 = vpop.f32.mrf.mxu0  ;;  %v12012_v63 = vmax.f32 %v12010_v34, %v12011_v10 }
 0x25d   :  { %v11176_v39 = vmax.f32 %v11994_v15, %v3453_v21  ;;  %v3458_v52 = vadd.f32 %v8122_v62, %v11053_v54  ;;  %v11179_v42 = vpop.f32.mrf.mxu1 }
 0x25e   :  { %v3385_v26 = vpop.f32.mrf.mxu0 }
 0x25f   :  { %11995 = vst [vmem:[#allocation41_spill] sm:$0xff] %v11176_v39  ;;  %v11184_v47 = vmax.f32 %v11996_v27, %v3458_v52  ;;  %v3456_v11 = vadd.f32 %v3385_v26, %v11056_v25  ;;  %v11187_v41 = vpop.f32.mrf.mxu1  ;;  %v12016_v26 = vld [vmem:[#allocation12_spill] sm:$0xff] }
 0x260   :  { %v8123_v56 = vpop.f32.mrf.mxu0  ;;  %v12017_v27 = vmax.f32 %v12015_v38, %v12016_v26 }
 0x261   :  { %11997 = vst [vmem:[#allocation50_spill] sm:$0xff] %v11184_v47  ;;  %v11192_v2 = vmax.f32 %v11998_v60, %v3456_v11  ;;  %v3459_v54 = vadd.f32 %v8123_v56, %v11061_v49  ;;  %v11195_v23 = vpop.f32.mrf.mxu1 }
 0x262   :  { %v11197_v29 = vpop.f32.mrf.mxu0 }
 0x263   :  { %11999 = vst [vmem:[#allocation51_spill] sm:$0xff] %v11192_v2  ;;  %12000 = vst [vmem:[#allocation52_spill] sm:$0xff] %v11197_v29  ;;  %v11202_v59 = vmax.f32 %v12001_v33, %v3459_v54  ;;  %v11204_v25 = vpop.f32.mrf.mxu1  ;;  %v12020_v54 = vld [vmem:[#allocation36_spill] sm:$0xff]  ;;  %v12021_v33 = vld [vmem:[#allocation13_spill] sm:$0xff] }
 0x264   :  { %v8126_v14 = vpop.f32.mrf.mxu0 }
 0x265   :  { %12002 = vst [vmem:[#allocation53_spill] sm:$0xff] %v11202_v59  ;;  %v3462_v5 = vadd.f32 %v8126_v14, %v11066_v16  ;;  %v11207_v8 = vpop.f32.mrf.mxu1  ;;  %v12022_v14 = vmax.f32 %v12020_v54, %v12021_v33  ;;  %v12035_v54 = vld [vmem:[#allocation17_spill] sm:$0xff] }
 0x266   :  { %v3401_v12 = vpop.f32.mrf.mxu0 }
 0x267   :  { %v11212_v49 = vmax.f32 %v12003_v7, %v3462_v5  ;;  %v3460_v57 = vadd.f32 %v3401_v12, %v11069_v13  ;;  %v11215_v20 = vpop.f32.mrf.mxu1 }
 0x268   :  { %12005 = vst [vmem:[#allocation55_spill] sm:$0xff] %v11215_v20  ;;  %v8127_v0 = vpop.f32.mrf.mxu0 }
 0x269   :  { %12004 = vst [vmem:[#allocation54_spill] sm:$0xff] %v11212_v49  ;;  %v11220_v19 = vmax.f32 %v12006_v31, %v3460_v57  ;;  %v3463_v16 = vadd.f32 %v8127_v0, %v11074_v58  ;;  %v11223_v22 = vpop.f32.mrf.mxu1  ;;  %v12025_v57 = vld [vmem:[#allocation37_spill] sm:$0xff]  ;;  %v12026_v0 = vld [vmem:[#allocation14_spill] sm:$0xff] }
 0x26a   :  { %12008 = vst [vmem:[#allocation57_spill] sm:$0xff] %v11223_v22  ;;  %v11225_v28 = vpop.f32.mrf.mxu0  ;;  %v12027_v31 = vmax.f32 %v12025_v57, %v12026_v0  ;;  %v12039_v0 = vld [vmem:[#allocation43_spill] sm:$0xff] }
 0x26b   :  { %12007 = vst [vmem:[#allocation56_spill] sm:$0xff] %v11220_v19  ;;  %12009 = vst [vmem:[#allocation58_spill] sm:$0xff] %v11225_v28  ;;  %v11230_v21 = vmax.f32 %v12012_v63, %v3463_v16  ;;  %v11232_v13 = vpop.f32.mrf.mxu1 }
 0x26c   :  { %12014 = vst [vmem:[#allocation10_spill] sm:$0xff] %v11232_v13  ;;  %v8130_v62 = vpop.f32.mrf.mxu0 }
 0x26d   :  { %12013 = vst [vmem:[#allocation31_spill] sm:$0xff] %v11230_v21  ;;  %v3466_v15 = vadd.f32 %v8130_v62, %v11079_v45  ;;  %v8170_v52 = vpop.f32.mrf.mxu1 }
 0x26e   :  { %v3417_v18 = vpop.f32.mrf.mxu0 }
 0x26f   :  { %v11238_v58 = vmax.f32 %v12017_v27, %v3466_v15  ;;  %v3464_v11 = vadd.f32 %v3417_v18, %v11084_v40  ;;  %v11241_v56 = vpop.f32.mrf.mxu1  ;;  %v12030_v15 = vld [vmem:[#allocation40_spill] sm:$0xff] }
 0x270   :  { %12019 = vst [vmem:[#allocation12_spill] sm:$0xff] %v11241_v56  ;;  %v8131_v60 = vpop.f32.mrf.mxu0  ;;  %v12031_v18 = vld [vmem:[#allocation16_spill] sm:$0xff] }
 0x271   :  { %12018 = vst [vmem:[#allocation33_spill] sm:$0xff] %v11238_v58  ;;  %v11246_v5 = vmax.f32 %v12022_v14, %v3464_v11  ;;  %v3467_v12 = vadd.f32 %v8131_v60, %v11090_v3  ;;  %v8171_v45 = vpop.f32.mrf.mxu1  ;;  %v12032_v38 = vmax.f32 %v12030_v15, %v12031_v18  ;;  %v12034_v60 = vld [vmem:[#allocation42_spill] sm:$0xff] }
 0x272   :  { %v11249_v7 = vpop.f32.mrf.mxu0  ;;  %v12036_v33 = vmax.f32 %v12034_v60, %v12035_v54 }
 0x273   :  { %12023 = vst [vmem:[#allocation36_spill] sm:$0xff] %v11246_v5  ;;  %12024 = vst [vmem:[#allocation13_spill] sm:$0xff] %v11249_v7  ;;  %v11254_v16 = vmax.f32 %v12027_v31, %v3467_v12  ;;  %v11256_v34 = vpop.f32.mrf.mxu1  ;;  %v12040_v31 = vld [vmem:[#allocation18_spill] sm:$0xff] }
 0x274   :  { %12029 = vst [vmem:[#allocation14_spill] sm:$0xff] %v11256_v34  ;;  %v8134_v40 = vpop.f32.mrf.mxu0 }
 0x275   :  { %12028 = vst [vmem:[#allocation37_spill] sm:$0xff] %v11254_v16  ;;  %v3470_v10 = vadd.f32 %v8134_v40, %v11097_v53  ;;  %v8174_v63 = vpop.f32.mrf.mxu1  ;;  %v12041_v40 = vmax.f32 %v12039_v0, %v12040_v31 }
 0x276   :  { %v3433_v62 = vpop.f32.mrf.mxu0 }
 0x277   :  { %v11262_v26 = vmax.f32 %v12032_v38, %v3470_v10  ;;  %v3468_v3 = vadd.f32 %v3433_v62, %v11101_v30  ;;  %v3610_v27 = vpop.f32.mrf.mxu1 }
 0x278   :  { %v8135_v11 = vpop.f32.mrf.mxu0 }
 0x279   :  { %12033 = vst [vmem:[#allocation40_spill] sm:$0xff] %v11262_v26  ;;  %v11268_v14 = vmax.f32 %v12036_v33, %v3468_v3  ;;  %v3471_v12 = vadd.f32 %v8135_v11, %v11106_v24  ;;  %v8175_v57 = vpop.f32.mrf.mxu1 }
 0x27a   :  { %v11271_v53 = vpop.f32.mrf.mxu0 }
 0x27b   :  { %12037 = vst [vmem:[#allocation16_spill] sm:$0xff] %v11268_v14  ;;  %12038 = vst [vmem:[#allocation42_spill] sm:$0xff] %v11271_v53  ;;  %v11276_v15 = vmax.f32 %v12041_v40, %v3471_v12  ;;  %v11278_v10 = vpop.f32.mrf.mxu1 }
 0x27c   :  { %12043 = vst [vmem:[#allocation43_spill] sm:$0xff] %v11278_v10  ;;  %v8194_v30 = vpop.f32.mrf.mxu0 }
 0x27d   :  { %12042 = vst [vmem:[#allocation17_spill] sm:$0xff] %v11276_v15  ;;  %v8234_v62 = vpop.f32.mrf.mxu1 }
 0x27e   :  { %v3659_v18 = vpop.f32.mrf.mxu0 }
 0x27f   :  { %v3788_v38 = vpop.f32.mrf.mxu1 }
 0x280   :  { %v8195_v26 = vpop.f32.mrf.mxu0 }
 0x281   :  { %v11280_v60 = vpop.f32.mrf.mxu1 }
 0x282   :  { %v3662_v3 = vpop.f32.mrf.mxu0 }
 0x283   :  { %v11282_v54 = vpop.f32.mrf.mxu1 }
 0x284   :  { %v11284_v24 = vpop.f32.mrf.mxu0 }
 0x285   :  { %v11286_v11 = vpop.f32.mrf.mxu1 }
 0x286   :  { %v11288_v33 = vpop.f32.mrf.mxu0 }
 0x287   :  { %v11290_v12 = vpop.f32.mrf.mxu1 }
 0x288   :  { %v11292_v0 = vpop.f32.mrf.mxu0 }
 0x289   :  { %v11294_v31 = vpop.f32.mrf.mxu1 }
 0x28a   :  { %v11296_v40 = vpop.f32.mrf.mxu0 }
 0x28b   :  { %v11298_v15 = vpop.f32.mrf.mxu1 }
 0x28c   :  { %v11300_v14 = vpop.f32.mrf.mxu0 }
 0x28d   :  { %v11302_v16 = vpop.f32.mrf.mxu1 }
 0x28e   :  { %v11304_v53 = vpop.f32.mrf.mxu0 }
 0x28f   :  { %v11306_v10 = vpop.f32.mrf.mxu1 }
 0x290   :  { %v11308_v5 = vpop.f32.mrf.mxu0 }
 0x291   :  { %v11310_v58 = vpop.f32.mrf.mxu1 }
 0x292   :  { %v11312_v7 = vpop.f32.mrf.mxu0 }
 0x293   :  { %v11314_v61 = vpop.f32.mrf.mxu1 }
 0x294   :  { %12044 = vst [vmem:[#allocation18_spill] sm:$0xff] %v11314_v61  ;;  %v11316_v34 = vpop.f32.mrf.mxu0 }
 0x295   :  { %v11318_v21 = vpop.f32.mrf.mxu1 }
 0x296   :  { %12045 = vst [vmem:[#allocation59_spill] sm:$0xff] %v11318_v21  ;;  %v11320_v19 = vpop.f32.mrf.mxu0 }
 0x297   :  { %12046 = vst [vmem:[#allocation60_spill] sm:$0xff] %v11320_v19  ;;  %v11322_v28 = vpop.f32.mrf.mxu1 }
 0x298   :  { %12047 = vst [vmem:[#allocation61_spill] sm:$0xff] %v11322_v28  ;;  %v11324_v49 = vpop.f32.mrf.mxu0 }
 0x299   :  { %12048 = vst [vmem:[#allocation62_spill] sm:$0xff] %v11324_v49  ;;  %v11326_v36 = vpop.f32.mrf.mxu1 }
 0x29a   :  { %12049 = vst [vmem:[#allocation63_spill] sm:$0xff] %v11326_v36  ;;  %v11328_v56 = vpop.f32.mrf.mxu0 }
 0x29b   :  { %12050 = vst [vmem:[#allocation64_spill] sm:$0xff] %v11328_v56  ;;  %v11330_v13 = vpop.f32.mrf.mxu1 }
 0x29c   :  { %12051 = vst [vmem:[#allocation65_spill] sm:$0xff] %v11330_v13  ;;  %v8210_v59 = vpop.f32.mrf.mxu0 }
 0x29d   :  { %v3732_v2 = vadd.f32 %v8210_v59, %v8170_v52  ;;  %v8250_v22 = vpop.f32.mrf.mxu1  ;;  %v3668_v52 = vadd.f32 %v8194_v30, %v11113_v35  ;;  %v3663_v35 = vadd.f32 %v3662_v3, %v11137_v6  ;;  %v3684_v6 = vadd.f32 %v11284_v24, %v11147_v51 }
 0x29e   :  { %v11332_v61 = vpop.f32.mrf.mxu0 }
 0x29f   :  { %12052 = vst [vmem:[#allocation66_spill] sm:$0xff] %v11332_v61  ;;  %v11334_v47 = vadd.f32 %v8250_v22, %v3732_v2  ;;  %v11336_v21 = vpop.f32.mrf.mxu1 }
 0x2a0   :  { %v8211_v19 = vpop.f32.mrf.mxu0 }
 0x2a1   :  { %12053 = vst [vmem:[#allocation67_spill] sm:$0xff] %v11334_v47  ;;  %v3735_v20 = vadd.f32 %v8211_v19, %v8171_v45  ;;  %v8251_v28 = vpop.f32.mrf.mxu1  ;;  %v3660_v19 = vadd.f32 %v3659_v18, %v11121_v1  ;;  %v12057_v1 = vld [vmem:[#allocation20_spill] sm:$0xff]  ;;  %v12058_v18 = vld [vmem:[#allocation21_spill] sm:$0xff] }
 0x2a2   :  { %v11338_v29 = vpop.f32.mrf.mxu0 }
 0x2a3   :  { %12054 = vst [vmem:[#allocation68_spill] sm:$0xff] %v11338_v29  ;;  %v11340_v49 = vadd.f32 %v8251_v28, %v3735_v20  ;;  %v11342_v36 = vpop.f32.mrf.mxu1 }
 0x2a4   :  { %12056 = vst [vmem:[#allocation70_spill] sm:$0xff] %v11342_v36  ;;  %v8214_v56 = vpop.f32.mrf.mxu0  ;;  %v3885_v36 = vadd.f32 %v8234_v62, %v3668_v52 }
 0x2a5   :  { %12055 = vst [vmem:[#allocation69_spill] sm:$0xff] %v11340_v49  ;;  %v3748_v13 = vadd.f32 %v8214_v56, %v8174_v63  ;;  %v8254_v39 = vpop.f32.mrf.mxu1  ;;  %v3671_v56 = vadd.f32 %v8195_v26, %v11130_v48  ;;  %v12059_v48 = vld [vmem:[#allocation46_spill] sm:$0xff]  ;;  %v3884_v26 = vadd.f32 %v11282_v54, %v3663_v35  ;;  %v11373_v54 = vld [vmem:[%s11813_s2] ss:$0 sm:$0xff] }
 0x2a6   :  { %v3739_v59 = vpop.f32.mrf.mxu0 }
 0x2a7   :  { %v11345_v61 = vadd.f32 %v8254_v39, %v3748_v13  ;;  %v3740_v2 = vadd.f32 %v3739_v59, %v3610_v27  ;;  %v3868_v22 = vpop.f32.mrf.mxu1  ;;  %v3883_v13 = vadd.f32 %v3788_v38, %v3660_v19  ;;  %v2857_v59 = vadd.f32 %v12058_v18, %v12057_v1  ;;  %v12064_v18 = vld [vmem:[#allocation26_spill] sm:$0xff] }
 0x2a8   :  { %v8215_v47 = vpop.f32.mrf.mxu0  ;;  %v3889_v1 = vadd.f32 %v11286_v11, %v3684_v6 }
 0x2a9   :  { %v11348_v45 = vadd.f32 %v3868_v22, %v3740_v2  ;;  %v3751_v29 = vadd.f32 %v8215_v47, %v8175_v57  ;;  %v8255_v20 = vpop.f32.mrf.mxu1  ;;  %v3886_v57 = vadd.f32 %v11280_v60, %v3671_v56  ;;  %v3687_v56 = vadd.f32 %v11292_v0, %v11164_v17 }
 0x2aa   :  { %v11350_v28 = vpop.f32.mrf.mxu0  ;;  %v3679_v17 = vadd.f32 %v11296_v40, %v11171_v50 }
 0x2ab   :  { %v11353_v63 = vadd.f32 %v8255_v20, %v3751_v29  ;;  %v11355_v49 = vpop.f32.mrf.mxu1  ;;  %v3054_v29 = vadd.f32 %v12059_v48, %v2857_v59  ;;  %v3700_v48 = vadd.f32 %v11300_v14, %v11179_v42  ;;  %v3890_v50 = vadd.f32 %v11294_v31, %v3687_v56 }
 0x2ac   :  { %v8274_v39 = vpop.f32.mrf.mxu0 }
 0x2ad   :  { %v4038_v27 = vadd.f32 %v8274_v39, %v3885_v36  ;;  %v8314_v30 = vpop.f32.mrf.mxu1  ;;  %v3676_v36 = vadd.f32 %v11288_v33, %v11155_v44  ;;  %v12060_v44 = vld [vmem:[#allocation38_spill] sm:$0xff]  ;;  %v3207_v59 = vadd.f32 %v12064_v18, %v3054_v29  ;;  %v3893_v56 = vadd.f32 %v11302_v16, %v3700_v48 }
 0x2ae   :  { %v3941_v47 = vpop.f32.mrf.mxu0  ;;  %v12061_v33 = vld [vmem:[#allocation22_spill] sm:$0xff]  ;;  %v3695_v18 = vadd.f32 %v11312_v7, %v11204_v25 }
 0x2af   :  { %v4191_v2 = vadd.f32 %v8314_v30, %v4038_v27  ;;  %v4036_v62 = vadd.f32 %v3941_v47, %v3883_v13  ;;  %v4094_v52 = vpop.f32.mrf.mxu1  ;;  %v12062_v13 = vld [vmem:[#allocation23_spill] sm:$0xff]  ;;  %v12063_v27 = vld [vmem:[#allocation45_spill] sm:$0xff] }
 0x2b0   :  { %v8275_v3 = vpop.f32.mrf.mxu0  ;;  %v11380_v30 = vadd.f32 %v12063_v27, %v12062_v13 }
 0x2b1   :  { %v4215_v38 = vmax.f32 %v11118_v43, %v4191_v2  ;;  %v4189_v22 = vadd.f32 %v4094_v52, %v4036_v62  ;;  %v4039_v19 = vadd.f32 %v8275_v3, %v3886_v57  ;;  %v8315_v20 = vpop.f32.mrf.mxu1  ;;  %v2873_v43 = vadd.f32 %v12061_v33, %v12060_v44  ;;  %v12065_v62 = vld [vmem:[#allocation27_spill] sm:$0xff]  ;;  %v12066_v33 = vld [vmem:[#allocation29_spill] sm:$0xff] }
 0x2b2   :  { %v3944_v60 = vpop.f32.mrf.mxu0 }
 0x2b3   :  { %v4213_v51 = vmax.f32 %v11127_v37, %v4189_v22  ;;  %v4192_v24 = vadd.f32 %v8315_v20, %v4039_v19  ;;  %v4037_v35 = vadd.f32 %v3944_v60, %v3884_v26  ;;  %v4097_v39 = vpop.f32.mrf.mxu1  ;;  %v3887_v37 = vadd.f32 %v11290_v12, %v3676_v36 }
 0x2b4   :  { %v8278_v0 = vpop.f32.mrf.mxu0  ;;  %v3058_v52 = vadd.f32 %v12065_v62, %v2873_v43  ;;  %v4246_v26 = vadd.f32 %v11373_v54, %v4215_v38  ;;  %v3692_v36 = vadd.f32 %v11304_v53, %v11187_v41  ;;  %v12067_v62 = vld [vmem:[#allocation41_spill] sm:$0xff] }
 0x2b5   :  { %v4216_v47 = vmax.f32 %v11135_v32, %v4192_v24  ;;  %v4190_v57 = vadd.f32 %v4097_v39, %v4037_v35  ;;  %v8318_v2 = vpop.f32.mrf.mxu1  ;;  %v4042_v11 = vadd.f32 %v8278_v0, %v3889_v1  ;;  %v3888_v32 = vadd.f32 %v11298_v15, %v3679_v17 }
 0x2b6   :  { %v3957_v6 = vpop.f32.mrf.mxu0  ;;  %v4244_v22 = vadd.f32 %v11373_v54, %v4213_v51  ;;  %v4270_v24 = vmax.f32 %v4246_v26, 0.0  ;;  %v11406_v43 = vadd.f32 %v12066_v33, %v3058_v52  ;;  %v8871_v26 = vld [vmem:[#allocation3 + $0xf0] sm:$0xff]  }
 0x2b7   :  { %v4247_v40 = vadd.f32 %v11373_v54, %v4216_v47  ;;  %v4214_v29 = vmax.f32 %v11144_v9, %v4190_v57  ;;  %v4040_v12 = vadd.f32 %v3957_v6, %v3887_v37  ;;  %v4110_v3 = vpop.f32.mrf.mxu1  ;;  %v4195_v42 = vadd.f32 %v8318_v2, %v4042_v11  ;;  %v12068_v11 = vld [vmem:[#allocation52_spill] sm:$0xff]  ;;  %v12069_v6 = vld [vmem:[#allocation55_spill] sm:$0xff] }
 0x2b8   :  { %v8279_v14 = vpop.f32.mrf.mxu0  ;;  %v3703_v9 = vadd.f32 %v11308_v5, %v11195_v23  ;;  %v4268_v13 = vmax.f32 %v4244_v22, 0.0  ;;  %v3891_v23 = vadd.f32 %v11306_v10, %v3692_v36  ;;  %v3716_v37 = vadd.f32 %v11316_v34, %v11207_v8  ;;  %v12072_v22 = vld [vmem:[#allocation18_spill] sm:$0xff] }
 0x2b9   :  { %v4271_v38 = vmax.f32 %v4247_v40, 0.0  ;;  %v4245_v19 = vadd.f32 %v11373_v54, %v4214_v29  ;;  %v4193_v20 = vadd.f32 %v4110_v3, %v4040_v12  ;;  %v4043_v31 = vadd.f32 %v8279_v14, %v3890_v50  ;;  %v8319_v60 = vpop.f32.mrf.mxu1  ;;  %v12070_v50 = vld [vmem:[#allocation60_spill] sm:$0xff]  ;;  %v12071_v12 = vld [vmem:[#allocation50_spill] sm:$0xff]  ;;  %v12073_v14 = vld [vmem:[#allocation59_spill] sm:$0xff] }
 0x2ba   :  { %v4219_v15 = vmax.f32 %v11152_v46, %v4195_v42  ;;  %v3960_v35 = vpop.f32.mrf.mxu0  ;;  %v3708_v25 = vadd.f32 %v12070_v50, %v12069_v6  ;;  %v3892_v42 = vadd.f32 %v12072_v22, %v3695_v18  ;;  %v12081_v18 = vld [vmem:[#allocation28_spill] sm:$0xff]  ;;  %v12090_v22 = vld [vmem:[#allocation54_spill] sm:$0xff] }
 0x2bb   :  { %v4269_v41 = vmax.f32 %v4245_v19, 0.0  ;;  %v4217_v53 = vmax.f32 %v11161_v4, %v4193_v20  ;;  %v4196_v51 = vadd.f32 %v8319_v60, %v4043_v31  ;;  %v4041_v39 = vadd.f32 %v3960_v35, %v3888_v32  ;;  %v4113_v44 = vpop.f32.mrf.mxu1  ;;  %v12075_v19 = vld [vmem:[#allocation62_spill] sm:$0xff] }
 0x2bc   :  { %v4250_v27 = vadd.f32 %v11373_v54, %v4219_v15  ;;  %v8282_v16 = vpop.f32.mrf.mxu0  ;;  %v4333_v1 = vpack.c.bf16 %v4271_v38, %v4270_v24  ;;  %v3894_v4 = vadd.f32 %v11310_v58, %v3703_v9  ;;  %v3457_v58 = vadd.f32 %v12068_v11, %v3207_v59  ;;  %v12074_v59 = vld [vmem:[#allocation57_spill] sm:$0xff]  ;;  %v12076_v60 = vld [vmem:[#allocation30_spill] sm:$0xff]  ;;  %v8874_v11 = vld [vmem:[#allocation3 + $0xb0] sm:$0xff]  }
 0x2bd   :  { %v4220_v5 = vmax.f32 %v11169_v55, %v4196_v51  ;;  %v4194_v46 = vadd.f32 %v4113_v44, %v4041_v39  ;;  %v4046_v17 = vadd.f32 %v8282_v16, %v3893_v56  ;;  %v8322_v0 = vpop.f32.mrf.mxu1  ;;  %v4332_v57 = vpack.c.bf16 %v4269_v41, %v4268_v13  ;;  %v12078_v44 = vld [vmem:[#allocation51_spill] sm:$0xff]  ;;  %v12079_v16 = vld [vmem:[#allocation61_spill] sm:$0xff] }
 0x2be   :  { %8352 = vmatprep.mubr.bf16.mxu0 %v4333_v1  ;;  %v3973_v47 = vpop.f32.mrf.mxu0  ;;  %v4248_v2 = vadd.f32 %v11373_v54, %v4217_v53  ;;  %v4274_v7 = vmax.f32 %v4250_v27, 0.0  ;;  %v3897_v38 = vadd.f32 %v12073_v14, %v3716_v37  ;;  %v3719_v20 = vadd.f32 %v12075_v19, %v12074_v59  ;;  %v12077_v53 = vld [vmem:[#allocation47_spill] sm:$0xff]  ;;  %v12082_v37 = vld [vmem:[#allocation9_spill] sm:$0xff]  ;;  %v8876_v19 = vld [vmem:[#allocation3 + $0xa8] sm:$0xff]  }
 0x2bf   :  { %v4251_v10 = vadd.f32 %v11373_v54, %v4220_v5  ;;  %v4218_v55 = vmax.f32 %v12067_v62, %v4194_v46  ;;  %v4199_v52 = vadd.f32 %v8322_v0, %v4046_v17  ;;  %v4126_v48 = vpop.f32.mrf.mxu1  ;;  %v4044_v40 = vadd.f32 %v3973_v47, %v3891_v23  ;;  %8384 = vmatprep.mubr.bf16.mxu1 %v4332_v57  ;;  %v12080_v5 = vld [vmem:[#allocation53_spill] sm:$0xff]  ;;  %v12086_v62 = vld [vmem:[#allocation64_spill] sm:$0xff] }
 0x2c0   :  { %v8283_v8 = vpop.f32.mrf.mxu0  ;;  %8385 = vmatmul.mubr.bf16.vlgmr.msra.gmra.mxu1 %v4333_v1  ;;  %v4272_v9 = vmax.f32 %v4248_v2, 0.0  ;;  %v3062_v51 = vadd.f32 %v12077_v53, %v11380_v30  ;;  %v3895_v1 = vadd.f32 %v12079_v16, %v3708_v25  ;;  %v12083_v47 = vmax.f32 %v12081_v18, %v12082_v37  ;;  %v12084_v30 = vld [vmem:[#allocation63_spill] sm:$0xff]  ;;  %v8877_v16 = vld [vmem:[#allocation3 + $0xd8] sm:$0xff]  }
 0x2c1   :  { %v4275_v34 = vmax.f32 %v4251_v10, 0.0  ;;  %v4249_v29 = vadd.f32 %v11373_v54, %v4218_v55  ;;  %v4223_v3 = vmax.f32 %v12071_v12, %v4199_v52  ;;  %v4047_v32 = vadd.f32 %v8283_v8, %v3894_v4  ;;  %v8323_v36 = vpop.f32.mrf.mxu1  ;;  %8433 = vmatpush3.bf16.msra.mxu1 %v12076_v60  ;;  %v8873_v4 = vld [vmem:[#allocation3 + $0xe8] sm:$0xff]   ;;  %v12092_v60 = vld [vmem:[#allocation65_spill] sm:$0xff]  ;;  %v12097_v37 = vld [vmem:[#allocation31_spill] sm:$0xff] }
 0x2c2   :  { %v4197_v31 = vadd.f32 %v4126_v48, %v4044_v40  ;;  %v3976_v56 = vpop.f32.mrf.mxu0  ;;  %8434 = vmatprep.subr.bf16.mxu1 %v8871_v26  ;;  %v3481_v57 = vmax.f32 %v12083_v47, %v3457_v58  ;;  %v3898_v2 = vadd.f32 %v12084_v30, %v3719_v20  ;;  %v12085_v10 = vld [vmem:[#allocation10_spill] sm:$0xff]  ;;  %v8875_v40 = vld [vmem:[#allocation3 + $0xe0] sm:$0xff]   ;;  %v12087_v58 = vld [vmem:[#allocation12_spill] sm:$0xff] }
 0x2c3   :  { %v11429_v24 = vpack.c.bf16 %v4275_v34, %v4274_v7  ;;  %v4273_v15 = vmax.f32 %v4249_v29, 0.0  ;;  %v4200_v35 = vadd.f32 %v8323_v36, %v4047_v32  ;;  %v4129_v41 = vpop.f32.mrf.mxu1  ;;  %v4254_v39 = vadd.f32 %v11373_v54, %v4223_v3  ;;  %v12088_v8 = vld [vmem:[#allocation66_spill] sm:$0xff]  ;;  %v12089_v32 = vld [vmem:[#allocation48_spill] sm:$0xff] }
 0x2c4   :  { %v4221_v33 = vmax.f32 %v12078_v44, %v4197_v31  ;;  %v4045_v13 = vadd.f32 %v3976_v56, %v3892_v42  ;;  %v8286_v27 = vpop.f32.mrf.mxu0  ;;  %v3711_v55 = vadd.f32 %v12086_v62, %v12085_v10  ;;  %v3724_v34 = vadd.f32 %v12088_v8, %v12087_v58  ;;  %v12091_v20 = vld [vmem:[#allocation58_spill] sm:$0xff]  ;;  %v12095_v44 = vld [vmem:[#allocation56_spill] sm:$0xff]  ;;  %v12100_v62 = vld [vmem:[#allocation11_spill] sm:$0xff] }
 0x2c5   :  { %v11436_v23 = vpack.c.bf16 %v4273_v15, %v4272_v9  ;;  %v4224_v46 = vmax.f32 %v12080_v5, %v4200_v35  ;;  %v4050_v17 = vadd.f32 %v8286_v27, %v3897_v38  ;;  %v8326_v0 = vpop.f32.mrf.mxu1  ;;  %8435 = vmatpush3.bf16.msra.mxu1 %v8871_v26  ;;  %v4278_v29 = vmax.f32 %v4254_v39, 0.0  ;;  %v12093_v35 = vld [vmem:[#allocation24_spill] sm:$0xff] }
 0x2c6   :  { %v4198_v52 = vadd.f32 %v4129_v41, %v4045_v13  ;;  %v3989_v48 = vpop.f32.mrf.mxu0  ;;  %v4252_v12 = vadd.f32 %v11373_v54, %v4221_v33  ;;  %8436 = vmatprep.subr.bf16.mxu1 %v8873_v4  ;;  %v3461_v31 = vadd.f32 %v12091_v20, %v11406_v43  ;;  %v3896_v56 = vadd.f32 %v12092_v60, %v3711_v55  ;;  %v12094_v41 = vld [vmem:[#allocation25_spill] sm:$0xff]  ;;  %v12099_v10 = vld [vmem:[#allocation32_spill] sm:$0xff] }
 0x2c7   :  { %v4255_v6 = vadd.f32 %v11373_v54, %v4224_v46  ;;  %v4203_v50 = vadd.f32 %v8326_v0, %v4050_v17  ;;  %v4048_v25 = vadd.f32 %v3989_v48, %v3895_v1  ;;  %v4142_v7 = vpop.f32.mrf.mxu1  ;;  %8353 = vmatmul.mubr.bf16.vlgmr.msra.gmra.mxu0 %v11436_v23  ;;  %8388 = vmatprep.mubr.bf16.mxu1 %v11436_v23  ;;  %v12096_v0 = vld [vmem:[#allocation34_spill] sm:$0xff] }
 0x2c8   :  { %v4222_v3 = vmax.f32 %v3481_v57, %v4198_v52  ;;  %v8287_v26 = vpop.f32.mrf.mxu0  ;;  %8356 = vmatprep.mubr.bf16.mxu0 %v11429_v24  ;;  %8401 = vmatpush3.bf16.msra.mxu0 %v12089_v32  ;;  %v2905_v53 = vadd.f32 %v12094_v41, %v12093_v35  ;;  %v4276_v1 = vmax.f32 %v4252_v12, 0.0  ;;  %v3899_v18 = vadd.f32 %v11336_v21, %v3724_v34  ;;  %v12098_v57 = vld [vmem:[#allocation67_spill] sm:$0xff]  ;;  %v12102_v48 = vld [vmem:[#allocation14_spill] sm:$0xff]  ;;  %v8878_v12 = vld [vmem:[#allocation3 + $0xa0] sm:$0xff]  }
 0x2c9   :  { %v4279_v36 = vmax.f32 %v4255_v6, 0.0  ;;  %v4227_v42 = vmax.f32 %v12090_v22, %v4203_v50  ;;  %v4201_v14 = vadd.f32 %v4142_v7, %v4048_v25  ;;  %v4051_v38 = vadd.f32 %v8287_v26, %v3898_v2  ;;  %v8327_v59 = vpop.f32.mrf.mxu1  ;;  %8389 = vmatmul.mubr.bf16.gmra.mxu1 %v11429_v24  ;;  %8402 = vmatprep.subr.bf16.mxu0 %v8874_v11  ;;  %v12103_v6 = vld [vmem:[#allocation68_spill] sm:$0xff]  ;;  %v12104_v7 = vld [vmem:[#allocation35_spill] sm:$0xff] }
 0x2ca   :  { %v4253_v9 = vadd.f32 %v11373_v54, %v4222_v3  ;;  %8437 = vmatpush3.bf16.msra.mxu1 %v8873_v4  ;;  %v3992_v15 = vpop.f32.mrf.mxu0  ;;  %v3215_v4 = vadd.f32 %v12096_v0, %v3062_v51  ;;  %v12101_v55 = vmax.f32 %v12099_v10, %v12100_v62  ;;  %v3727_v50 = vadd.f32 %v12103_v6, %v12102_v48  ;;  %v12105_v3 = vld [vmem:[#allocation13_spill] sm:$0xff] }
 0x2cb   :  { %v11461_v39 = vpack.c.bf16 %v4279_v36, %v4278_v29  ;;  %v4225_v33 = vmax.f32 %v12095_v44, %v4201_v14  ;;  %v4204_v13 = vadd.f32 %v8327_v59, %v4051_v38  ;;  %v4145_v27 = vpop.f32.mrf.mxu1  ;;  %8438 = vmatprep.subr.bf16.mxu1 %v8875_v40  ;;  %v4258_v5 = vadd.f32 %v11373_v54, %v4227_v42  ;;  %v8879_v42 = vld [vmem:[#allocation3 + $0xd0] sm:$0xff]   ;;  %v12106_v38 = vld [vmem:[#allocation33_spill] sm:$0xff] }
 0x2cc   :  { %v4277_v43 = vmax.f32 %v4253_v9, 0.0  ;;  %v4049_v46 = vadd.f32 %v3992_v15, %v3896_v56  ;;  %v8290_v17 = vpop.f32.mrf.mxu0  ;;  %8403 = vmatpush3.bf16.msra.mxu0 %v8874_v11  ;;  %v3485_v52 = vmax.f32 %v12101_v55, %v3461_v31  ;;  %v3066_v21 = vadd.f32 %v12104_v7, %v2905_v53  ;;  %v12107_v31 = vld [vmem:[#allocation69_spill] sm:$0xff]  ;;  %v12108_v9 = vld [vmem:[#allocation70_spill] sm:$0xff] }
 0x2cd   :  { %v4228_v47 = vmax.f32 %v12097_v37, %v4204_v13  ;;  %v4054_v30 = vadd.f32 %v8290_v17, %v12098_v57  ;;  %v8330_v2 = vpop.f32.mrf.mxu1  ;;  %8404 = vmatprep.subr.bf16.mxu0 %v8876_v19  ;;  %v3465_v26 = vadd.f32 %v12105_v3, %v3215_v4  ;;  %v4282_v32 = vmax.f32 %v4258_v5, 0.0  ;;  %v12109_v53 = vld [vmem:[#allocation49_spill] sm:$0xff]  ;;  %v12110_v13 = vld [vmem:[#allocation36_spill] sm:$0xff]  ;;  %v12111_v17 = vld [vmem:[#allocation43_spill] sm:$0xff] }
 0x2ce   :  { %v11474_v25 = vpack.c.bf16 %v4277_v43, %v4276_v1  ;;  %v4202_v11 = vadd.f32 %v4145_v27, %v4049_v46  ;;  %8439 = vmatpush3.bf16.msra.mxu1 %v8875_v40  ;;  %v4005_v51 = vpop.f32.mrf.mxu0  ;;  %v4256_v36 = vadd.f32 %v11373_v54, %v4225_v33  ;;  %v3900_v15 = vadd.f32 %v12108_v9, %v3727_v50  ;;  %v8880_v5 = vld [vmem:[#allocation3 + $0x98] sm:$0xff]   ;;  %v8881_v46 = vld [vmem:[#allocation3 + $0xc8] sm:$0xff]   ;;  %v12116_v62 = vld [vmem:[#allocation37_spill] sm:$0xff] }
 0x2cf   :  { %v4259_v58 = vadd.f32 %v11373_v54, %v4228_v47  ;;  %v4207_v8 = vadd.f32 %v8330_v2, %v4054_v30  ;;  %v4052_v34 = vadd.f32 %v4005_v51, %v3899_v18  ;;  %v4158_v29 = vpop.f32.mrf.mxu1  ;;  %8440 = vmatprep.subr.bf16.mxu1 %v8877_v16  ;;  %v3219_v44 = vadd.f32 %v12109_v53, %v3066_v21  ;;  %v12113_v47 = vld [vmem:[#allocation15_spill] sm:$0xff]  ;;  %v12115_v2 = vld [vmem:[#allocation42_spill] sm:$0xff]  ;;  %v8883_v3 = vld [vmem:[#allocation3 + $0xc0] sm:$0xff]  }
 0x2d0   :  { %v4226_v22 = vmax.f32 %v3485_v52, %v4202_v11  ;;  %8357 = vmatmul.mubr.bf16.gmra.mxu0 %v11474_v25  ;;  %8392 = vmatprep.mubr.bf16.mxu1 %v11474_v25  ;;  %v8291_v40 = vpop.f32.mrf.mxu0  ;;  %v3743_v0 = vadd.f32 %v11350_v28, %v12111_v17  ;;  %v4280_v4 = vmax.f32 %v4256_v36, 0.0  ;;  %v12120_v53 = vld [vmem:[#allocation19_spill] sm:$0xff] }
 0x2d1   :  { %v4283_v14 = vmax.f32 %v4259_v58, 0.0  ;;  %v4231_v59 = vmax.f32 %v12106_v38, %v4207_v8  ;;  %v4205_v20 = vadd.f32 %v4158_v29, %v4052_v34  ;;  %v4055_v60 = vadd.f32 %v8291_v40, %v12107_v31  ;;  %v8331_v56 = vpop.f32.mrf.mxu1  ;;  %8360 = vmatprep.mubr.bf16.mxu0 %v11461_v39  ;;  %8393 = vmatmul.mubr.bf16.gmra.mxu1 %v11461_v39 }
 0x2d2   :  { %v4257_v35 = vadd.f32 %v11373_v54, %v4226_v22  ;;  %8405 = vmatpush3.bf16.msra.mxu0 %v8876_v19  ;;  %8441 = vmatpush3.bf16.msra.mxu1 %v8877_v16  ;;  %v4008_v41 = vpop.f32.mrf.mxu0  ;;  %v12112_v16 = vld [vmem:[#allocation39_spill] sm:$0xff]  ;;  %v3469_v10 = vadd.f32 %v12115_v2, %v3219_v44  ;;  %v3904_v8 = vadd.f32 %v11355_v49, %v3743_v0 }
 0x2d3   :  { %v11489_v33 = vpack.c.bf16 %v4283_v14, %v4282_v32  ;;  %v4229_v27 = vmax.f32 %v12110_v13, %v4205_v20  ;;  %v4208_v1 = vadd.f32 %v8331_v56, %v4055_v60  ;;  %v4161_v43 = vpop.f32.mrf.mxu1  ;;  %8406 = vmatprep.subr.bf16.mxu0 %v8878_v12  ;;  %v4053_v37 = vadd.f32 %v4008_v41, %v3900_v15  ;;  %v12117_v32 = vld [vmem:[#allocation40_spill] sm:$0xff]  ;;  %v8884_v56 = vld [vmem:[#allocation3 + $0x88] sm:$0xff]  }
 0x2d4   :  { %v4281_v18 = vmax.f32 %v4257_v35, 0.0  ;;  %v8294_v19 = vpop.f32.mrf.mxu0  ;;  %8442 = vmatprep.subr.bf16.mxu1 %v8879_v42  ;;  %v12114_v57 = vmax.f32 %v12112_v16, %v12113_v47  ;;  %v4262_v28 = vadd.f32 %v11373_v54, %v4231_v59  ;;  %v12118_v59 = vld [vmem:[#allocation16_spill] sm:$0xff] }
 0x2d5   :  { %v4232_v55 = vmax.f32 %v12116_v62, %v4208_v1  ;;  %v4058_v52 = vadd.f32 %v8294_v19, %v11345_v61  ;;  %v8334_v48 = vpop.f32.mrf.mxu1  ;;  %v4206_v50 = vadd.f32 %v4161_v43, %v4053_v37  ;;  %v4260_v61 = vadd.f32 %v11373_v54, %v4229_v27  ;;  %v12119_v41 = vld [vmem:[#allocation44_spill] sm:$0xff]  ;;  %v12122_v27 = vld [vmem:[#allocation17_spill] sm:$0xff]  ;;  %v8891_v62 = vld [vmem:[#allocation3 + $0x110] sm:$0xff]  }
 0x2d6   :  { %v3489_v30 = vmax.f32 %v12114_v57, %v3465_v26  ;;  %v11500_v6 = vpack.c.bf16 %v4281_v18, %v4280_v4  ;;  %8407 = vmatpush3.bf16.msra.mxu0 %v8878_v12  ;;  %8443 = vmatpush3.bf16.msra.mxu1 %v8879_v42  ;;  %v4021_v11 = vpop.f32.mrf.mxu0  ;;  %v8882_v12 = vld [vmem:[#allocation3 + $0x90] sm:$0xff]   ;;  %v4286_v40 = vmax.f32 %v4262_v28, 0.0  ;;  %v12121_v44 = vmax.f32 %v12119_v41, %v12120_v53  ;;  %v8885_v4 = vld [vmem:[#allocation3 + $0x80] sm:$0xff]  }
 0x2d7   :  { %v4263_v51 = vadd.f32 %v11373_v54, %v4232_v55  ;;  %v4056_v7 = vadd.f32 %v4021_v11, %v11348_v45  ;;  %v4211_v21 = vadd.f32 %v8334_v48, %v4058_v52  ;;  %8408 = vmatprep.subr.bf16.mxu0 %v8880_v5  ;;  %v4174_v58 = vpop.f32.mrf.mxu1  ;;  %8444 = vmatprep.subr.bf16.mxu1 %v8881_v46  ;;  %v4284_v9 = vmax.f32 %v4260_v61, 0.0  ;;  %v8892_v55 = vld [vmem:[#allocation3 + $0x108] sm:$0xff]   ;;  %v8893_v52 = vld [vmem:[#allocation3 + $0x100] sm:$0xff]   ;;  %v8894_v48 = vld [vmem:[#allocation5 + $0x78] sm:$0xff]  }
 0x2d8   :  { %v4230_v34 = vmax.f32 %v3489_v30, %v4206_v50  ;;  %8361 = vmatmul.mubr.bf16.gmra.mxu0 %v11500_v6  ;;  %8396 = vmatprep.mubr.bf16.mxu1 %v11500_v6  ;;  %v8295_v29 = vpop.f32.mrf.mxu0  ;;  %v3493_v13 = vmax.f32 %v12121_v44, %v3469_v10  ;;  %v8886_v30 = vld [vmem:[#allocation3 + $0x138] sm:$0xff]   ;;  %v8887_v10 = vld [vmem:[#allocation3 + $0x130] sm:$0xff]   ;;  %v9174_v28 = vmov 0.0   ;;  %v8899_v50 = vld [vmem:[#allocation5 + $0x28] sm:$0xff]  }
 0x2d9   :  { %v4287_v26 = vmax.f32 %v4263_v51, 0.0  ;;  %v4235_v36 = vmax.f32 %v12117_v32, %v4211_v21  ;;  %v4059_v45 = vadd.f32 %v8295_v29, %v11353_v63  ;;  %v4209_v22 = vadd.f32 %v4174_v58, %v4056_v7  ;;  %8364 = vmatprep.mubr.bf16.mxu0 %v11489_v33  ;;  %8397 = vmatmul.mubr.bf16.gmra.mxu1 %v11489_v33  ;;  %v8335_v49 = vpop.f32.mrf.mxu1  ;;  %v8900_v11 = vld [vmem:[#allocation5 + $0x60] sm:$0xff]   ;;  %v8902_v7 = vld [vmem:[#allocation5 + $0x58] sm:$0xff]   ;;  %v8904_v58 = vld [vmem:[#allocation5 + $0x50] sm:$0xff]  }
 0x2da   :  { %v4261_v42 = vadd.f32 %v11373_v54, %v4230_v34  ;;  %8409 = vmatpush3.bf16.msra.mxu0 %v8880_v5  ;;  %8445 = vmatpush3.bf16.msra.mxu1 %v8881_v46  ;;  %v4024_v14 = vpop.f32.mrf.mxu0  ;;  %v8901_v51 = vld [vmem:[#allocation5 + $0x20] sm:$0xff]   ;;  %v8903_v21 = vld [vmem:[#allocation5 + $0x18] sm:$0xff]   ;;  %v8906_v61 = vld [vmem:[#allocation5 + $0x48] sm:$0xff]  }
 0x2db   :  { %v4266_v38 = vadd.f32 %v11373_v54, %v4235_v36  ;;  %v4233_v20 = vmax.f32 %v12118_v59, %v4209_v22  ;;  %8448 = vmatprep.mubr.bf16.mxu1 %v11429_v24  ;;  %v4057_v31 = vadd.f32 %v4024_v14, %v3904_v8  ;;  %v4212_v63 = vadd.f32 %v8335_v49, %v4059_v45  ;;  %v4177_v60 = vpop.f32.mrf.mxu1  ;;  %v8905_v8 = vld [vmem:[#allocation5 + $0x10] sm:$0xff]   ;;  %v8907_v34 = vld [vmem:[#allocation5 + $0x8] sm:$0xff]   ;;  %v8908_v29 = vld [vmem:[#allocation5 + $0x40] sm:$0xff]  }
 0x2dc   :  { %v4285_v15 = vmax.f32 %v4261_v42, 0.0  ;;  %8410 = vmatprep.subr.bf16.mxu0 %v8882_v12  ;;  %8446 = vmatprep.subr.bf16.mxu1 %v8883_v3  ;;  %v11517_v35 = vpack.c.bf16 %v4287_v26, %v4286_v40 }
 0x2dd   :  { %v4236_v1 = vmax.f32 %v12122_v27, %v4212_v63  ;;  %v4210_v43 = vadd.f32 %v4177_v60, %v4057_v31  ;;  %v4264_v46 = vadd.f32 %v11373_v54, %v4233_v20  ;;  %v4290_v18 = vmax.f32 %v4266_v38, 0.0 }
 0x2de   :  { %v4358_v5 = vpack.c.bf16 %v4285_v15, %v4284_v9  ;;  %8411 = vmatpush3.bf16.msra.mxu0 %v8882_v12  ;;  %8447 = vmatpush3.bf16.msra.mxu1 %v8883_v3  ;;  %v8909_v12 = vld [vmem:[#allocation5] sm:$0xff]  }
 0x2df   :  { %v4267_v17 = vadd.f32 %v11373_v54, %v4236_v1  ;;  %v4234_v0 = vmax.f32 %v3493_v13, %v4210_v43  ;;  %8412 = vmatprep.subr.bf16.mxu0 %v8884_v56  ;;  %v4288_v16 = vmax.f32 %v4264_v46, 0.0  ;;  %8496 = vmatprep.subr.bf16.mxu1 %v9174_v28 }
 0x2e0   :  { %8365 = vmatmul.mubr.bf16.gmra.mxu0 %v4358_v5 }
 0x2e1   :  { %v4291_v37 = vmax.f32 %v4267_v17, 0.0  ;;  %v4265_v19 = vadd.f32 %v11373_v54, %v4234_v0  ;;  %8416 = vmatprep.mubr.bf16.mxu0 %v11436_v23  ;;  %8449 = vmatmul.mubr.bf16.vlgmr.msra.gmra.mxu1 %v11474_v25  ;;  %v8888_v54 = vld [vmem:[#allocation3 + $0x128] sm:$0xff]   ;;  %v8889_v23 = vld [vmem:[#allocation3 + $0x120] sm:$0xff]  }
 0x2e2   :  { %8413 = vmatpush3.bf16.msra.mxu0 %v8884_v56  ;;  %8452 = vmatprep.mubr.bf16.mxu1 %v11461_v39 }
 0x2e3   :  { %v5093_v47 = vpack.c.bf16 %v4291_v37, %v4290_v18  ;;  %v4289_v57 = vmax.f32 %v4265_v19, 0.0  ;;  %8414 = vmatprep.subr.bf16.mxu0 %v8885_v4  ;;  %8497 = vmatpush3.bf16.msra.mxu1 %v8894_v48 }
 0x2e4   :  { %8498 = vmatprep.subr.bf16.mxu1 %v9174_v28 }
 0x2e5   :  { %v4891_v2 = vpack.c.bf16 %v4289_v57, %v4288_v16 }
 0x2e6   :  { %8415 = vmatpush3.bf16.msra.mxu0 %v8885_v4 }
 0x2e7   :  { %8464 = vmatprep.subr.bf16.mxu0 %v8886_v30 }
 0x2e9   :  { %8417 = vmatmul.mubr.bf16.vlgmr.msra.gmra.mxu0 %v11429_v24  ;;  %8453 = vmatmul.mubr.bf16.gmra.mxu1 %v11500_v6  ;;  %v8890_v24 = vld [vmem:[#allocation3 + $0x118] sm:$0xff]  }
 0x2ea   :  { %8420 = vmatprep.mubr.bf16.mxu0 %v11474_v25  ;;  %8465 = vmatpush3.bf16.msra.mxu0 %v8886_v30 }
 0x2eb   :  { %8456 = vmatprep.mubr.bf16.mxu1 %v11489_v33  ;;  %8466 = vmatprep.subr.bf16.mxu0 %v8887_v10 }
 0x2ee   :  { %8467 = vmatpush3.bf16.msra.mxu0 %v8887_v10 }
 0x2ef   :  { %8468 = vmatprep.subr.bf16.mxu0 %v8888_v54 }
 0x2f1   :  { %8421 = vmatmul.mubr.bf16.gmra.mxu0 %v11461_v39  ;;  %8457 = vmatmul.mubr.bf16.gmra.mxu1 %v4358_v5 }
 0x2f2   :  { %8424 = vmatprep.mubr.bf16.mxu0 %v11500_v6  ;;  %8469 = vmatpush3.bf16.msra.mxu0 %v8888_v54 }
 0x2f3   :  { %8460 = vmatprep.mubr.bf16.mxu1 %v11517_v35  ;;  %8470 = vmatprep.subr.bf16.mxu0 %v8889_v23 }
 0x2f6   :  { %8471 = vmatpush3.bf16.msra.mxu0 %v8889_v23 }
 0x2f7   :  { %8472 = vmatprep.subr.bf16.mxu0 %v8890_v24 }
 0x2f9   :  { %8425 = vmatmul.mubr.bf16.gmra.mxu0 %v11489_v33  ;;  %8461 = vmatmul.mubr.bf16.gmra.mxu1 %v4891_v2 }
 0x2fa   :  { %8428 = vmatprep.mubr.bf16.mxu0 %v4358_v5  ;;  %8473 = vmatpush3.bf16.msra.mxu0 %v8890_v24 }
 0x2fb   :  { %8474 = vmatprep.subr.bf16.mxu0 %v8891_v62  ;;  %8512 = vmatprep.mubr.msk.bf16.mxu1 %vm9175_vm0, %v9174_v28 }
 0x2fe   :  { %8475 = vmatpush3.bf16.msra.mxu0 %v8891_v62 }
 0x2ff   :  { %8476 = vmatprep.subr.bf16.mxu0 %v8892_v55 }
 0x301   :  { %8429 = vmatmul.mubr.bf16.gmra.mxu0 %v11517_v35 }
 0x302   :  { %8477 = vmatpush3.bf16.msra.mxu0 %v8892_v55  ;;  %8480 = vmatprep.mubr.bf16.mxu0 %v11474_v25  ;;  %v8895_v25 = vld [vmem:[#allocation5 + $0x38] sm:$0xff]  }
 0x303   :  { %8478 = vmatprep.subr.bf16.mxu0 %v8893_v52 }
 0x306   :  { %8479 = vmatpush3.bf16.msra.mxu0 %v8893_v52 }
 0x307   :  { %8516 = vmatprep.subr.bf16.mxu0 %v9174_v28 }
 0x309   :  { %8481 = vmatmul.mubr.bf16.vlgmr.msra.gmra.mxu0 %v11461_v39  ;;  %v8896_v39 = vld [vmem:[#allocation5 + $0x70] sm:$0xff]  }
 0x30a   :  { %8484 = vmatprep.mubr.bf16.mxu0 %v11500_v6  ;;  %8517 = vmatpush3.bf16.msra.mxu0 %v8895_v25  ;;  %v8898_v6 = vld [vmem:[#allocation5 + $0x68] sm:$0xff]  }
 0x30b   :  { %8518 = vmatprep.subr.bf16.mxu0 %v9174_v28  ;;  %8499 = vmatpush3.bf16.msra.mxu1 %v8896_v39 }
 0x30c   :  { %8500 = vmatprep.subr.bf16.mxu1 %v9174_v28 }
 0x30f   :  { %8501 = vmatpush3.bf16.msra.mxu1 %v8898_v6 }
 0x310   :  { %8502 = vmatprep.subr.bf16.mxu1 %v9174_v28 }
 0x311   :  { %8485 = vmatmul.mubr.bf16.gmra.mxu0 %v11489_v33  ;;  %v8897_v33 = vld [vmem:[#allocation5 + $0x30] sm:$0xff]  }
 0x312   :  { %8488 = vmatprep.mubr.bf16.mxu0 %v4358_v5  ;;  %8519 = vmatpush3.bf16.msra.mxu0 %v8897_v33 }
 0x313   :  { %8520 = vmatprep.subr.bf16.mxu0 %v9174_v28  ;;  %8503 = vmatpush3.bf16.msra.mxu1 %v8900_v11 }
 0x314   :  { %8504 = vmatprep.subr.bf16.mxu1 %v9174_v28 }
 0x316   :  { %8521 = vmatpush3.bf16.msra.mxu0 %v8899_v50 }
 0x317   :  { %8522 = vmatprep.subr.bf16.mxu0 %v9174_v28  ;;  %8505 = vmatpush3.bf16.msra.mxu1 %v8902_v7 }
 0x318   :  { %8506 = vmatprep.subr.bf16.mxu1 %v9174_v28 }
 0x319   :  { %8489 = vmatmul.mubr.bf16.gmra.mxu0 %v11517_v35 }
 0x31a   :  { %8492 = vmatprep.mubr.bf16.mxu0 %v4891_v2  ;;  %8523 = vmatpush3.bf16.msra.mxu0 %v8901_v51 }
 0x31b   :  { %8524 = vmatprep.subr.bf16.mxu0 %v9174_v28  ;;  %8507 = vmatpush3.bf16.msra.mxu1 %v8904_v58 }
 0x31c   :  { %8508 = vmatprep.subr.bf16.mxu1 %v9174_v28 }
 0x31e   :  { %8525 = vmatpush3.bf16.msra.mxu0 %v8903_v21 }
 0x31f   :  { %8526 = vmatprep.subr.bf16.mxu0 %v9174_v28  ;;  %8509 = vmatpush3.bf16.msra.mxu1 %v8906_v61 }
 0x320   :  { %8510 = vmatprep.subr.bf16.mxu1 %v9174_v28 }
 0x321   :  { %8493 = vmatmul.mubr.bf16.gmra.mxu0 %v5093_v47 }
 0x322   :  { %8527 = vmatpush3.bf16.msra.mxu0 %v8905_v8  ;;  %8532 = vmatprep.mubr.msk.bf16.mxu0 %vm9175_vm0, %v9174_v28 }
 0x323   :  { %8528 = vmatprep.subr.bf16.mxu0 %v9174_v28  ;;  %8511 = vmatpush3.bf16.msra.mxu1 %v8908_v29 }
 0x324   :  { %8536 = vmatprep.subr.bf16.mxu1 %v9174_v28 }
 0x326   :  { %8529 = vmatpush3.bf16.msra.mxu0 %v8907_v34 }
 0x327   :  { %8530 = vmatprep.subr.bf16.mxu0 %v9174_v28 }
 0x32a   :  { %8531 = vmatpush3.bf16.msra.mxu0 %v8909_v12 }
 0x32b   :  { %8556 = vmatprep.subr.bf16.mxu0 %v9174_v28 }
 0x380   :  { %v11565_v3 = vpop.f32.mrf.mxu1 }
 0x382   :  { %v11567_v26 = vpop.f32.mrf.mxu1 }
 0x384   :  { %v11569_v32 = vpop.f32.mrf.mxu1 }
 0x386   :  { %v11571_v36 = vpop.f32.mrf.mxu1 }
 0x387   :  { %v8354_v45 = vpop.f32.mrf.mxu0 }
 0x389   :  { %v11573_v22 = vpop.f32.mrf.mxu1  ;;  %v4458_v49 = vpop.f32.mrf.mxu0 }
 0x38b   :  { %v11575_v40 = vpop.f32.mrf.mxu1  ;;  %v11577_v42 = vpop.f32.mrf.mxu0 }
 0x38d   :  { %v11579_v14 = vpop.f32.mrf.mxu1  ;;  %v11581_v38 = vpop.f32.mrf.mxu0 }
 0x38f   :  { %v11583_v59 = vpop.f32.mrf.mxu1 }
 0x390   :  { %v11585_v20 = vpop.f32.mrf.mxu0 }
 0x391   :  { %v8394_v31 = vpop.f32.mrf.mxu1 }
 0x392   :  { %v11587_v63 = vpop.f32.mrf.mxu0 }
 0x393   :  { %v4635_v60 = vpop.f32.mrf.mxu1 }
 0x394   :  { %v11589_v56 = vpop.f32.mrf.mxu0 }
 0x395   :  { %v8395_v9 = vpop.f32.mrf.mxu1 }
 0x396   :  { %v11591_v15 = vpop.f32.mrf.mxu0 }
 0x397   :  { %v4638_v35 = vpop.f32.mrf.mxu1 }
 0x398   :  { %v8362_v41 = vpop.f32.mrf.mxu0 }
 0x399   :  { %v4644_v53 = vadd.f32 %v8394_v31, %v8362_v41  ;;  %v8398_v44 = vpop.f32.mrf.mxu1  ;;  %v4604_v41 = vadd.f32 %v11567_v26, %v4458_v49 }
 0x39a   :  { %v4490_v13 = vpop.f32.mrf.mxu0 }
 0x39b   :  { %v4636_v27 = vadd.f32 %v4635_v60, %v4490_v13  ;;  %v4651_v43 = vpop.f32.mrf.mxu1  ;;  %v4612_v60 = vadd.f32 %v11565_v3, %v8354_v45  ;;  %v4607_v3 = vadd.f32 %v11571_v36, %v11581_v38 }
 0x39c   :  { %v8363_v1 = vpop.f32.mrf.mxu0 }
 0x39d   :  { %v4647_v5 = vadd.f32 %v8395_v9, %v8363_v1  ;;  %v8399_v4 = vpop.f32.mrf.mxu1  ;;  %v4615_v1 = vadd.f32 %v11569_v32, %v11577_v42  ;;  %v4620_v32 = vadd.f32 %v11575_v40, %v11587_v63  ;;  %v11622_v42 = vld [vmem:[%s11815_s4] ss:$0 sm:$0xff]  ;;  %v4623_v40 = vadd.f32 %v11583_v59, %v11591_v15  ;;  %v8910_v59 = vld [vmem:[#allocation5 + $0xb8] sm:$0xff]  }
 0x39e   :  { %v4493_v46 = vpop.f32.mrf.mxu0 }
 0x39f   :  { %v4639_v17 = vadd.f32 %v4638_v35, %v4493_v46  ;;  %v4654_v47 = vpop.f32.mrf.mxu1 }
 0x3a0   :  { %v8366_v0 = vpop.f32.mrf.mxu0 }
 0x3a1   :  { %v4660_v18 = vadd.f32 %v8398_v44, %v8366_v0  ;;  %v8450_v10 = vpop.f32.mrf.mxu1 }
 0x3a2   :  { %v4506_v37 = vpop.f32.mrf.mxu0 }
 0x3a3   :  { %v4652_v19 = vadd.f32 %v4651_v43, %v4506_v37  ;;  %v4991_v24 = vpop.f32.mrf.mxu1 }
 0x3a4   :  { %v8367_v16 = vpop.f32.mrf.mxu0 }
 0x3a5   :  { %v4663_v57 = vadd.f32 %v8399_v4, %v8367_v16  ;;  %v8451_v52 = vpop.f32.mrf.mxu1  ;;  %v4628_v4 = vadd.f32 %v11573_v22, %v11585_v20 }
 0x3a6   :  { %v4509_v30 = vpop.f32.mrf.mxu0 }
 0x3a7   :  { %v4655_v2 = vadd.f32 %v4654_v47, %v4509_v30  ;;  %v4994_v39 = vpop.f32.mrf.mxu1 }
 0x3a9   :  { %v8418_v54 = vpop.f32.mrf.mxu0  ;;  %v8454_v50 = vpop.f32.mrf.mxu1 }
 0x3ab   :  { %v4789_v23 = vpop.f32.mrf.mxu0  ;;  %v5007_v58 = vpop.f32.mrf.mxu1 }
 0x3ac   :  { %v4852_v43 = vadd.f32 %v4789_v23, %v4604_v41 }
 0x3ad   :  { %v8419_v62 = vpop.f32.mrf.mxu0  ;;  %v8455_v12 = vpop.f32.mrf.mxu1 }
 0x3ae   :  { %v4855_v45 = vadd.f32 %v8419_v62, %v4615_v1 }
 0x3af   :  { %v4792_v55 = vpop.f32.mrf.mxu0  ;;  %v5010_v13 = vpop.f32.mrf.mxu1 }
 0x3b0   :  { %v5057_v47 = vadd.f32 %v8451_v52, %v4855_v45 }
 0x3b1   :  { %v8422_v48 = vpop.f32.mrf.mxu0  ;;  %v8458_v26 = vpop.f32.mrf.mxu1 }
 0x3b2   :  { %v4858_v38 = vadd.f32 %v8422_v48, %v4628_v4 }
 0x3b3   :  { %v4805_v25 = vpop.f32.mrf.mxu0  ;;  %v5023_v22 = vpop.f32.mrf.mxu1 }
 0x3b4   :  { %v4856_v30 = vadd.f32 %v4805_v25, %v4620_v32  ;;  %v5060_v52 = vadd.f32 %v8454_v50, %v4858_v38 }
 0x3b5   :  { %v8423_v33 = vpop.f32.mrf.mxu0  ;;  %v8459_v48 = vpop.f32.mrf.mxu1 }
 0x3b6   :  { %v5058_v25 = vadd.f32 %v5007_v58, %v4856_v30 }
 0x3b7   :  { %v4808_v6 = vpop.f32.mrf.mxu0  ;;  %v5026_v41 = vpop.f32.mrf.mxu1 }
 0x3b9   :  { %v8426_v11 = vpop.f32.mrf.mxu0 }
 0x3ba   :  { %v11593_v51 = vadd.f32 %v8426_v11, %v4644_v53  ;;  %v4854_v53 = vadd.f32 %v8418_v54, %v4612_v60 }
 0x3bb   :  { %v4821_v7 = vpop.f32.mrf.mxu0 }
 0x3bc   :  { %v11595_v21 = vadd.f32 %v4821_v7, %v4636_v27  ;;  %v5056_v0 = vadd.f32 %v8450_v10, %v4854_v53 }
 0x3bd   :  { %v8427_v8 = vpop.f32.mrf.mxu0 }
 0x3be   :  { %v11597_v61 = vadd.f32 %v8427_v8, %v4647_v5 }
 0x3bf   :  { %v4824_v34 = vpop.f32.mrf.mxu0 }
 0x3c0   :  { %v11599_v29 = vadd.f32 %v4824_v34, %v4639_v17 }
 0x3c1   :  { %v8430_v31 = vpop.f32.mrf.mxu0 }
 0x3c2   :  { %v11602_v9 = vadd.f32 %v8430_v31, %v4660_v18  ;;  %v4853_v18 = vadd.f32 %v4792_v55, %v4607_v3  ;;  %v8912_v3 = vld [vmem:[#allocation5 + $0xb0] sm:$0xff]  }
 0x3c3   :  { %v4837_v35 = vpop.f32.mrf.mxu0 }
 0x3c4   :  { %v11605_v44 = vadd.f32 %v4837_v35, %v4652_v19  ;;  %v5054_v19 = vadd.f32 %v4991_v24, %v4852_v43  ;;  %v5055_v54 = vadd.f32 %v4994_v39, %v4853_v18  ;;  %v8913_v18 = vld [vmem:[#allocation5 + $0xf0] sm:$0xff]  }
 0x3c5   :  { %v8431_v27 = vpop.f32.mrf.mxu0 }
 0x3c6   :  { %v11609_v5 = vadd.f32 %v8431_v27, %v4663_v57  ;;  %v4631_v57 = vadd.f32 %v11579_v14, %v11589_v56  ;;  %v4857_v14 = vadd.f32 %v4808_v6, %v4623_v40  ;;  %v8911_v27 = vld [vmem:[#allocation5 + $0xf8] sm:$0xff]  }
 0x3c7   :  { %v4840_v46 = vpop.f32.mrf.mxu0 }
 0x3c8   :  { %v11613_v17 = vadd.f32 %v4840_v46, %v4655_v2  ;;  %v4859_v63 = vadd.f32 %v8423_v33, %v4631_v57  ;;  %v5059_v58 = vadd.f32 %v5010_v13, %v4857_v14  ;;  %v5062_v13 = vadd.f32 %v5023_v22, %v11595_v21 }
 0x3c9   :  { %v8482_v49 = vpop.f32.mrf.mxu0 }
 0x3ca   :  { %v5258_v37 = vadd.f32 %v8482_v49, %v5056_v0  ;;  %v5061_v31 = vadd.f32 %v8455_v12, %v4859_v63  ;;  %v5064_v0 = vadd.f32 %v8458_v26, %v11593_v51  ;;  %v8462_v49 = vpop.f32.mrf.mxu1  ;;  %v5065_v26 = vadd.f32 %v8459_v48, %v11597_v61 }
 0x3cb   :  { %v5193_v36 = vpop.f32.mrf.mxu0  ;;  %v5063_v61 = vadd.f32 %v5026_v41, %v11599_v29 }
 0x3cc   :  { %v5256_v16 = vadd.f32 %v5193_v36, %v5054_v19  ;;  %v5281_v2 = vadd.f32 %v11622_v42, %v5258_v37  ;;  %v5039_v22 = vpop.f32.mrf.mxu1 }
 0x3cd   :  { %v8483_v20 = vpop.f32.mrf.mxu0  ;;  %v5066_v14 = vadd.f32 %v5039_v22, %v11605_v44  ;;  %v8938_v22 = vld [vmem:[#allocation5 + $0x108] sm:$0xff]  }
 0x3ce   :  { %v5259_v10 = vadd.f32 %v8483_v20, %v5057_v47  ;;  %v5279_v24 = vadd.f32 %v11622_v42, %v5256_v16  ;;  %v5297_v11 = vmax.f32 %v5281_v2, 0.0  ;;  %v8914_v16 = vld [vmem:[#allocation5 + $0xa8] sm:$0xff]  }
 0x3cf   :  { %v5196_v23 = vpop.f32.mrf.mxu0  ;;  %v8915_v2 = vld [vmem:[#allocation5 + $0xe8] sm:$0xff]  }
 0x3d0   :  { %v5282_v62 = vadd.f32 %v11622_v42, %v5259_v10  ;;  %v5257_v55 = vadd.f32 %v5196_v23, %v5055_v54  ;;  %v5295_v15 = vmax.f32 %v5279_v24, 0.0  ;;  %v8916_v23 = vld [vmem:[#allocation5 + $0xa0] sm:$0xff]  }
 0x3d1   :  { %v8486_v56 = vpop.f32.mrf.mxu0 }
 0x3d2   :  { %v5298_v7 = vmax.f32 %v5282_v62, 0.0  ;;  %v5280_v8 = vadd.f32 %v11622_v42, %v5257_v55  ;;  %v5262_v39 = vadd.f32 %v8486_v56, %v5060_v52  ;;  %v5068_v55 = vadd.f32 %v8462_v49, %v11602_v9  ;;  %v8463_v52 = vpop.f32.mrf.mxu1  ;;  %v8917_v56 = vld [vmem:[#allocation5 + $0xe0] sm:$0xff]  }
 0x3d3   :  { %v5209_v34 = vpop.f32.mrf.mxu0  ;;  %v5069_v9 = vadd.f32 %v8463_v52, %v11609_v5  ;;  %v8950_v52 = vld [vmem:[#allocation5 + $0x198] sm:$0xff]  }
 0x3d4   :  { %v5328_v33 = vpack.c.bf16 %v5298_v7, %v5297_v11  ;;  %v5296_v60 = vmax.f32 %v5280_v8, 0.0  ;;  %v5260_v35 = vadd.f32 %v5209_v34, %v5058_v25  ;;  %v5285_v6 = vadd.f32 %v11622_v42, %v5262_v39  ;;  %v8918_v34 = vld [vmem:[#allocation5 + $0x98] sm:$0xff]  }
 0x3d5   :  { %v8487_v53 = vpop.f32.mrf.mxu0 }
 0x3d6   :  { %v5311_v50 = vpack.c.bf16 %v5296_v60, %v5295_v15  ;;  %v5263_v1 = vadd.f32 %v8487_v53, %v5061_v31  ;;  %8513 = vmatmul.mubr.bf16.vlgmr.msra.gmra.mxu1 %v5328_v33  ;;  %v5283_v43 = vadd.f32 %v11622_v42, %v5260_v35  ;;  %v5301_v37 = vmax.f32 %v5285_v6, 0.0  ;;  %v5042_v33 = vpop.f32.mrf.mxu1  ;;  %v8919_v35 = vld [vmem:[#allocation5 + $0xd8] sm:$0xff]   ;;  %v8920_v6 = vld [vmem:[#allocation5 + $0x90] sm:$0xff]  }
 0x3d7   :  { %8537 = vmatpush3.bf16.msra.mxu1 %v8910_v59  ;;  %v5212_v46 = vpop.f32.mrf.mxu0  ;;  %8552 = vmatprep.mubr.msk.bf16.mxu1 %vm9175_vm0, %v9174_v28  ;;  %v5067_v5 = vadd.f32 %v5042_v33, %v11613_v17  ;;  %v8922_v17 = vld [vmem:[#allocation5 + $0x88] sm:$0xff]   ;;  %v8966_v33 = vld [vmem:[%s11820_s9 + $0x38] sm:$0xff]  }
 0x3d8   :  { %v5286_v12 = vadd.f32 %v11622_v42, %v5263_v1  ;;  %v5261_v45 = vadd.f32 %v5212_v46, %v5059_v58  ;;  %8533 = vmatmul.mubr.bf16.vlgmr.msra.gmra.mxu0 %v5311_v50  ;;  %8538 = vmatprep.subr.bf16.mxu1 %v9174_v28  ;;  %v5299_v38 = vmax.f32 %v5283_v43, 0.0  ;;  %v8921_v43 = vld [vmem:[#allocation5 + $0xd0] sm:$0xff]  }
 0x3d9   :  { %8557 = vmatpush3.bf16.msra.mxu0 %v8911_v27  ;;  %v8490_v4 = vpop.f32.mrf.mxu0  ;;  %8572 = vmatprep.mubr.msk.bf16.mxu0 %vm9175_vm0, %v9174_v28 }
 0x3da   :  { %v5302_v19 = vmax.f32 %v5286_v12, 0.0  ;;  %v5284_v32 = vadd.f32 %v11622_v42, %v5261_v45  ;;  %v5266_v36 = vadd.f32 %v8490_v4, %v5064_v0  ;;  %8558 = vmatprep.subr.bf16.mxu0 %v9174_v28  ;;  %v8923_v4 = vld [vmem:[#allocation5 + $0xc8] sm:$0xff]  }
 0x3db   :  { %8539 = vmatpush3.bf16.msra.mxu1 %v8912_v3  ;;  %v5225_v51 = vpop.f32.mrf.mxu0 }
 0x3dc   :  { %v11645_v47 = vpack.c.bf16 %v5302_v19, %v5301_v37  ;;  %v5300_v21 = vmax.f32 %v5284_v32, 0.0  ;;  %v5289_v57 = vadd.f32 %v11622_v42, %v5266_v36  ;;  %v5264_v30 = vadd.f32 %v5225_v51, %v5062_v13  ;;  %8540 = vmatprep.subr.bf16.mxu1 %v9174_v28  ;;  %v8926_v37 = vld [vmem:[#allocation5 + $0x138] sm:$0xff]   ;;  %v8928_v32 = vld [vmem:[#allocation5 + $0x130] sm:$0xff]   ;;  %v8931_v51 = vld [vmem:[#allocation5 + $0x168] sm:$0xff]  }
 0x3dd   :  { %8559 = vmatpush3.bf16.msra.mxu0 %v8913_v18  ;;  %v8491_v20 = vpop.f32.mrf.mxu0  ;;  %v8924_v18 = vld [vmem:[#allocation5 + $0x80] sm:$0xff]   ;;  %v8927_v19 = vld [vmem:[#allocation5 + $0x178] sm:$0xff]   ;;  %v8929_v36 = vld [vmem:[#allocation5 + $0x170] sm:$0xff]  }
 0x3de   :  { %v11649_v10 = vpack.c.bf16 %v5300_v21, %v5299_v38  ;;  %v5287_v54 = vadd.f32 %v11622_v42, %v5264_v30  ;;  %v5267_v40 = vadd.f32 %v8491_v20, %v5065_v26  ;;  %8560 = vmatprep.subr.bf16.mxu0 %v9174_v28  ;;  %v5305_v25 = vmax.f32 %v5289_v57, 0.0  ;;  %v8930_v38 = vld [vmem:[#allocation5 + $0x128] sm:$0xff]   ;;  %v8932_v26 = vld [vmem:[#allocation5 + $0x120] sm:$0xff]   ;;  %v8935_v21 = vld [vmem:[#allocation5 + $0x158] sm:$0xff]  }
 0x3df   :  { %8541 = vmatpush3.bf16.msra.mxu1 %v8914_v16  ;;  %v5228_v63 = vpop.f32.mrf.mxu0  ;;  %v8933_v16 = vld [vmem:[#allocation5 + $0x160] sm:$0xff]   ;;  %v8936_v57 = vld [vmem:[#allocation5 + $0x110] sm:$0xff]   ;;  %v8939_v20 = vld [vmem:[#allocation5 + $0x148] sm:$0xff]  }
 0x3e0   :  { %v5290_v24 = vadd.f32 %v11622_v42, %v5267_v40  ;;  %v5265_v62 = vadd.f32 %v5228_v63, %v5063_v61  ;;  %8542 = vmatprep.subr.bf16.mxu1 %v9174_v28  ;;  %v5303_v8 = vmax.f32 %v5287_v54, 0.0  ;;  %v8937_v30 = vld [vmem:[#allocation5 + $0x150] sm:$0xff]   ;;  %v8942_v54 = vld [vmem:[#allocation5 + $0x1b8] sm:$0xff]  }
 0x3e1   :  { %8561 = vmatpush3.bf16.msra.mxu0 %v8915_v2  ;;  %v8494_v48 = vpop.f32.mrf.mxu0  ;;  %v8940_v2 = vld [vmem:[#allocation5 + $0x100] sm:$0xff]   ;;  %v8943_v40 = vld [vmem:[#allocation5 + $0x1f8] sm:$0xff]   ;;  %v8944_v61 = vld [vmem:[#allocation5 + $0x1b0] sm:$0xff]  }
 0x3e2   :  { %v5306_v29 = vmax.f32 %v5290_v24, 0.0  ;;  %v5288_v11 = vadd.f32 %v11622_v42, %v5265_v62  ;;  %v5270_v7 = vadd.f32 %v8494_v48, %v5068_v55  ;;  %8562 = vmatprep.subr.bf16.mxu0 %v9174_v28  ;;  %v8945_v63 = vld [vmem:[#allocation5 + $0x1f0] sm:$0xff]   ;;  %v8947_v24 = vld [vmem:[#allocation5 + $0x1e8] sm:$0xff]   ;;  %v8948_v62 = vld [vmem:[#allocation5 + $0x1a0] sm:$0xff]  }
 0x3e3   :  { %8543 = vmatpush3.bf16.msra.mxu1 %v8916_v23  ;;  %v5241_v39 = vpop.f32.mrf.mxu0  ;;  %v8946_v23 = vld [vmem:[#allocation5 + $0x1a8] sm:$0xff]   ;;  %v8949_v55 = vld [vmem:[#allocation5 + $0x1e0] sm:$0xff]   ;;  %v8951_v48 = vld [vmem:[#allocation5 + $0x1d8] sm:$0xff]  }
 0x3e4   :  { %v11661_v31 = vpack.c.bf16 %v5306_v29, %v5305_v25  ;;  %v5304_v59 = vmax.f32 %v5288_v11, 0.0  ;;  %v5293_v15 = vadd.f32 %v11622_v42, %v5270_v7  ;;  %v5268_v44 = vadd.f32 %v5241_v39, %v5066_v14  ;;  %8544 = vmatprep.subr.bf16.mxu1 %v9174_v28  ;;  %v8952_v14 = vld [vmem:[#allocation5 + $0x190] sm:$0xff]   ;;  %v8954_v25 = vld [vmem:[#allocation5 + $0x188] sm:$0xff]   ;;  %v8956_v11 = vld [vmem:[#allocation5 + $0x180] sm:$0xff]  }
 0x3e5   :  { %8563 = vmatpush3.bf16.msra.mxu0 %v8917_v56  ;;  %v8495_v60 = vpop.f32.mrf.mxu0  ;;  %v8953_v56 = vld [vmem:[#allocation5 + $0x1d0] sm:$0xff]   ;;  %v8955_v29 = vld [vmem:[#allocation5 + $0x1c8] sm:$0xff]   ;;  %v8957_v7 = vld [vmem:[#allocation5 + $0x1c0] sm:$0xff]  }
 0x3e6   :  { %v11665_v41 = vpack.c.bf16 %v5304_v59, %v5303_v8  ;;  %v5291_v53 = vadd.f32 %v11622_v42, %v5268_v44  ;;  %v5271_v27 = vadd.f32 %v8495_v60, %v5069_v9  ;;  %8564 = vmatprep.subr.bf16.mxu0 %v9174_v28  ;;  %v5309_v46 = vmax.f32 %v5293_v15, 0.0  ;;  %v8958_v8 = vld [vmem:[%s11818_s7 + $0x38] sm:$0xff]   ;;  %v8959_v39 = vld [vmem:[%s11818_s7 + $0x30] sm:$0xff]   ;;  %v8960_v9 = vld [vmem:[%s11818_s7 + $0x28] sm:$0xff]  }
 0x3e7   :  { %8545 = vmatpush3.bf16.msra.mxu1 %v8918_v34  ;;  %v5244_v50 = vpop.f32.mrf.mxu0  ;;  %v8961_v34 = vld [vmem:[%s11818_s7 + $0x20] sm:$0xff]   ;;  %v8963_v59 = vld [vmem:[%s11818_s7 + $0x10] sm:$0xff]   ;;  %v8964_v15 = vld [vmem:[%s11818_s7 + $0x8] sm:$0xff]  }
 0x3e8   :  { %v5294_v1 = vadd.f32 %v11622_v42, %v5271_v27  ;;  %v5269_v58 = vadd.f32 %v5244_v50, %v5067_v5  ;;  %8546 = vmatprep.subr.bf16.mxu1 %v9174_v28  ;;  %v5307_v45 = vmax.f32 %v5291_v53, 0.0  ;;  %v8965_v44 = vld [vmem:[%s11818_s7] sm:$0xff]   ;;  %v8967_v60 = vld [vmem:[%s11820_s9 + $0x30] sm:$0xff]   ;;  %v8970_v53 = vld [vmem:[%s11820_s9 + $0x18] sm:$0xff]  }
 0x3e9   :  { %8565 = vmatpush3.bf16.msra.mxu0 %v8919_v35  ;;  %v8968_v35 = vld [vmem:[%s11820_s9 + $0x28] sm:$0xff]  }
 0x3ea   :  { %v5310_v3 = vmax.f32 %v5294_v1, 0.0  ;;  %v5292_v12 = vadd.f32 %v11622_v42, %v5269_v58  ;;  %8566 = vmatprep.subr.bf16.mxu0 %v9174_v28  ;;  %v8925_v42 = vld [vmem:[#allocation5 + $0xc0] sm:$0xff]  }
 0x3eb   :  { %8547 = vmatpush3.bf16.msra.mxu1 %v8920_v6 }
 0x3ec   :  { %v11674_v0 = vpack.c.bf16 %v5310_v3, %v5309_v46  ;;  %v5308_v49 = vmax.f32 %v5292_v12, 0.0  ;;  %8548 = vmatprep.subr.bf16.mxu1 %v9174_v28 }
 0x3ed   :  { %8567 = vmatpush3.bf16.msra.mxu0 %v8921_v43 }
 0x3ee   :  { %v11677_v13 = vpack.c.bf16 %v5308_v49, %v5307_v45  ;;  %8568 = vmatprep.subr.bf16.mxu0 %v9174_v28 }
 0x3ef   :  { %8549 = vmatpush3.bf16.msra.mxu1 %v8922_v17 }
 0x3f0   :  { %8550 = vmatprep.subr.bf16.mxu1 %v9174_v28 }
 0x3f1   :  { %8569 = vmatpush3.bf16.msra.mxu0 %v8923_v4 }
 0x3f2   :  { %8570 = vmatprep.subr.bf16.mxu0 %v9174_v28 }
 0x3f3   :  { %8551 = vmatpush3.bf16.msra.mxu1 %v8924_v18 }
 0x3f4   :  { %8576 = vmatprep.subr.bf16.mxu1 %v9174_v28 }
 0x3f5   :  { %8571 = vmatpush3.bf16.msra.mxu0 %v8925_v42 }
 0x3f6   :  { %8553 = vmatmul.mubr.bf16.vlgmr.msra.gmra.mxu1 %v11649_v10  ;;  %8596 = vmatprep.subr.bf16.mxu0 %v9174_v28  ;;  %v8941_v10 = vld [vmem:[#allocation5 + $0x140] sm:$0xff]  }
 0x3f7   :  { %8577 = vmatpush3.bf16.msra.mxu1 %v8926_v37  ;;  %8592 = vmatprep.mubr.msk.bf16.mxu1 %vm9175_vm0, %v9174_v28 }
 0x3f8   :  { %8573 = vmatmul.mubr.bf16.vlgmr.msra.gmra.mxu0 %v11645_v47  ;;  %8578 = vmatprep.subr.bf16.mxu1 %v9174_v28  ;;  %v8934_v47 = vld [vmem:[#allocation5 + $0x118] sm:$0xff]  }
 0x3f9   :  { %8597 = vmatpush3.bf16.msra.mxu0 %v8927_v19  ;;  %8612 = vmatprep.mubr.msk.bf16.mxu0 %vm9175_vm0, %v9174_v28 }
 0x3fa   :  { %8598 = vmatprep.subr.bf16.mxu0 %v9174_v28 }
 0x3fb   :  { %8579 = vmatpush3.bf16.msra.mxu1 %v8928_v32 }
 0x3fc   :  { %8580 = vmatprep.subr.bf16.mxu1 %v9174_v28 }
 0x3fd   :  { %8599 = vmatpush3.bf16.msra.mxu0 %v8929_v36 }
 0x3fe   :  { %8600 = vmatprep.subr.bf16.mxu0 %v9174_v28 }
 0x3ff   :  { %8581 = vmatpush3.bf16.msra.mxu1 %v8930_v38 }
 0x400   :  { %8582 = vmatprep.subr.bf16.mxu1 %v9174_v28 }
 0x401   :  { %8601 = vmatpush3.bf16.msra.mxu0 %v8931_v51 }
 0x402   :  { %8602 = vmatprep.subr.bf16.mxu0 %v9174_v28 }
 0x403   :  { %8583 = vmatpush3.bf16.msra.mxu1 %v8932_v26 }
 0x404   :  { %8584 = vmatprep.subr.bf16.mxu1 %v9174_v28 }
 0x405   :  { %8603 = vmatpush3.bf16.msra.mxu0 %v8933_v16 }
 0x406   :  { %8604 = vmatprep.subr.bf16.mxu0 %v9174_v28 }
 0x407   :  { %8585 = vmatpush3.bf16.msra.mxu1 %v8934_v47 }
 0x408   :  { %8586 = vmatprep.subr.bf16.mxu1 %v9174_v28 }
 0x409   :  { %8605 = vmatpush3.bf16.msra.mxu0 %v8935_v21 }
 0x40a   :  { %8606 = vmatprep.subr.bf16.mxu0 %v9174_v28 }
 0x40b   :  { %8587 = vmatpush3.bf16.msra.mxu1 %v8936_v57 }
 0x40c   :  { %8588 = vmatprep.subr.bf16.mxu1 %v9174_v28 }
 0x40d   :  { %8607 = vmatpush3.bf16.msra.mxu0 %v8937_v30 }
 0x40e   :  { %8608 = vmatprep.subr.bf16.mxu0 %v9174_v28 }
 0x40f   :  { %8589 = vmatpush3.bf16.msra.mxu1 %v8938_v22 }
 0x410   :  { %8590 = vmatprep.subr.bf16.mxu1 %v9174_v28 }
 0x411   :  { %8609 = vmatpush3.bf16.msra.mxu0 %v8939_v20 }
 0x412   :  { %8610 = vmatprep.subr.bf16.mxu0 %v9174_v28 }
 0x413   :  { %8591 = vmatpush3.bf16.msra.mxu1 %v8940_v2 }
 0x414   :  { %8616 = vmatprep.subr.bf16.mxu1 %v9174_v28 }
 0x415   :  { %8611 = vmatpush3.bf16.msra.mxu0 %v8941_v10 }
 0x416   :  { %8593 = vmatmul.mubr.bf16.vlgmr.msra.gmra.mxu1 %v11665_v41  ;;  %8636 = vmatprep.subr.bf16.mxu0 %v9174_v28  ;;  %v8969_v41 = vld [vmem:[%s11820_s9 + $0x20] sm:$0xff]  }
 0x417   :  { %8617 = vmatpush3.bf16.msra.mxu1 %v8942_v54  ;;  %8632 = vmatprep.mubr.msk.bf16.mxu1 %vm9175_vm0, %v9174_v28 }
 0x418   :  { %8613 = vmatmul.mubr.bf16.vlgmr.msra.gmra.mxu0 %v11661_v31  ;;  %8618 = vmatprep.subr.bf16.mxu1 %v9174_v28  ;;  %v8962_v31 = vld [vmem:[%s11818_s7 + $0x18] sm:$0xff]  }
 0x419   :  { %8637 = vmatpush3.bf16.msra.mxu0 %v8943_v40  ;;  %8652 = vmatprep.mubr.msk.bf16.mxu0 %vm9175_vm0, %v9174_v28 }
 0x41a   :  { %8638 = vmatprep.subr.bf16.mxu0 %v9174_v28 }
 0x41b   :  { %8619 = vmatpush3.bf16.msra.mxu1 %v8944_v61 }
 0x41c   :  { %8620 = vmatprep.subr.bf16.mxu1 %v9174_v28 }
 0x41d   :  { %8639 = vmatpush3.bf16.msra.mxu0 %v8945_v63 }
 0x41e   :  { %8640 = vmatprep.subr.bf16.mxu0 %v9174_v28 }
 0x41f   :  { %8621 = vmatpush3.bf16.msra.mxu1 %v8946_v23 }
 0x420   :  { %8622 = vmatprep.subr.bf16.mxu1 %v9174_v28 }
 0x421   :  { %8641 = vmatpush3.bf16.msra.mxu0 %v8947_v24  ;;  %v6947_v24 = vld [vmem:[%s11817_s6] ss:$0 sm:$0xff] }
 0x422   :  { %8642 = vmatprep.subr.bf16.mxu0 %v9174_v28 }
 0x423   :  { %8623 = vmatpush3.bf16.msra.mxu1 %v8948_v62 }
 0x424   :  { %8624 = vmatprep.subr.bf16.mxu1 %v9174_v28 }
 0x425   :  { %8643 = vmatpush3.bf16.msra.mxu0 %v8949_v55 }
 0x426   :  { %8644 = vmatprep.subr.bf16.mxu0 %v9174_v28 }
 0x427   :  { %8625 = vmatpush3.bf16.msra.mxu1 %v8950_v52 }
 0x428   :  { %8626 = vmatprep.subr.bf16.mxu1 %v9174_v28 }
 0x429   :  { %8645 = vmatpush3.bf16.msra.mxu0 %v8951_v48 }
 0x42a   :  { %8646 = vmatprep.subr.bf16.mxu0 %v9174_v28 }
 0x42b   :  { %8627 = vmatpush3.bf16.msra.mxu1 %v8952_v14 }
 0x42c   :  { %8628 = vmatprep.subr.bf16.mxu1 %v9174_v28 }
 0x42d   :  { %8647 = vmatpush3.bf16.msra.mxu0 %v8953_v56 }
 0x42e   :  { %8648 = vmatprep.subr.bf16.mxu0 %v9174_v28 }
 0x42f   :  { %8629 = vmatpush3.bf16.msra.mxu1 %v8954_v25 }
 0x430   :  { %8630 = vmatprep.subr.bf16.mxu1 %v9174_v28 }
 0x431   :  { %8649 = vmatpush3.bf16.msra.mxu0 %v8955_v29 }
 0x432   :  { %8650 = vmatprep.subr.bf16.mxu0 %v9174_v28 }
 0x433   :  { %8631 = vmatpush3.bf16.msra.mxu1 %v8956_v11 }
 0x434   :  { %8656 = vmatprep.subr.bf16.mxu1 %v9174_v28 }
 0x435   :  { %8651 = vmatpush3.bf16.msra.mxu0 %v8957_v7 }
 0x436   :  { %8633 = vmatmul.mubr.bf16.vlgmr.msra.gmra.mxu1 %v11677_v13  ;;  %8676 = vmatprep.subr.bf16.mxu0 %v9174_v28 }
 0x437   :  { %8672 = vmatprep.mubr.msk.bf16.mxu1 %vm9175_vm0, %v9174_v28  ;;  %8657 = vmatpush3.bf16.msra.mxu1 %v8958_v8 }
 0x438   :  { %8653 = vmatmul.mubr.bf16.vlgmr.msra.gmra.mxu0 %v11674_v0  ;;  %8658 = vmatprep.subr.bf16.mxu1 %v9174_v28 }
 0x439   :  { %8692 = vmatprep.mubr.msk.bf16.mxu0 %vm9175_vm0, %v9174_v28  ;;  %8677 = vmatpush3.bf16.msra.mxu0 %v8966_v33 }
 0x43a   :  { %8678 = vmatprep.subr.bf16.mxu0 %v9174_v28 }
 0x43b   :  { %8659 = vmatpush3.bf16.msra.mxu1 %v8959_v39 }
 0x43c   :  { %8660 = vmatprep.subr.bf16.mxu1 %v9174_v28 }
 0x43d   :  { %8679 = vmatpush3.bf16.msra.mxu0 %v8967_v60 }
 0x43e   :  { %8680 = vmatprep.subr.bf16.mxu0 %v9174_v28 }
 0x43f   :  { %8661 = vmatpush3.bf16.msra.mxu1 %v8960_v9  ;;  %v8971_v9 = vld [vmem:[%s11820_s9 + $0x10] sm:$0xff]  }
 0x440   :  { %8662 = vmatprep.subr.bf16.mxu1 %v9174_v28 }
 0x441   :  { %8681 = vmatpush3.bf16.msra.mxu0 %v8968_v35 }
 0x442   :  { %8682 = vmatprep.subr.bf16.mxu0 %v9174_v28 }
 0x443   :  { %8663 = vmatpush3.bf16.msra.mxu1 %v8961_v34  ;;  %v8972_v34 = vld [vmem:[%s11820_s9 + $0x8] sm:$0xff]  }
 0x444   :  { %8664 = vmatprep.subr.bf16.mxu1 %v9174_v28 }
 0x445   :  { %8683 = vmatpush3.bf16.msra.mxu0 %v8969_v41 }
 0x446   :  { %8684 = vmatprep.subr.bf16.mxu0 %v9174_v28 }
 0x447   :  { %8665 = vmatpush3.bf16.msra.mxu1 %v8962_v31  ;;  %v8973_v31 = vld [vmem:[%s11820_s9] sm:$0xff]  }
 0x448   :  { %8666 = vmatprep.subr.bf16.mxu1 %v9174_v28 }
 0x449   :  { %8685 = vmatpush3.bf16.msra.mxu0 %v8970_v53 }
 0x44a   :  { %8686 = vmatprep.subr.bf16.mxu0 %v9174_v28 }
 0x44b   :  { %8667 = vmatpush3.bf16.msra.mxu1 %v8963_v59  ;;  %v6948_v59 = vld [vmem:[%s11819_s8] ss:$0 sm:$0xff] }
 0x44c   :  { %8668 = vmatprep.subr.bf16.mxu1 %v9174_v28 }
 0x44d   :  { %8687 = vmatpush3.bf16.msra.mxu0 %v8971_v9 }
 0x44e   :  { %8688 = vmatprep.subr.bf16.mxu0 %v9174_v28 }
 0x44f   :  { %8669 = vmatpush3.bf16.msra.mxu1 %v8964_v15 }
 0x450   :  { %8670 = vmatprep.subr.bf16.mxu1 %v9174_v28 }
 0x451   :  { %8689 = vmatpush3.bf16.msra.mxu0 %v8972_v34 }
 0x452   :  { %8690 = vmatprep.subr.bf16.mxu0 %v9174_v28  ;;  %v6957_v28 = vld [vmem:[%s11821_s10] ss:$0 sm:$0xff] }
 0x453   :  { %8671 = vmatpush3.bf16.msra.mxu1 %v8965_v44 }
 0x455   :  { %8691 = vmatpush3.bf16.msra.mxu0 %v8973_v31 }
 0x496   :  { %v5428_v27 = vpop.f32.mrf.mxu1 }
 0x498   :  { %v8514_v5 = vpop.f32.mrf.mxu1  ;;  %v5517_v50 = vpop.f32.mrf.mxu0 }
 0x499   :  { %v5518_v6 = vadd.f32 %v5517_v50, %v5428_v27 }
 0x49a   :  { %v5431_v1 = vpop.f32.mrf.mxu1  ;;  %v8534_v58 = vpop.f32.mrf.mxu0 }
 0x49c   :  { %v8515_v43 = vpop.f32.mrf.mxu1  ;;  %v5520_v46 = vpop.f32.mrf.mxu0 }
 0x49d   :  { %v5521_v3 = vadd.f32 %v5520_v46, %v5431_v1 }
 0x49e   :  { %v8535_v12 = vpop.f32.mrf.mxu0 }
 0x4b6   :  { %v5624_v17 = vpop.f32.mrf.mxu1 }
 0x4b7   :  { %v5631_v47 = vadd.f32 %v5624_v17, %v5518_v6 }
 0x4b8   :  { %v8554_v45 = vpop.f32.mrf.mxu1  ;;  %v5733_v0 = vpop.f32.mrf.mxu0 }
 0x4b9   :  { %v5740_v21 = vadd.f32 %v5733_v0, %v5631_v47 }
 0x4ba   :  { %v5627_v49 = vpop.f32.mrf.mxu1  ;;  %v8574_v4 = vpop.f32.mrf.mxu0 }
 0x4bb   :  { %v5632_v57 = vadd.f32 %v5627_v49, %v5521_v3 }
 0x4bc   :  { %v8555_v13 = vpop.f32.mrf.mxu1  ;;  %v5736_v18 = vpop.f32.mrf.mxu0 }
 0x4bd   :  { %v5741_v22 = vadd.f32 %v5736_v18, %v5632_v57 }
 0x4be   :  { %v8575_v42 = vpop.f32.mrf.mxu0 }
 0x4d6   :  { %v5842_v37 = vpop.f32.mrf.mxu1 }
 0x4d7   :  { %v5849_v30 = vadd.f32 %v5842_v37, %v5740_v21 }
 0x4d8   :  { %v8594_v19 = vpop.f32.mrf.mxu1  ;;  %v5951_v32 = vpop.f32.mrf.mxu0 }
 0x4d9   :  { %v5958_v20 = vadd.f32 %v5951_v32, %v5849_v30 }
 0x4da   :  { %v5845_v36 = vpop.f32.mrf.mxu1  ;;  %v8614_v38 = vpop.f32.mrf.mxu0 }
 0x4db   :  { %v5850_v2 = vadd.f32 %v5845_v36, %v5741_v22 }
 0x4dc   :  { %v8595_v51 = vpop.f32.mrf.mxu1  ;;  %v5954_v26 = vpop.f32.mrf.mxu0 }
 0x4dd   :  { %v5959_v63 = vadd.f32 %v5954_v26, %v5850_v2 }
 0x4de   :  { %v8615_v16 = vpop.f32.mrf.mxu0 }
 0x4f6   :  { %v6060_v10 = vpop.f32.mrf.mxu1 }
 0x4f7   :  { %v6067_v54 = vadd.f32 %v6060_v10, %v5958_v20 }
 0x4f8   :  { %v8634_v40 = vpop.f32.mrf.mxu1  ;;  %v6169_v61 = vpop.f32.mrf.mxu0 }
 0x4f9   :  { %v6176_v23 = vadd.f32 %v6169_v61, %v6067_v54 }
 0x4fa   :  { %v6063_v62 = vpop.f32.mrf.mxu1  ;;  %v8654_v55 = vpop.f32.mrf.mxu0 }
 0x4fb   :  { %v6068_v52 = vadd.f32 %v6063_v62, %v5959_v63  ;;  %v6185_v56 = vadd.f32 %v6947_v24, %v6176_v23 }
 0x4fc   :  { %v8635_v48 = vpop.f32.mrf.mxu1  ;;  %v6172_v14 = vpop.f32.mrf.mxu0 }
 0x4fd   :  { %v6177_v25 = vadd.f32 %v6172_v14, %v6068_v52  ;;  %v6187_v7 = vmax.f32 %v6185_v56, 0.0 }
 0x4fe   :  { %v8655_v29 = vpop.f32.mrf.mxu0 }
 0x4ff   :  { %v6186_v11 = vadd.f32 %v6947_v24, %v6177_v25 }
 0x501   :  { %v6188_v8 = vmax.f32 %v6186_v11, 0.0 }
 0x503   :  { %v6189_v39 = vpack.c.bf16 %v6188_v8, %v6187_v7 }
 0x505   :  { %8673 = vmatmul.mubr.bf16.vlgmr.msra.gmra.mxu1 %v6189_v39 }
 0x5c5   :  { %v6295_v15 = vpop.f32.mrf.mxu1 }
 0x5c6   :  { %v6296_v33 = vadd.f32 %v6948_v59, %v6295_v15 }
 0x5c7   :  { %v8674_v44 = vpop.f32.mrf.mxu1 }
 0x5c8   :  { %v6302_v53 = vmax.f32 %v6296_v33, 0.0 }
 0x5c9   :  { %v6298_v60 = vpop.f32.mrf.mxu1 }
 0x5ca   :  { %v6299_v35 = vadd.f32 %v6948_v59, %v6298_v60 }
 0x5cb   :  { %v8675_v41 = vpop.f32.mrf.mxu1 }
 0x5cc   :  { %v6303_v27 = vmax.f32 %v6299_v35, 0.0 }
 0x5ce   :  { %v6304_v5 = vpack.c.bf16 %v6303_v27, %v6302_v53 }
 0x5d0   :  { %8693 = vmatmul.mubr.bf16.vlgmr.msra.gmra.mxu0 %v6304_v5 }
 0x690   :  { %v6410_v50 = vpop.f32.mrf.mxu0 }
 0x691   :  { %v6411_v6 = vadd.f32 %v6957_v28, %v6410_v50 }
 0x692   :  { %v8694_v1 = vpop.f32.mrf.mxu0 }
 0x693   :  { %6417 = vst [vmem:[%s11822_s11] sm:$0xff] %v6411_v6 }
 0x694   :  { %v6413_v58 = vpop.f32.mrf.mxu0 }
 0x695   :  { %v6414_v43 = vadd.f32 %v6957_v28, %v6413_v58 }
 0x696   :  { %v8695_v46 = vpop.f32.mrf.mxu0 }
 0x697   :  { %6418 = vst [vmem:[%s11822_s11 + $0x8] sm:$0xff] %v6414_v43 }
 0x698   :  { %6423 = vsyncpa [#allocation4], 1 }
 0x699   :  { %6424 = vsyncpa [#allocation6], 1 }

</bundles_post_ra>
